<compile_context>
chip_gen: v7x
topology: tpu7x:2x2x1
jax: 0.10.0
libtpu: 0.0.40
codegen_flags: <defaults>
</compile_context>

<pallas_src>
import functools

import jax
import jax.numpy as jnp
from jax.experimental import pallas as pl
from jax.experimental.pallas import tpu as pltpu

# Logical (PyTorch) hidden sizes and their MXU/lane-padded counterparts.
H1, H2, H3 = 500, 500, 2000
H1P, H2P, H3P = 512, 512, 2048

_LANE = 128     # lane width: pad large last dims to multiples of this
_SUBLANE = 8    # sublane granularity for the batch (second-to-last) dim


def _round_up(x, m):
    return ((x + m - 1) // m) * m


def _pad2d(a, rows, cols):
    return jnp.pad(a, ((0, rows - a.shape[0]), (0, cols - a.shape[1])))


def _mlp_kernel(x_ref,
                w1_ref, b1_ref,
                w2_ref, b2_ref,
                w3_ref, b3_ref,
                w4_ref, b4_ref,
                o_ref):
    """Fused 4-layer MLP: (Linear+ReLU) x 3 + Linear.

    x arrives in f32 and is cast to the weight dtype (bf16) in-kernel.
    All matmuls accumulate in f32 on the MXU; biases are added in f32.
    """
    wdt = w1_ref.dtype
    x = x_ref[...].astype(wdt)
    h = jnp.dot(x, w1_ref[...], preferred_element_type=jnp.float32)
    h = jnp.maximum(h + b1_ref[...], 0.0).astype(wdt)
    h = jnp.dot(h, w2_ref[...], preferred_element_type=jnp.float32)
    h = jnp.maximum(h + b2_ref[...], 0.0).astype(wdt)
    h = jnp.dot(h, w3_ref[...], preferred_element_type=jnp.float32)
    h = jnp.maximum(h + b3_ref[...], 0.0).astype(wdt)
    out = jnp.dot(h, w4_ref[...], preferred_element_type=jnp.float32)
    o_ref[...] = (out + b4_ref[...]).astype(o_ref.dtype)


def _pad_input_dim(input_dim):
    """Padded width of the input/layer-1 contraction dim."""
    if input_dim <= 64:
        return _round_up(input_dim, 64)       # tiny inputs: don't blow up to 128
    return _round_up(input_dim, _LANE)


def prepare_encoder_params(params, compute_dtype=jnp.bfloat16):
    """Pad weights/biases to MXU/lane-friendly shapes and cast weights.

    Zero padding is numerically exact: padded x columns, padded weight
    rows/columns and padded bias entries are all zero (and ReLU(0) = 0), so
    padded hidden units contribute nothing to real outputs.
    Call once; reuse the result for every forward pass.
    """
    input_dim = params["w1"].shape[0]
    feature_dim = params["w4"].shape[1]
    din_p = _pad_input_dim(input_dim)
    f_p = _round_up(feature_dim, _LANE)
    return {
        "w1": _pad2d(params["w1"], din_p, H1P).astype(compute_dtype),
        "b1": _pad2d(params["b1"], 1, H1P).astype(jnp.float32),
        "w2": _pad2d(params["w2"], H1P, H2P).astype(compute_dtype),
        "b2": _pad2d(params["b2"], 1, H2P).astype(jnp.float32),
        "w3": _pad2d(params["w3"], H2P, H3P).astype(compute_dtype),
        "b3": _pad2d(params["b3"], 1, H3P).astype(jnp.float32),
        "w4": _pad2d(params["w4"], H3P, f_p).astype(compute_dtype),
        "b4": _pad2d(params["b4"], 1, f_p).astype(jnp.float32),
    }


_const_map = lambda i: (0, 0)


def _resident_spec(shape):
    """BlockSpec for a VMEM-resident weight/bias: constant index_map, and
    single-buffered when this JAX exposes pipeline_mode (halves the resident
    weight footprint; weights are never re-DMA'd so 1 buffer suffices)."""
    try:
        return pl.BlockSpec(shape, _const_map, pipeline_mode=pl.Buffered(1))
    except Exception:  # pragma: no cover - older JAX without pipeline_mode
        return pl.BlockSpec(shape, _const_map)


def _batch_tiling(n, block_n):
    """Pick (bn, n_p): batch tile and padded batch.

    Large batches are split into >=2 balanced tiles so the 'parallel' grid
    axis can be sharded across both v7x TensorCores, while tiny batches get a
    single minimally padded tile.
    """
    n_sub = _round_up(n, _SUBLANE)
    bn = min(block_n, n_sub)
    num_steps = -(-n_sub // bn)
    if num_steps == 1 and n_sub >= 2 * _SUBLANE:
        num_steps = 2                       # keep both v7x TCs busy
    bn = _round_up(-(-n_sub // num_steps), _SUBLANE)
    n_p = num_steps * bn
    return bn, n_p


@functools.partial(jax.jit, static_argnames=("feature_dim", "block_n"))
def encoder_forward(x, padded_params, *, feature_dim, block_n=512):
    """Runs the Encoder MLP as a single fused Pallas kernel.

    x: [N, input_dim] float32
    padded_params: output of prepare_encoder_params()
    feature_dim: original (unpadded) output width
    block_n: max batch tile (512 fills the MXU on v6e/v7x; fine on v5e too)
    """
    n, input_dim = x.shape
    din_p = padded_params["w1"].shape[0]
    f_p = padded_params["w4"].shape[1]

    bn, n_p = _batch_tiling(n, block_n)

    # Zero-pad the batch/input dims (no dtype cast here: the bf16 cast
    # happens inside the kernel, avoiding a separate XLA pass over x).
    xp = _pad2d(x, n_p, din_p)

    grid_spec = pl.GridSpec(
        grid=(n_p // bn,),
        in_specs=[
            pl.BlockSpec((bn, din_p), lambda i: (i, 0)),      # x tile
            _resident_spec((din_p, H1P)),                     # w1
            _resident_spec((1, H1P)),                         # b1
            _resident_spec((H1P, H2P)),                       # w2
            _resident_spec((1, H2P)),                         # b2
            _resident_spec((H2P, H3P)),                       # w3
            _resident_spec((1, H3P)),                         # b3
            _resident_spec((H3P, f_p)),                       # w4
            _resident_spec((1, f_p)),                         # b4
        ],
        out_specs=pl.BlockSpec((bn, f_p), lambda i: (i, 0)),
    )

    flops = 2 * n_p * (din_p * H1P + H1P * H2P + H2P * H3P + H3P * f_p)
    param_bytes = sum(int(v.size) * v.dtype.itemsize
                      for v in padded_params.values())
    bytes_accessed = (int(xp.size) * xp.dtype.itemsize
                      + n_p * f_p * 4
                      + param_bytes)

    out_p = pl.pallas_call(
        _mlp_kernel,
        out_shape=jax.ShapeDtypeStruct((n_p, f_p), jnp.float32),
        grid_spec=grid_spec,
        compiler_params=pltpu.CompilerParams(
            dimension_semantics=("parallel",),
            # ~15 MiB actually used at bn=512 (single-buffered bf16 weights
            # + double-buffered x/out tiles + f32 intermediates); 48 MiB is
            # above the 32 MiB scoped default yet safe on v7x's 64 MiB VMEM.
            vmem_limit_bytes=48 * 1024 * 1024,
        ),
        cost_estimate=pl.CostEstimate(
            flops=flops, transcendentals=0, bytes_accessed=bytes_accessed),
    )(
        xp,
        padded_params["w1"], padded_params["b1"],
        padded_params["w2"], padded_params["b2"],
        padded_params["w3"], padded_params["b3"],
        padded_params["w4"], padded_params["b4"],
    )
    # Slice back to the logical batch / feature width.
    # TODO(synk): for large N, keep the padded [n_p, f_p] output and fuse the
    # slice into the consumer to avoid one extra HBM round trip.
    return out_p[:n, :feature_dim]


def init_encoder_params(key, input_dim, feature_dim):
    """Deterministic init mimicking PyTorch nn.Linear default U(-1/sqrt(in), 1/sqrt(in)).

    Weights are stored [in_features, out_features] (transposed vs PyTorch) so
    the kernel computes h = x @ W + b directly.
    """
    dims = [(input_dim, H1), (H1, H2), (H2, H3), (H3, feature_dim)]
    params = {}
    keys = jax.random.split(key, 2 * len(dims))
    for idx, (d_in, d_out) in enumerate(dims):
        bound = 1.0 / jnp.sqrt(jnp.float32(d_in))
        w = jax.random.uniform(keys[2 * idx], (d_in, d_out),
                               minval=-bound, maxval=bound, dtype=jnp.float32)
        b = jax.random.uniform(keys[2 * idx + 1], (1, d_out),
                               minval=-bound, maxval=bound, dtype=jnp.float32)
        params[f"w{idx + 1}"] = w
        params[f"b{idx + 1}"] = b
    return params


def encoder_ref(x, params, compute_dtype=jnp.float32):
    """Pure-JAX reference. With compute_dtype=bf16 it mirrors the kernel's
    bf16-inputs / f32-accumulation numerics; with f32 it matches PyTorch."""
    def layer(h, w, b, act):
        y = jnp.dot(h.astype(compute_dtype), w.astype(compute_dtype),
                    preferred_element_type=jnp.float32) + b
        return jnp.maximum(y, 0.0) if act else y

    h = layer(x, params["w1"], params["b1"], True)
    h = layer(h, params["w2"], params["b2"], True)
    h = layer(h, params["w3"], params["b3"], True)
    return layer(h, params["w4"], params["b4"], False)


def _check(out, x, params):
    # Exact-semantics check vs a reference with identical bf16/f32 numerics.
    ref_bf16 = encoder_ref(x, params, compute_dtype=jnp.bfloat16)
    assert jnp.allclose(out, ref_bf16, atol=2e-3, rtol=2e-3), \
        "mismatch vs bf16-matched reference"
    # Loose sanity check vs full-f32 (PyTorch-equivalent) math.
    ref_f32 = encoder_ref(x, params, compute_dtype=jnp.float32)
    max_err = float(jnp.max(jnp.abs(out - ref_f32)))
    assert max_err < 1e-1, f"unexpected deviation from f32 reference: {max_err}"


if __name__ == "__main__":
    key = jax.random.PRNGKey(0)
    k_param, k_x1, k_x2 = jax.random.split(key, 3)

    input_dim = 32
    feature_dim = 16

    params = init_encoder_params(k_param, input_dim, feature_dim)
    padded = prepare_encoder_params(params, compute_dtype=jnp.bfloat16)

    # Small batch: single 8-row tile path.
    x_small = jax.random.normal(k_x1, (8, input_dim), dtype=jnp.float32)
    out_small = jax.block_until_ready(
        encoder_forward(x_small, padded, feature_dim=feature_dim))
    assert out_small.shape == (8, feature_dim)
    _check(out_small, x_small, params)

    # Non-aligned batch: exercises the >=2-step balanced tiling path.
    x_mid = jax.random.normal(k_x2, (260, input_dim), dtype=jnp.float32)
    out_mid = jax.block_until_ready(
        encoder_forward(x_mid, padded, feature_dim=feature_dim))
    assert out_mid.shape == (260, feature_dim)
    _check(out_mid, x_mid, params)

    print("KERNEL_OK")
</pallas_src>

<mosaic_0001>
module attributes {stable_mosaic.version = 11 : i64} {
  func.func @_mlp_kernel(%arg0: i32, %arg1: memref<8x64xf32, #tpu.memory_space<vmem>>, %arg2: memref<64x512xbf16, #tpu.memory_space<vmem>>, %arg3: memref<1x512xf32, #tpu.memory_space<vmem>>, %arg4: memref<512x512xbf16, #tpu.memory_space<vmem>>, %arg5: memref<1x512xf32, #tpu.memory_space<vmem>>, %arg6: memref<512x2048xbf16, #tpu.memory_space<vmem>>, %arg7: memref<1x2048xf32, #tpu.memory_space<vmem>>, %arg8: memref<2048x128xbf16, #tpu.memory_space<vmem>>, %arg9: memref<1x128xf32, #tpu.memory_space<vmem>>, %arg10: memref<8x128xf32, #tpu.memory_space<vmem>>) attributes {dimension_semantics = [#tpu.dimension_semantics<parallel>], iteration_bounds = array<i64: 1>, scalar_prefetch = 0 : i64, scratch_operands = 0 : i64, tpu.core_type = #tpu.core_type<tc>, window_params = [{transform_indices = @transform_0, window_bounds = array<i64: 8, 64>}, {pipeline_mode = #tpu.pipeline_mode<synchronous>, transform_indices = @transform_1, window_bounds = array<i64: 64, 512>}, {pipeline_mode = #tpu.pipeline_mode<synchronous>, transform_indices = @transform_2, window_bounds = array<i64: 1, 512>}, {pipeline_mode = #tpu.pipeline_mode<synchronous>, transform_indices = @transform_3, window_bounds = array<i64: 512, 512>}, {pipeline_mode = #tpu.pipeline_mode<synchronous>, transform_indices = @transform_4, window_bounds = array<i64: 1, 512>}, {pipeline_mode = #tpu.pipeline_mode<synchronous>, transform_indices = @transform_5, window_bounds = array<i64: 512, 2048>}, {pipeline_mode = #tpu.pipeline_mode<synchronous>, transform_indices = @transform_6, window_bounds = array<i64: 1, 2048>}, {pipeline_mode = #tpu.pipeline_mode<synchronous>, transform_indices = @transform_7, window_bounds = array<i64: 2048, 128>}, {pipeline_mode = #tpu.pipeline_mode<synchronous>, transform_indices = @transform_8, window_bounds = array<i64: 1, 128>}, {transform_indices = @transform_9, window_bounds = array<i64: 8, 128>}]} {
    %c0 = arith.constant 0 : index
    %c0_0 = arith.constant 0 : index
    %0 = vector.load %arg1[%c0, %c0_0] : memref<8x64xf32, #tpu.memory_space<vmem>>, vector<8x64xf32>
    %1 = arith.truncf %0 : vector<8x64xf32> to vector<8x64xbf16>
    %c0_1 = arith.constant 0 : index
    %c0_2 = arith.constant 0 : index
    %2 = vector.load %arg2[%c0_1, %c0_2] : memref<64x512xbf16, #tpu.memory_space<vmem>>, vector<64x512xbf16>
    %cst = arith.constant dense<0.000000e+00> : vector<8x512xf32>
    %3 = tpu.matmul %1, %2, %cst {dimension_numbers = #tpu.dot_dimension_numbers<[1], [0], [0], [1], [0, 0, 1, 1], [], []>} : vector<8x64xbf16>, vector<64x512xbf16>, vector<8x512xf32> -> vector<8x512xf32>
    %c0_3 = arith.constant 0 : index
    %c0_4 = arith.constant 0 : index
    %4 = vector.load %arg3[%c0_3, %c0_4] : memref<1x512xf32, #tpu.memory_space<vmem>>, vector<1x512xf32>
    %5 = vector.broadcast %4 : vector<1x512xf32> to vector<8x512xf32>
    %6 = arith.addf %3, %5 : vector<8x512xf32>
    %cst_5 = arith.constant 0.000000e+00 : f32
    %7 = vector.broadcast %cst_5 : f32 to vector<8x512xf32>
    %8 = arith.maximumf %6, %7 : vector<8x512xf32>
    %9 = arith.truncf %8 : vector<8x512xf32> to vector<8x512xbf16>
    %c0_6 = arith.constant 0 : index
    %c0_7 = arith.constant 0 : index
    %10 = vector.load %arg4[%c0_6, %c0_7] : memref<512x512xbf16, #tpu.memory_space<vmem>>, vector<512x512xbf16>
    %cst_8 = arith.constant dense<0.000000e+00> : vector<8x512xf32>
    %11 = tpu.matmul %9, %10, %cst_8 {dimension_numbers = #tpu.dot_dimension_numbers<[1], [0], [0], [1], [0, 0, 1, 1], [], []>} : vector<8x512xbf16>, vector<512x512xbf16>, vector<8x512xf32> -> vector<8x512xf32>
    %c0_9 = arith.constant 0 : index
    %c0_10 = arith.constant 0 : index
    %12 = vector.load %arg5[%c0_9, %c0_10] : memref<1x512xf32, #tpu.memory_space<vmem>>, vector<1x512xf32>
    %13 = vector.broadcast %12 : vector<1x512xf32> to vector<8x512xf32>
    %14 = arith.addf %11, %13 : vector<8x512xf32>
    %cst_11 = arith.constant 0.000000e+00 : f32
    %15 = vector.broadcast %cst_11 : f32 to vector<8x512xf32>
    %16 = arith.maximumf %14, %15 : vector<8x512xf32>
    %17 = arith.truncf %16 : vector<8x512xf32> to vector<8x512xbf16>
    %c0_12 = arith.constant 0 : index
    %c0_13 = arith.constant 0 : index
    %18 = vector.load %arg6[%c0_12, %c0_13] : memref<512x2048xbf16, #tpu.memory_space<vmem>>, vector<512x2048xbf16>
    %cst_14 = arith.constant dense<0.000000e+00> : vector<8x2048xf32>
    %19 = tpu.matmul %17, %18, %cst_14 {dimension_numbers = #tpu.dot_dimension_numbers<[1], [0], [0], [1], [0, 0, 1, 1], [], []>} : vector<8x512xbf16>, vector<512x2048xbf16>, vector<8x2048xf32> -> vector<8x2048xf32>
    %c0_15 = arith.constant 0 : index
    %c0_16 = arith.constant 0 : index
    %20 = vector.load %arg7[%c0_15, %c0_16] : memref<1x2048xf32, #tpu.memory_space<vmem>>, vector<1x2048xf32>
    %21 = vector.broadcast %20 : vector<1x2048xf32> to vector<8x2048xf32>
    %22 = arith.addf %19, %21 : vector<8x2048xf32>
    %cst_17 = arith.constant 0.000000e+00 : f32
    %23 = vector.broadcast %cst_17 : f32 to vector<8x2048xf32>
    %24 = arith.maximumf %22, %23 : vector<8x2048xf32>
    %25 = arith.truncf %24 : vector<8x2048xf32> to vector<8x2048xbf16>
    %c0_18 = arith.constant 0 : index
    %c0_19 = arith.constant 0 : index
    %26 = vector.load %arg8[%c0_18, %c0_19] : memref<2048x128xbf16, #tpu.memory_space<vmem>>, vector<2048x128xbf16>
    %cst_20 = arith.constant dense<0.000000e+00> : vector<8x128xf32>
    %27 = tpu.matmul %25, %26, %cst_20 {dimension_numbers = #tpu.dot_dimension_numbers<[1], [0], [0], [1], [0, 0, 1, 1], [], []>} : vector<8x2048xbf16>, vector<2048x128xbf16>, vector<8x128xf32> -> vector<8x128xf32>
    %c0_21 = arith.constant 0 : index
    %c0_22 = arith.constant 0 : index
    %28 = vector.load %arg9[%c0_21, %c0_22] : memref<1x128xf32, #tpu.memory_space<vmem>>, vector<1x128xf32>
    %29 = vector.broadcast %28 : vector<1x128xf32> to vector<8x128xf32>
    %30 = arith.addf %27, %29 : vector<8x128xf32>
    %c0_23 = arith.constant 0 : index
    %c0_24 = arith.constant 0 : index
    %31 = vector.load %arg10[%c0_23, %c0_24] : memref<8x128xf32, #tpu.memory_space<vmem>>, vector<8x128xf32>
    tpu.vector_store %arg10[%c0_23, %c0_24], %30 {strides = array<i32>} : memref<8x128xf32, #tpu.memory_space<vmem>>, vector<8x128xf32>,
    return
  }
  func.func @transform_0(%arg0: i32) -> (i32, i32) {
    %c0_i32 = arith.constant 0 : i32
    %c0_i32_0 = arith.constant 0 : i32
    return %arg0, %c0_i32 : i32, i32
  }
  func.func @transform_1(%arg0: i32) -> (i32, i32) {
    %c0_i32 = arith.constant 0 : i32
    %c0_i32_0 = arith.constant 0 : i32
    %c0_i32_1 = arith.constant 0 : i32
    return %c0_i32, %c0_i32_0 : i32, i32
  }
  func.func @transform_2(%arg0: i32) -> (i32, i32) {
    %c0_i32 = arith.constant 0 : i32
    %c0_i32_0 = arith.constant 0 : i32
    %c0_i32_1 = arith.constant 0 : i32
    return %c0_i32, %c0_i32_0 : i32, i32
  }
  func.func @transform_3(%arg0: i32) -> (i32, i32) {
    %c0_i32 = arith.constant 0 : i32
    %c0_i32_0 = arith.constant 0 : i32
    %c0_i32_1 = arith.constant 0 : i32
    return %c0_i32, %c0_i32_0 : i32, i32
  }
  func.func @transform_4(%arg0: i32) -> (i32, i32) {
    %c0_i32 = arith.constant 0 : i32
    %c0_i32_0 = arith.constant 0 : i32
    %c0_i32_1 = arith.constant 0 : i32
    return %c0_i32, %c0_i32_0 : i32, i32
  }
  func.func @transform_5(%arg0: i32) -> (i32, i32) {
    %c0_i32 = arith.constant 0 : i32
    %c0_i32_0 = arith.constant 0 : i32
    %c0_i32_1 = arith.constant 0 : i32
    return %c0_i32, %c0_i32_0 : i32, i32
  }
  func.func @transform_6(%arg0: i32) -> (i32, i32) {
    %c0_i32 = arith.constant 0 : i32
    %c0_i32_0 = arith.constant 0 : i32
    %c0_i32_1 = arith.constant 0 : i32
    return %c0_i32, %c0_i32_0 : i32, i32
  }
  func.func @transform_7(%arg0: i32) -> (i32, i32) {
    %c0_i32 = arith.constant 0 : i32
    %c0_i32_0 = arith.constant 0 : i32
    %c0_i32_1 = arith.constant 0 : i32
    return %c0_i32, %c0_i32_0 : i32, i32
  }
  func.func @transform_8(%arg0: i32) -> (i32, i32) {
    %c0_i32 = arith.constant 0 : i32
    %c0_i32_0 = arith.constant 0 : i32
    %c0_i32_1 = arith.constant 0 : i32
    return %c0_i32, %c0_i32_0 : i32, i32
  }
  func.func @transform_9(%arg0: i32) -> (i32, i32) {
    %c0_i32 = arith.constant 0 : i32
    %c0_i32_0 = arith.constant 0 : i32
    return %arg0, %c0_i32 : i32, i32
  }
}

</mosaic_0001>

<bundles_post_ra>
// kernel: encoder_forward.1
= control target key start
LH: loop header
LB: loop body
LE: loop exit
PB: predicated region body
PF: predicated region fallthrough
CT: control target
= control target key end

     0   :  { %14 = vsyncpa [#allocation3], 0  ;;  %s8462_s0 = inlined_call_operand.vmem [shape: f32[8,64], index: 0, kind: input, shape index: {}]   ;;  %s8463_s1 = inlined_call_operand.hbm [shape: bf16[64,512], index: 1, kind: input, shape index: {}]   ;;  %s8464_s2 = inlined_call_operand.hbm [shape: f32[1,512], index: 2, kind: input, shape index: {}]   ;;  %s8465_s3 = inlined_call_operand.hbm [shape: bf16[512,512], index: 3, kind: input, shape index: {}]   ;;  %s8466_s4 = inlined_call_operand.hbm [shape: f32[1,512], index: 4, kind: input, shape index: {}]   ;;  %s8467_s5 = inlined_call_operand.hbm [shape: bf16[512,2048], index: 5, kind: input, shape index: {}]   ;;  %s8468_s6 = inlined_call_operand.hbm [shape: f32[1,2048], index: 6, kind: input, shape index: {}]   ;;  %s8469_s7 = inlined_call_operand.hbm [shape: bf16[2048,128], index: 7, kind: input, shape index: {}]   ;;  %s8470_s8 = inlined_call_operand.hbm [shape: f32[1,128], index: 8, kind: input, shape index: {}]   ;;  %s8471_s9 = inlined_call_operand.hbm [shape: f32[8,128], index: 9, kind: output, shape index: {}]  }
   0x1   :  { %15 = vsyncpa [#allocation6], 0 }
   0x2   :  { %16 = vsyncpa [#allocation9], 0 }
   0x3   :  { %17 = vsyncpa [#allocation12], 0 }
   0x4   :  { %18 = vsyncpa [#allocation15], 0 }
   0x5   :  { %19 = vsyncpa [#allocation4], 0  ;;  %s8118_s30 = smov [#allocation5]   ;;  %s8119_s11 = smov [#allocation8]  }
   0x6   :  { %s40_s10 = sshll.u32 %s8118_s30, 4  ;;  %s62_s12 = sshll.u32 %s8119_s11, 4  ;;  %s41_s10 = int_to_ptr.vmem [resolvable:$true] %s40_s10  ;;  %s63_s12 = int_to_ptr.vmem [resolvable:$true] %s62_s12 }
   0x7   :  { %s7908_s15 = scalar_lea.hbm %s8464_s2, 64 }
   0x8   :  { %p7909_p0 = scmp.ne.s32.totalorder %s8464_s2, %s7908_s15  ;;  %p7912_p1 = scmp.lt.u32.totalorder %s7908_s15, %s8464_s2 }
   0xa   :  { %p7914_p2 = pnand %p7912_p1, %p7909_p0 }
   0xc   :  { %7917 = shalt.err (!%p7914_p2)
}
   0xd   :  { %s7918_s20 = scalar_lea.vmem %s41_s10, 64  ;;  %p7923_p4 = scmp.lt.s32.totalorder %s41_s10, %s41_s10 }
   0xe   :  { %p7919_p3 = scmp.ne.s32.totalorder %s41_s10, %s7918_s20  ;;  %p7924_p5 = scmp.lt.s32.totalorder %s7918_s20, %s7918_s20 }
  0x10   :  { %p7925_p6 = por %p7924_p5, %p7923_p4 }
  0x12   :  { %p7926_p7 = pnand %p7925_p6, %p7919_p3 }
  0x14   :  { %7929 = shalt.err (!%p7926_p7)
}
  0x15   :  { %43 = dma.hbm_to_vmem [thread:$0]  %s8464_s2, 64, %s41_s10, [#allocation6]  }
  0x16   :  { %s7930_s25 = scalar_lea.hbm %s8466_s4, 64 }
  0x17   :  { %p7931_p8 = scmp.ne.s32.totalorder %s8466_s4, %s7930_s25  ;;  %p7934_p9 = scmp.lt.u32.totalorder %s7930_s25, %s8466_s4 }
  0x19   :  { %p7936_p10 = pnand %p7934_p9, %p7931_p8 }
  0x1b   :  { %7939 = shalt.err (!%p7936_p10)
}
  0x1c   :  { %s7940_s30 = scalar_lea.vmem %s63_s12, 64  ;;  %p7945_p12 = scmp.lt.s32.totalorder %s63_s12, %s63_s12 }
  0x1d   :  { %p7941_p11 = scmp.ne.s32.totalorder %s63_s12, %s7940_s30  ;;  %p7946_p13 = scmp.lt.s32.totalorder %s7940_s30, %s7940_s30 }
  0x1f   :  { %p7947_p0 = por %p7946_p13, %p7945_p12 }
  0x21   :  { %p7948_p1 = pnand %p7947_p0, %p7941_p11 }
  0x23   :  { %7951 = shalt.err (!%p7948_p1)
}
  0x24   :  { %65 = dma.hbm_to_vmem [thread:$0]  %s8466_s4, 64, %s63_s12, [#allocation9]  }
  0x25   :  { %s8120_s11 = smov [#allocation11]   ;;  %s8121_s14 = smov [#allocation2]  }
  0x26   :  { %s84_s13 = sshll.u32 %s8120_s11, 4  ;;  %s27_s15 = sshll.u32 %s8121_s14, 4  ;;  %s85_s13 = int_to_ptr.vmem [resolvable:$true] %s84_s13  ;;  %s8207_s15 = int_to_ptr.vmem [resolvable:$true] %s27_s15 }
  0x27   :  { %s7952_s18 = scalar_lea.hbm %s8468_s6, 256 }
  0x28   :  { %p7953_p2 = scmp.ne.s32.totalorder %s8468_s6, %s7952_s18  ;;  %p7956_p3 = scmp.lt.u32.totalorder %s7952_s18, %s8468_s6 }
  0x2a   :  { %p7958_p4 = pnand %p7956_p3, %p7953_p2 }
  0x2c   :  { %7961 = shalt.err (!%p7958_p4)
}
  0x2d   :  { %s7962_s4 = scalar_lea.vmem %s85_s13, 256  ;;  %p7967_p6 = scmp.lt.s32.totalorder %s85_s13, %s85_s13 }
  0x2e   :  { %p7963_p5 = scmp.ne.s32.totalorder %s85_s13, %s7962_s4  ;;  %p7968_p7 = scmp.lt.s32.totalorder %s7962_s4, %s7962_s4 }
  0x30   :  { %p7969_p8 = por %p7968_p7, %p7967_p6 }
  0x32   :  { %p7970_p9 = pnand %p7969_p8, %p7963_p5 }
  0x34   :  { %7973 = shalt.err (!%p7970_p9)
}
  0x35   :  { %87 = dma.hbm_to_vmem [thread:$0]  %s8468_s6, 256, %s85_s13, [#allocation12]  }
  0x36   :  { %s7974_s26 = scalar_lea.hbm %s8463_s1, 2048 }
  0x37   :  { %p7975_p10 = scmp.ne.s32.totalorder %s8463_s1, %s7974_s26  ;;  %p7978_p11 = scmp.lt.u32.totalorder %s7974_s26, %s8463_s1 }
  0x39   :  { %p7980_p12 = pnand %p7978_p11, %p7975_p10 }
  0x3b   :  { %7983 = shalt.err (!%p7980_p12)
}
  0x3c   :  { %s7984_s2 = scalar_lea.vmem %s8207_s15, 2048  ;;  %p7989_p0 = scmp.lt.s32.totalorder %s8207_s15, %s8207_s15 }
  0x3d   :  { %p7985_p13 = scmp.ne.s32.totalorder %s8207_s15, %s7984_s2  ;;  %p7990_p1 = scmp.lt.s32.totalorder %s7984_s2, %s7984_s2 }
  0x3f   :  { %p7991_p2 = por %p7990_p1, %p7989_p0 }
  0x41   :  { %p7992_p3 = pnand %p7991_p2, %p7985_p13 }
  0x43   :  { %7995 = shalt.err (!%p7992_p3)
}
  0x44   :  { %s8122_s6 = smov 256   ;;  %s8123_s10 = smov 16  }
  0x45   :  { %33 = dma.hbm_to_vmem [thread:$0]  %s8463_s1, 2048, %s8207_s15, [#allocation3], %s8122_s6, %s8122_s6, %s8123_s10  }
  0x46   :  { %s8124_s14 = smov [#allocation7]   ;;  %s8125_s17 = smov [#allocation10]  }
  0x47   :  { %s49_s16 = sshll.u32 %s8124_s14, 4  ;;  %s71_s18 = sshll.u32 %s8125_s17, 4  ;;  %s50_s16 = int_to_ptr.vmem [resolvable:$true] %s49_s16  ;;  %s8238_s18 = int_to_ptr.vmem [resolvable:$true] %s71_s18 }
  0x48   :  { %s7996_s21 = scalar_lea.hbm %s8465_s3, 16384 }
  0x49   :  { %p7997_p4 = scmp.ne.s32.totalorder %s8465_s3, %s7996_s21  ;;  %p8000_p5 = scmp.lt.u32.totalorder %s7996_s21, %s8465_s3 }
  0x4b   :  { %p8002_p6 = pnand %p8000_p5, %p7997_p4 }
  0x4d   :  { %8005 = shalt.err (!%p8002_p6)
}
  0x4e   :  { %s8006_s1 = scalar_lea.vmem %s50_s16, 16384  ;;  %p8011_p8 = scmp.lt.s32.totalorder %s50_s16, %s50_s16 }
  0x4f   :  { %p8007_p7 = scmp.ne.s32.totalorder %s50_s16, %s8006_s1  ;;  %p8012_p9 = scmp.lt.s32.totalorder %s8006_s1, %s8006_s1 }
  0x51   :  { %p8013_p10 = por %p8012_p9, %p8011_p8 }
  0x53   :  { %p8014_p11 = pnand %p8013_p10, %p8007_p7 }
  0x55   :  { %8017 = shalt.err (!%p8014_p11)
}
  0x56   :  { %55 = dma.hbm_to_vmem [thread:$0]  %s8465_s3, 16384, %s50_s16, [#allocation6], %s8122_s6, %s8122_s6, %s8123_s10  }
  0x57   :  { %s8018_s27 = scalar_lea.hbm %s8467_s5, 65536 }
  0x58   :  { %p8019_p12 = scmp.ne.s32.totalorder %s8467_s5, %s8018_s27  ;;  %p8022_p13 = scmp.lt.u32.totalorder %s8018_s27, %s8467_s5 }
  0x5a   :  { %p8024_p0 = pnand %p8022_p13, %p8019_p12 }
  0x5c   :  { %8027 = shalt.err (!%p8024_p0)
}
  0x5d   :  { %s8028_s11 = scalar_lea.vmem %s8238_s18, 65536  ;;  %p8033_p2 = scmp.lt.s32.totalorder %s8238_s18, %s8238_s18 }
  0x5e   :  { %p8029_p1 = scmp.ne.s32.totalorder %s8238_s18, %s8028_s11  ;;  %p8034_p3 = scmp.lt.s32.totalorder %s8028_s11, %s8028_s11 }
  0x60   :  { %p8035_p4 = por %p8034_p3, %p8033_p2 }
  0x62   :  { %p8036_p5 = pnand %p8035_p4, %p8029_p1 }
  0x64   :  { %8039 = shalt.err (!%p8036_p5)
}
  0x65   :  { %s8126_s3 = smov 1024   ;;  %s8127_s6 = smov 64  }
  0x66   :  { %77 = dma.hbm_to_vmem [thread:$0]  %s8467_s5, 65536, %s8238_s18, [#allocation9], %s8126_s3, %s8126_s3, %s8127_s6  }
  0x67   :  { %s8128_s14 = smov [#allocation13]   ;;  %s8129_s17 = smov [#allocation14]  }
  0x68   :  { %s93_s16 = sshll.u32 %s8128_s14, 4  ;;  %s106_s19 = sshll.u32 %s8129_s17, 4  ;;  %s94_s16 = int_to_ptr.vmem [resolvable:$true] %s93_s16  ;;  %s107_s19 = int_to_ptr.vmem [resolvable:$true] %s106_s19 }
  0x69   :  { %s8040_s22 = scalar_lea.hbm %s8469_s7, 16384 }
  0x6a   :  { %p8041_p6 = scmp.ne.s32.totalorder %s8469_s7, %s8040_s22  ;;  %p8044_p7 = scmp.lt.u32.totalorder %s8040_s22, %s8469_s7 }
  0x6c   :  { %p8046_p8 = pnand %p8044_p7, %p8041_p6 }
  0x6e   :  { %8049 = shalt.err (!%p8046_p8)
}
  0x6f   :  { %s8050_s5 = scalar_lea.vmem %s94_s16, 16384  ;;  %p8055_p10 = scmp.lt.s32.totalorder %s94_s16, %s94_s16 }
  0x70   :  { %p8051_p9 = scmp.ne.s32.totalorder %s94_s16, %s8050_s5  ;;  %p8056_p11 = scmp.lt.s32.totalorder %s8050_s5, %s8050_s5 }
  0x72   :  { %p8057_p12 = por %p8056_p11, %p8055_p10 }
  0x74   :  { %p8058_p13 = pnand %p8057_p12, %p8051_p9 }
  0x76   :  { %8061 = shalt.err (!%p8058_p13)
}
  0x77   :  { %s8130_s18 = smov 4   ;;  %s8062_s27 = scalar_lea.hbm %s8470_s8, 16 }
  0x78   :  { %99 = dma.hbm_to_vmem [thread:$0]  %s8469_s7, 16384, %s94_s16, [#allocation12], %s8127_s6, %s8127_s6, %s8130_s18  }
  0x79   :  { %p8063_p0 = scmp.ne.s32.totalorder %s8470_s8, %s8062_s27  ;;  %p8066_p1 = scmp.lt.u32.totalorder %s8062_s27, %s8470_s8 }
  0x7b   :  { %p8068_p2 = pnand %p8066_p1, %p8063_p0 }
  0x7d   :  { %8071 = shalt.err (!%p8068_p2)
}
  0x7e   :  { %s8072_s11 = scalar_lea.vmem %s107_s19, 16  ;;  %s8076_s3 = scalar_lea.vmem %s107_s19, 32 }
  0x7f   :  { %p8073_p3 = scmp.ne.s32.totalorder %s107_s19, %s8072_s11  ;;  %p8077_p4 = scmp.lt.s32.totalorder %s107_s19, %s107_s19 }
  0x80   :  { %p8078_p5 = scmp.lt.s32.totalorder %s8076_s3, %s8072_s11 }
  0x82   :  { %p8079_p6 = por %p8078_p5, %p8077_p4 }
  0x84   :  { %p8080_p7 = pnand %p8079_p6, %p8073_p3 }
  0x86   :  { %8083 = shalt.err (!%p8080_p7)
}
  0x87   :  { %109 = dma.hbm_to_vmem [thread:$0]  %s8470_s8, 16, %s107_s19, [#allocation15]  }
  0x88   :  { %8106 = dma.done.wait [#allocation3], 2048  }
  0x89   :  { %8107 = vsyncadd [#allocation3], 4294965248 }
  0x8a   :  { %8108 = dma.done.wait [#allocation6], 16448  }
  0x8b   :  { %8109 = vsyncadd [#allocation6], 4294950848 }
  0x8c   :  { %8110 = dma.done.wait [#allocation9], 65600  }
  0x8d   :  { %8111 = vsyncadd [#allocation9], 4294901696 }
  0x8e   :  { %8112 = dma.done.wait [#allocation12], 16640  }
  0x8f   :  { %8113 = vsyncadd [#allocation12], 4294950656 }
  0x90   :  { %8114 = dma.done.wait [#allocation15], 16  }
  0x91   :  { %8115 = vsyncadd [#allocation15], 4294967280  ;;  %v8131_v0 = vmov 0   ;;  %v7564_v1 = vld [vmem:[#allocation2 + $0x4] ss:$16 sps:$4 sm:$0xff]   ;;  %vm255_vm0 = vcmask 523264  }
  0x92   :  { %291 = vmatprep.mubr.bf16.mxu0 %v8131_v0  ;;  %332 = vmatprep.mubr.bf16.mxu1 %v8131_v0  ;;  %v7566_v2 = vld [vmem:[#allocation2] ss:$16 sps:$4 sm:$0xff]   ;;  %v7567_v3 = vld [vmem:[#allocation2 + $0x24] ss:$16 sps:$4 sm:$0xff]   ;;  %v7576_v7 = vld [vmem:[#allocation2 + $0xc] ss:$16 sps:$4 sm:$0xff]  }
  0x93   :  { %259 = vmatprep.subr.bf16.mxu0 %v7564_v1  ;;  %v7569_v4 = vld [vmem:[#allocation2 + $0x20] ss:$16 sps:$4 sm:$0xff]   ;;  %v7570_v5 = vld [vmem:[#allocation2 + $0x44] ss:$16 sps:$4 sm:$0xff]   ;;  %v7578_v8 = vld [vmem:[#allocation2 + $0x8] ss:$16 sps:$4 sm:$0xff]   ;;  %300 = vmatprep.subr.bf16.mxu1 %v7576_v7 }
  0x94   :  { %260 = vmatpush1.bf16.msra.mxu0 %v7566_v2  ;;  %v7572_v6 = vld [vmem:[#allocation2 + $0x40] ss:$16 sps:$4 sm:$0xff]   ;;  %v7579_v9 = vld [vmem:[#allocation2 + $0x2c] ss:$16 sps:$4 sm:$0xff]   ;;  %v7573_v10 = vld [vmem:[#allocation2 + $0x64] ss:$16 sps:$4 sm:$0xff]   ;;  %301 = vmatpush1.bf16.msra.mxu1 %v7578_v8 }
  0x95   :  { %261 = vmatprep.subr.bf16.mxu0 %v7567_v3  ;;  %v7581_v11 = vld [vmem:[#allocation2 + $0x28] ss:$16 sps:$4 sm:$0xff]   ;;  %v7575_v12 = vld [vmem:[#allocation2 + $0x60] ss:$16 sps:$4 sm:$0xff]   ;;  %302 = vmatprep.subr.bf16.mxu1 %v7579_v9  ;;  %v7582_v13 = vld [vmem:[#allocation2 + $0x4c] ss:$16 sps:$4 sm:$0xff]  }
  0x96   :  { %v135_v14 = vld [vmem:[%s8462_s0] sm:$0xff]  ;;  %v7590_v15 = vld [vmem:[#allocation7 + $0x4] ss:$16 sps:$4 sm:$0xff]   ;;  %v7585_v18 = vld [vmem:[#allocation2 + $0x6c] ss:$16 sps:$4 sm:$0xff]   ;;  %s8132_s0 = smov [#allocation16]  }
  0x97   :  { %v7584_v16 = vld [vmem:[#allocation2 + $0x48] ss:$16 sps:$4 sm:$0xff]   ;;  %v136_v17 = vpack.c.bf16 %v135_v14, %v135_v14  ;;  %v7588_v19 = vld [vmem:[#allocation7] ss:$16 sps:$4 sm:$0xff]   ;;  %v7593_v22 = vld [vmem:[#allocation7 + $0xc] ss:$16 sps:$4 sm:$0xff]  }
  0x98   :  { %262 = vmatpush1.bf16.msra.mxu0 %v7569_v4  ;;  %303 = vmatpush1.bf16.msra.mxu1 %v7581_v11  ;;  %v7596_v20 = vld [vmem:[#allocation7 + $0x24] ss:$16 sps:$4 sm:$0xff]   ;;  %v7594_v23 = vld [vmem:[#allocation7 + $0x20] ss:$16 sps:$4 sm:$0xff]   ;;  %v7591_v25 = vld [vmem:[#allocation7 + $0x8] ss:$16 sps:$4 sm:$0xff]  }
  0x99   :  { %263 = vmatprep.subr.bf16.mxu0 %v7570_v5  ;;  %304 = vmatprep.subr.bf16.mxu1 %v7582_v13  ;;  %v7587_v21 = vld [vmem:[#allocation2 + $0x68] ss:$16 sps:$4 sm:$0xff]   ;;  %v7599_v26 = vld [vmem:[#allocation7 + $0x2c] ss:$16 sps:$4 sm:$0xff]   ;;  %v7600_v27 = vld [vmem:[#allocation7 + $0x40] ss:$16 sps:$4 sm:$0xff]  }
  0x9a   :  { %v7602_v24 = vld [vmem:[#allocation7 + $0x44] ss:$16 sps:$4 sm:$0xff]   ;;  %v7597_v29 = vld [vmem:[#allocation7 + $0x28] ss:$16 sps:$4 sm:$0xff]   ;;  %v7605_v30 = vld [vmem:[#allocation7 + $0x4c] ss:$16 sps:$4 sm:$0xff]  }
  0x9b   :  { %v7608_v28 = vld [vmem:[#allocation7 + $0x64] ss:$16 sps:$4 sm:$0xff]   ;;  %v7606_v31 = vld [vmem:[#allocation7 + $0x60] ss:$16 sps:$4 sm:$0xff]   ;;  %v7603_v33 = vld [vmem:[#allocation7 + $0x48] ss:$16 sps:$4 sm:$0xff]  }
  0x9c   :  { %264 = vmatpush1.bf16.msra.mxu0 %v7572_v6  ;;  %305 = vmatpush1.bf16.msra.mxu1 %v7584_v16  ;;  %v7614_v32 = vld [vmem:[#allocation7 + $0x84] ss:$16 sps:$4 sm:$0xff]   ;;  %v7611_v34 = vld [vmem:[#allocation7 + $0x6c] ss:$16 sps:$4 sm:$0xff]   ;;  %v7612_v35 = vld [vmem:[#allocation7 + $0x80] ss:$16 sps:$4 sm:$0xff]  }
  0x9d   :  { %265 = vmatprep.subr.bf16.mxu0 %v7573_v10  ;;  %306 = vmatprep.subr.bf16.mxu1 %v7585_v18  ;;  %v7620_v36 = vld [vmem:[#allocation7 + $0xa4] ss:$16 sps:$4 sm:$0xff]   ;;  %v7609_v37 = vld [vmem:[#allocation7 + $0x68] ss:$16 sps:$4 sm:$0xff]   ;;  %v7617_v38 = vld [vmem:[#allocation7 + $0x8c] ss:$16 sps:$4 sm:$0xff]  }
  0x9e   :  { %v7618_v39 = vld [vmem:[#allocation7 + $0xa0] ss:$16 sps:$4 sm:$0xff]   ;;  %v7626_v40 = vld [vmem:[#allocation7 + $0xc4] ss:$16 sps:$4 sm:$0xff]   ;;  %v7615_v41 = vld [vmem:[#allocation7 + $0x88] ss:$16 sps:$4 sm:$0xff]  }
  0x9f   :  { %v7623_v42 = vld [vmem:[#allocation7 + $0xac] ss:$16 sps:$4 sm:$0xff]   ;;  %v7624_v43 = vld [vmem:[#allocation7 + $0xc0] ss:$16 sps:$4 sm:$0xff]   ;;  %v7632_v44 = vld [vmem:[#allocation7 + $0xe4] ss:$16 sps:$4 sm:$0xff]  }
  0xa0   :  { %266 = vmatpush1.bf16.msra.mxu0 %v7575_v12  ;;  %307 = vmatpush1.bf16.msra.mxu1 %v7587_v21  ;;  %v7621_v45 = vld [vmem:[#allocation7 + $0xa8] ss:$16 sps:$4 sm:$0xff]   ;;  %v7629_v46 = vld [vmem:[#allocation7 + $0xcc] ss:$16 sps:$4 sm:$0xff]   ;;  %v7630_v47 = vld [vmem:[#allocation7 + $0xe0] ss:$16 sps:$4 sm:$0xff]   ;;  %v155_v21 = vlaneseq }
  0xa1   :  { %1139 = vmatprep.subr.bf16.mxu0 %v7590_v15  ;;  %1221 = vmatprep.subr.bf16.mxu1 %v7593_v22  ;;  %v7638_v48 = vld [vmem:[#allocation7 + $0x104] ss:$16 sps:$4 sm:$0xff]   ;;  %v7627_v49 = vld [vmem:[#allocation7 + $0xc8] ss:$16 sps:$4 sm:$0xff]   ;;  %v7635_v50 = vld [vmem:[#allocation7 + $0xec] ss:$16 sps:$4 sm:$0xff]  }
  0xa2   :  { %v7633_v51 = vld [vmem:[#allocation7 + $0xe8] ss:$16 sps:$4 sm:$0xff]   ;;  %v7636_v52 = vld [vmem:[#allocation7 + $0x100] ss:$16 sps:$4 sm:$0xff]   ;;  %v7641_v53 = vld [vmem:[#allocation7 + $0x10c] ss:$16 sps:$4 sm:$0xff]  }
  0xa3   :  { %6542 = vmatmul.mubr.msk.bf16.vlgmr.msra.gmra.mrb[0].mxu0 %vm255_vm0, %v136_v17  ;;  %6543 = vmatmul.mubr.msk.bf16.vlgmr.msra.gmra.mrb[0].mxu1 %vm255_vm0, %v136_v17  ;;  %v7644_v54 = vld [vmem:[#allocation7 + $0x124] ss:$16 sps:$4 sm:$0xff]   ;;  %v7642_v55 = vld [vmem:[#allocation7 + $0x120] ss:$16 sps:$4 sm:$0xff]   ;;  %v7639_v57 = vld [vmem:[#allocation7 + $0x108] ss:$16 sps:$4 sm:$0xff]  }
  0xa4   :  { %1140 = vmatpush1.bf16.msra.mxu0 %v7588_v19  ;;  %1222 = vmatpush1.bf16.msra.mxu1 %v7591_v25  ;;  %v7650_v56 = vld [vmem:[#allocation7 + $0x144] ss:$16 sps:$4 sm:$0xff]   ;;  %v7647_v58 = vld [vmem:[#allocation7 + $0x12c] ss:$16 sps:$4 sm:$0xff]   ;;  %v7648_v59 = vld [vmem:[#allocation7 + $0x140] ss:$16 sps:$4 sm:$0xff]  }
  0xa5   :  { %1141 = vmatprep.subr.bf16.mxu0 %v7596_v20  ;;  %1223 = vmatprep.subr.bf16.mxu1 %v7599_v26  ;;  %v7656_v60 = vld [vmem:[#allocation7 + $0x164] ss:$16 sps:$4 sm:$0xff]   ;;  %v7645_v61 = vld [vmem:[#allocation7 + $0x128] ss:$16 sps:$4 sm:$0xff]   ;;  %v7653_v62 = vld [vmem:[#allocation7 + $0x14c] ss:$16 sps:$4 sm:$0xff]  }
  0xa6   :  { %v7654_v63 = vld [vmem:[#allocation7 + $0x160] ss:$16 sps:$4 sm:$0xff]   ;;  %v7662_v0 = vld [vmem:[#allocation7 + $0x184] ss:$16 sps:$4 sm:$0xff]   ;;  %v7651_v1 = vld [vmem:[#allocation7 + $0x148] ss:$16 sps:$4 sm:$0xff]  }
  0xa7   :  { %v7659_v2 = vld [vmem:[#allocation7 + $0x16c] ss:$16 sps:$4 sm:$0xff]   ;;  %v7660_v3 = vld [vmem:[#allocation7 + $0x180] ss:$16 sps:$4 sm:$0xff]   ;;  %v7668_v4 = vld [vmem:[#allocation7 + $0x1a4] ss:$16 sps:$4 sm:$0xff]  }
  0xa8   :  { %1142 = vmatpush1.bf16.msra.mxu0 %v7594_v23  ;;  %1224 = vmatpush1.bf16.msra.mxu1 %v7597_v29  ;;  %v7657_v5 = vld [vmem:[#allocation7 + $0x168] ss:$16 sps:$4 sm:$0xff]   ;;  %v7665_v6 = vld [vmem:[#allocation7 + $0x18c] ss:$16 sps:$4 sm:$0xff]   ;;  %v7666_v7 = vld [vmem:[#allocation7 + $0x1a0] ss:$16 sps:$4 sm:$0xff]  }
  0xa9   :  { %1143 = vmatprep.subr.bf16.mxu0 %v7602_v24  ;;  %1225 = vmatprep.subr.bf16.mxu1 %v7605_v30  ;;  %v7663_v8 = vld [vmem:[#allocation7 + $0x188] ss:$16 sps:$4 sm:$0xff]   ;;  %v7671_v9 = vld [vmem:[#allocation7 + $0x1ac] ss:$16 sps:$4 sm:$0xff]   ;;  %v7674_v11 = vld [vmem:[#allocation7 + $0x1c4] ss:$16 sps:$4 sm:$0xff]  }
  0xaa   :  { %v7669_v10 = vld [vmem:[#allocation7 + $0x1a8] ss:$16 sps:$4 sm:$0xff]   ;;  %v7677_v12 = vld [vmem:[#allocation7 + $0x1cc] ss:$16 sps:$4 sm:$0xff]   ;;  %v7672_v13 = vld [vmem:[#allocation7 + $0x1c0] ss:$16 sps:$4 sm:$0xff]  }
  0xab   :  { %v7675_v14 = vld [vmem:[#allocation7 + $0x1c8] ss:$16 sps:$4 sm:$0xff]   ;;  %v7680_v15 = vld [vmem:[#allocation7 + $0x1e4] ss:$16 sps:$4 sm:$0xff]   ;;  %v7683_v16 = vld [vmem:[#allocation7 + $0x1ec] ss:$16 sps:$4 sm:$0xff]  }
  0xac   :  { %1144 = vmatpush1.bf16.msra.mxu0 %v7600_v27  ;;  %1226 = vmatpush1.bf16.msra.mxu1 %v7603_v33  ;;  %v7678_v17 = vld [vmem:[#allocation7 + $0x1e0] ss:$16 sps:$4 sm:$0xff]   ;;  %v7681_v18 = vld [vmem:[#allocation7 + $0x1e8] ss:$16 sps:$4 sm:$0xff]   ;;  %v7686_v19 = vld [vmem:[#allocation7 + $0x204] ss:$16 sps:$4 sm:$0xff]  }
  0xad   :  { %1145 = vmatprep.subr.bf16.mxu0 %v7608_v28  ;;  %1227 = vmatprep.subr.bf16.mxu1 %v7611_v34  ;;  %v7689_v20 = vld [vmem:[#allocation7 + $0x20c] ss:$16 sps:$4 sm:$0xff]   ;;  %v8298_v22 = vshrl.u32 %v155_v21, 7  ;;  %v7746_v21 = vld [vmem:[#allocation7 + $0x344] ss:$16 sps:$4 sm:$0xff]   ;;  %s6513_s13 = sshll.u32 %s8132_s0, 4  ;;  %s6514_s13 = int_to_ptr.vmem [resolvable:$true] %s6513_s13 }
  0xae   :  { %v8303_v24 = vld [vmem:[#allocation5] sm:$0xf]  ;;  %s8084_s14 = scalar_lea.vmem %s6514_s13, 128  ;;  %p8089_p9 = scmp.lt.s32.totalorder %s6514_s13, %s6514_s13 }
  0xaf   :  { %v8301_v23 = vsub.s32 0, %v8298_v22  ;;  %v8306_v25 = vsub.s32 1, %v8298_v22  ;;  %v8313_v29 = vsub.s32 3, %v8298_v22  ;;  %p8085_p8 = scmp.ne.s32.totalorder %s6514_s13, %s8084_s14  ;;  %p8090_p10 = scmp.lt.s32.totalorder %s8084_s14, %s8084_s14 }
  0xb0   :  { %1146 = vmatpush1.bf16.msra.mxu0 %v7606_v31  ;;  %1228 = vmatpush1.bf16.msra.mxu1 %v7609_v37 }
  0xb1   :  { %1147 = vmatprep.subr.bf16.mxu0 %v7614_v32  ;;  %1229 = vmatprep.subr.bf16.mxu1 %v7617_v38  ;;  %v158_v26 = vrot.slane %v8303_v24, %v8301_v23  ;;  %v162_v27 = vrot.slane %v8303_v24, %v8306_v25  ;;  %v170_v37 = vrot.slane %v8303_v24, %v8313_v29  ;;  %p8091_p11 = por %p8090_p10, %p8089_p9 }
  0xb3   :  { %p8092_p12 = pnand %p8091_p11, %p8085_p8 }
  0xb4   :  { %1148 = vmatpush1.bf16.msra.mxu0 %v7612_v35  ;;  %1230 = vmatpush1.bf16.msra.mxu1 %v7615_v41 }
  0xb5   :  { %1149 = vmatprep.subr.bf16.mxu0 %v7620_v36  ;;  %1231 = vmatprep.subr.bf16.mxu1 %v7623_v42 }
  0xb8   :  { %1150 = vmatpush1.bf16.msra.mxu0 %v7618_v39  ;;  %1232 = vmatpush1.bf16.msra.mxu1 %v7621_v45  ;;  %v7684_v39 = vld [vmem:[#allocation7 + $0x200] ss:$16 sps:$4 sm:$0xff]  }
  0xb9   :  { %1151 = vmatprep.subr.bf16.mxu0 %v7626_v40  ;;  %1233 = vmatprep.subr.bf16.mxu1 %v7629_v46  ;;  %v7687_v40 = vld [vmem:[#allocation7 + $0x208] ss:$16 sps:$4 sm:$0xff]  }
  0xbc   :  { %1152 = vmatpush1.bf16.msra.mxu0 %v7624_v43  ;;  %1234 = vmatpush1.bf16.msra.mxu1 %v7627_v49  ;;  %v7692_v43 = vld [vmem:[#allocation7 + $0x224] ss:$16 sps:$4 sm:$0xff]   ;;  %v7690_v49 = vld [vmem:[#allocation7 + $0x220] ss:$16 sps:$4 sm:$0xff]  }
  0xbd   :  { %1153 = vmatprep.subr.bf16.mxu0 %v7632_v44  ;;  %1235 = vmatprep.subr.bf16.mxu1 %v7635_v50  ;;  %v7695_v44 = vld [vmem:[#allocation7 + $0x22c] ss:$16 sps:$4 sm:$0xff]   ;;  %v7693_v50 = vld [vmem:[#allocation7 + $0x228] ss:$16 sps:$4 sm:$0xff]  }
  0xc0   :  { %1154 = vmatpush1.bf16.msra.mxu0 %v7630_v47  ;;  %1236 = vmatpush1.bf16.msra.mxu1 %v7633_v51 }
  0xc1   :  { %1155 = vmatprep.subr.bf16.mxu0 %v7638_v48  ;;  %1237 = vmatprep.subr.bf16.mxu1 %v7641_v53  ;;  %v7701_v53 = vld [vmem:[#allocation7 + $0x24c] ss:$16 sps:$4 sm:$0xff]  }
  0xc4   :  { %1156 = vmatpush1.bf16.msra.mxu0 %v7636_v52  ;;  %1238 = vmatpush1.bf16.msra.mxu1 %v7639_v57  ;;  %v7698_v52 = vld [vmem:[#allocation7 + $0x244] ss:$16 sps:$4 sm:$0xff]  }
  0xc5   :  { %1157 = vmatprep.subr.bf16.mxu0 %v7644_v54  ;;  %1239 = vmatprep.subr.bf16.mxu1 %v7647_v58  ;;  %v7704_v57 = vld [vmem:[#allocation7 + $0x264] ss:$16 sps:$4 sm:$0xff]   ;;  %v7707_v58 = vld [vmem:[#allocation7 + $0x26c] ss:$16 sps:$4 sm:$0xff]  }
  0xc8   :  { %1158 = vmatpush1.bf16.msra.mxu0 %v7642_v55  ;;  %1240 = vmatpush1.bf16.msra.mxu1 %v7645_v61  ;;  %v7696_v55 = vld [vmem:[#allocation7 + $0x240] ss:$16 sps:$4 sm:$0xff]   ;;  %v7710_v61 = vld [vmem:[#allocation7 + $0x284] ss:$16 sps:$4 sm:$0xff]  }
  0xc9   :  { %1159 = vmatprep.subr.bf16.mxu0 %v7650_v56  ;;  %1241 = vmatprep.subr.bf16.mxu1 %v7653_v62  ;;  %v7699_v56 = vld [vmem:[#allocation7 + $0x248] ss:$16 sps:$4 sm:$0xff]   ;;  %v7713_v62 = vld [vmem:[#allocation7 + $0x28c] ss:$16 sps:$4 sm:$0xff]  }
  0xcc   :  { %1160 = vmatpush1.bf16.msra.mxu0 %v7648_v59  ;;  %1242 = vmatpush1.bf16.msra.mxu1 %v7651_v1  ;;  %v7702_v59 = vld [vmem:[#allocation7 + $0x260] ss:$16 sps:$4 sm:$0xff]   ;;  %v7716_v1 = vld [vmem:[#allocation7 + $0x2a4] ss:$16 sps:$4 sm:$0xff]  }
  0xcd   :  { %1161 = vmatprep.subr.bf16.mxu0 %v7656_v60  ;;  %1243 = vmatprep.subr.bf16.mxu1 %v7659_v2  ;;  %v7705_v60 = vld [vmem:[#allocation7 + $0x268] ss:$16 sps:$4 sm:$0xff]   ;;  %v7719_v2 = vld [vmem:[#allocation7 + $0x2ac] ss:$16 sps:$4 sm:$0xff]  }
  0xd0   :  { %1162 = vmatpush1.bf16.msra.mxu0 %v7654_v63  ;;  %1244 = vmatpush1.bf16.msra.mxu1 %v7657_v5  ;;  %v7708_v63 = vld [vmem:[#allocation7 + $0x280] ss:$16 sps:$4 sm:$0xff]   ;;  %v7722_v5 = vld [vmem:[#allocation7 + $0x2c4] ss:$16 sps:$4 sm:$0xff]  }
  0xd1   :  { %1163 = vmatprep.subr.bf16.mxu0 %v7662_v0  ;;  %1245 = vmatprep.subr.bf16.mxu1 %v7665_v6  ;;  %v7711_v0 = vld [vmem:[#allocation7 + $0x288] ss:$16 sps:$4 sm:$0xff]   ;;  %v7725_v6 = vld [vmem:[#allocation7 + $0x2cc] ss:$16 sps:$4 sm:$0xff]  }
  0xd4   :  { %1164 = vmatpush1.bf16.msra.mxu0 %v7660_v3  ;;  %1246 = vmatpush1.bf16.msra.mxu1 %v7663_v8  ;;  %v7714_v3 = vld [vmem:[#allocation7 + $0x2a0] ss:$16 sps:$4 sm:$0xff]   ;;  %v7723_v8 = vld [vmem:[#allocation7 + $0x2c8] ss:$16 sps:$4 sm:$0xff]  }
  0xd5   :  { %1165 = vmatprep.subr.bf16.mxu0 %v7668_v4  ;;  %1247 = vmatprep.subr.bf16.mxu1 %v7671_v9  ;;  %v7717_v4 = vld [vmem:[#allocation7 + $0x2a8] ss:$16 sps:$4 sm:$0xff]   ;;  %v7728_v9 = vld [vmem:[#allocation7 + $0x2e4] ss:$16 sps:$4 sm:$0xff]  }
  0xd8   :  { %1166 = vmatpush1.bf16.msra.mxu0 %v7666_v7  ;;  %1248 = vmatpush1.bf16.msra.mxu1 %v7669_v10  ;;  %v7720_v7 = vld [vmem:[#allocation7 + $0x2c0] ss:$16 sps:$4 sm:$0xff]   ;;  %v7731_v10 = vld [vmem:[#allocation7 + $0x2ec] ss:$16 sps:$4 sm:$0xff]  }
  0xd9   :  { %1167 = vmatprep.subr.bf16.mxu0 %v7674_v11  ;;  %1249 = vmatprep.subr.bf16.mxu1 %v7677_v12  ;;  %v7726_v11 = vld [vmem:[#allocation7 + $0x2e0] ss:$16 sps:$4 sm:$0xff]   ;;  %v7729_v12 = vld [vmem:[#allocation7 + $0x2e8] ss:$16 sps:$4 sm:$0xff]  }
  0xdc   :  { %1168 = vmatpush1.bf16.msra.mxu0 %v7672_v13  ;;  %1250 = vmatpush1.bf16.msra.mxu1 %v7675_v14  ;;  %v7734_v13 = vld [vmem:[#allocation7 + $0x304] ss:$16 sps:$4 sm:$0xff]   ;;  %v7737_v14 = vld [vmem:[#allocation7 + $0x30c] ss:$16 sps:$4 sm:$0xff]  }
  0xdd   :  { %1169 = vmatprep.subr.bf16.mxu0 %v7680_v15  ;;  %1251 = vmatprep.subr.bf16.mxu1 %v7683_v16  ;;  %v7732_v15 = vld [vmem:[#allocation7 + $0x300] ss:$16 sps:$4 sm:$0xff]   ;;  %v7735_v16 = vld [vmem:[#allocation7 + $0x308] ss:$16 sps:$4 sm:$0xff]  }
  0xe0   :  { %1170 = vmatpush1.bf16.msra.mxu0 %v7678_v17  ;;  %1252 = vmatpush1.bf16.msra.mxu1 %v7681_v18  ;;  %v7740_v17 = vld [vmem:[#allocation7 + $0x324] ss:$16 sps:$4 sm:$0xff]   ;;  %v7743_v18 = vld [vmem:[#allocation7 + $0x32c] ss:$16 sps:$4 sm:$0xff]  }
  0xe1   :  { %1180 = vmatprep.subr.bf16.mxu0 %v7686_v19  ;;  %1262 = vmatprep.subr.bf16.mxu1 %v7689_v20  ;;  %v7738_v19 = vld [vmem:[#allocation7 + $0x320] ss:$16 sps:$4 sm:$0xff]   ;;  %v7741_v20 = vld [vmem:[#allocation7 + $0x328] ss:$16 sps:$4 sm:$0xff]  }
 0x176   :  { %v293_v28 = vpop.f32.mrb[0].mxu0  ;;  %v8317_v41 = vpop.f32.mrb[0].mxu1 }
 0x177   :  { %v294_v30 = vadd.f32 %v293_v28, %v158_v26  ;;  %v295_v31 = vpop.f32.mrb[1].mxu0  ;;  %v336_v45 = vpop.f32.mrb[1].mxu1  ;;  %v7749_v26 = vld [vmem:[#allocation7 + $0x34c] ss:$16 sps:$4 sm:$0xff]   ;;  %v7747_v28 = vld [vmem:[#allocation7 + $0x348] ss:$16 sps:$4 sm:$0xff]  }
 0x178   :  { %v296_v32 = vadd.f32 %v295_v31, %v162_v27  ;;  %v297_v33 = vpop.f32.mrb[2].mxu0  ;;  %v337_v46 = vadd.f32 %v336_v45, %v170_v37  ;;  %v338_v47 = vpop.f32.mrb[2].mxu1  ;;  %v7744_v27 = vld [vmem:[#allocation7 + $0x340] ss:$16 sps:$4 sm:$0xff]   ;;  %v7755_v31 = vld [vmem:[#allocation7 + $0x36c] ss:$16 sps:$4 sm:$0xff]  }
 0x179   :  { %v341_v34 = vmax.f32 %v294_v30, 0.0  ;;  %v298_v35 = vpop.f32.mrb[3].mxu0  ;;  %v339_v48 = vpop.f32.mrb[3].mxu1  ;;  %v7752_v30 = vld [vmem:[#allocation7 + $0x364] ss:$16 sps:$4 sm:$0xff]  }
 0x17a   :  { %v342_v36 = vmax.f32 %v296_v32, 0.0  ;;  %v344_v51 = vmax.f32 %v337_v46, 0.0  ;;  %v7750_v32 = vld [vmem:[#allocation7 + $0x360] ss:$16 sps:$4 sm:$0xff]   ;;  %v7753_v33 = vld [vmem:[#allocation7 + $0x368] ss:$16 sps:$4 sm:$0xff]  }
 0x17b   :  { %v345_v42 = vpack.c.bf16 %v341_v34, %v341_v34  ;;  %v7758_v34 = vld [vmem:[#allocation7 + $0x384] ss:$16 sps:$4 sm:$0xff]   ;;  %v7761_v35 = vld [vmem:[#allocation7 + $0x38c] ss:$16 sps:$4 sm:$0xff]   ;;  %v7759_v37 = vld [vmem:[#allocation7 + $0x388] ss:$16 sps:$4 sm:$0xff]  }
 0x17c   :  { %v346_v38 = vpack.c.bf16 %v342_v36, %v342_v36  ;;  %v348_v54 = vpack.c.bf16 %v344_v51, %v344_v51  ;;  %v7756_v36 = vld [vmem:[#allocation7 + $0x380] ss:$16 sps:$4 sm:$0xff]   ;;  %v7770_v45 = vld [vmem:[#allocation7 + $0x3c4] ss:$16 sps:$4 sm:$0xff]   ;;  %v7773_v46 = vld [vmem:[#allocation7 + $0x3cc] ss:$16 sps:$4 sm:$0xff]  }
 0x17d   :  { %v7768_v47 = vld [vmem:[#allocation7 + $0x3c0] ss:$16 sps:$4 sm:$0xff]   ;;  %v7771_v48 = vld [vmem:[#allocation7 + $0x3c8] ss:$16 sps:$4 sm:$0xff]   ;;  %v7779_v51 = vld [vmem:[#allocation7 + $0x3ec] ss:$16 sps:$4 sm:$0xff]  }
 0x17e   :  { %1171 = vmatprep.mubr.bf16.mxu0 %v346_v38  ;;  %1253 = vmatprep.mubr.bf16.mxu1 %v346_v38  ;;  %v8320_v38 = vsub.s32 2, %v8298_v22 }
 0x17f   :  { %1172 = vmatmul.mubr.bf16.vlgmr.msra.gmra.mrb[4].mxu0 %v345_v42  ;;  %1254 = vmatmul.mubr.bf16.vlgmr.msra.gmra.mrb[4].mxu1 %v345_v42  ;;  %v7762_v42 = vld [vmem:[#allocation7 + $0x3a0] ss:$16 sps:$4 sm:$0xff]  }
 0x180   :  { %1181 = vmatpush1.bf16.msra.mxu0 %v7684_v39  ;;  %1263 = vmatpush1.bf16.msra.mxu1 %v7687_v40  ;;  %v7764_v39 = vld [vmem:[#allocation7 + $0x3a4] ss:$16 sps:$4 sm:$0xff]   ;;  %v7767_v40 = vld [vmem:[#allocation7 + $0x3ac] ss:$16 sps:$4 sm:$0xff]  }
 0x181   :  { %1182 = vmatprep.subr.bf16.mxu0 %v7692_v43  ;;  %1264 = vmatprep.subr.bf16.mxu1 %v7695_v44  ;;  %v7765_v43 = vld [vmem:[#allocation7 + $0x3a8] ss:$16 sps:$4 sm:$0xff]   ;;  %v166_v44 = vrot.slane %v8303_v24, %v8320_v38  ;;  %v7774_v24 = vld [vmem:[#allocation7 + $0x3e0] ss:$16 sps:$4 sm:$0xff]  }
 0x182   :  { %1212 = vmatprep.mubr.bf16.mxu0 %v348_v54  ;;  %1294 = vmatprep.mubr.bf16.mxu1 %v348_v54  ;;  %v1312_v54 = vld [vmem:[#allocation10 + $0x8] sm:$0xff] }
 0x184   :  { %1183 = vmatpush1.bf16.msra.mxu0 %v7690_v49  ;;  %1265 = vmatpush1.bf16.msra.mxu1 %v7693_v50  ;;  %v335_v49 = vadd.f32 %v8317_v41, %v166_v44  ;;  %v7776_v50 = vld [vmem:[#allocation7 + $0x3e4] ss:$16 sps:$4 sm:$0xff]   ;;  %v1328_v41 = vld [vmem:[#allocation10 + $0x88] sm:$0xff] }
 0x185   :  { %1184 = vmatprep.subr.bf16.mxu0 %v7698_v52  ;;  %1266 = vmatprep.subr.bf16.mxu1 %v7701_v53  ;;  %v1311_v52 = vld [vmem:[#allocation10] sm:$0xff] }
 0x186   :  { %v1319_v53 = vld [vmem:[#allocation10 + $0x40] sm:$0xff] }
 0x187   :  { %v1415_v44 = vld [vmem:[#allocation10 + $0x340] sm:$0xff] }
 0x188   :  { %1185 = vmatpush1.bf16.msra.mxu0 %v7696_v55  ;;  %1267 = vmatpush1.bf16.msra.mxu1 %v7699_v56  ;;  %v1320_v55 = vld [vmem:[#allocation10 + $0x48] sm:$0xff]  ;;  %v7777_v56 = vld [vmem:[#allocation7 + $0x3e8] ss:$16 sps:$4 sm:$0xff]  }
 0x189   :  { %1186 = vmatprep.subr.bf16.mxu0 %v7704_v57  ;;  %1268 = vmatprep.subr.bf16.mxu1 %v7707_v58  ;;  %v343_v57 = vmax.f32 %v335_v49, 0.0  ;;  %v6673_v58 = vcombine.high %v1311_v52, %v1319_v53 }
 0x18c   :  { %1187 = vmatpush1.bf16.msra.mxu0 %v7702_v59  ;;  %1269 = vmatpush1.bf16.msra.mxu1 %v7705_v60  ;;  %v6675_v59 = vcombine.high %v1312_v54, %v1320_v55  ;;  %v1327_v60 = vld [vmem:[#allocation10 + $0x80] sm:$0xff] }
 0x18d   :  { %1188 = vmatprep.subr.bf16.mxu0 %v7710_v61  ;;  %1270 = vmatprep.subr.bf16.mxu1 %v7713_v62  ;;  %v1335_v61 = vld [vmem:[#allocation10 + $0xc0] sm:$0xff]  ;;  %v1336_v62 = vld [vmem:[#allocation10 + $0xc8] sm:$0xff] }
 0x190   :  { %1189 = vmatpush1.bf16.msra.mxu0 %v7708_v63  ;;  %1271 = vmatpush1.bf16.msra.mxu1 %v7711_v0  ;;  %v6672_v63 = vcombine.low %v1311_v52, %v1319_v53  ;;  %v6674_v0 = vcombine.low %v1312_v54, %v1320_v55  ;;  %v1431_v52 = vld [vmem:[#allocation10 + $0x3c0] sm:$0xff]  ;;  %v1424_v53 = vld [vmem:[#allocation10 + $0x388] sm:$0xff] }
 0x191   :  { %1190 = vmatprep.subr.bf16.mxu0 %v7716_v1  ;;  %1272 = vmatprep.subr.bf16.mxu1 %v7719_v2  ;;  %v347_v1 = vpack.c.bf16 %v343_v57, %v343_v57  ;;  %v6689_v2 = vcombine.high %v1327_v60, %v1335_v61  ;;  %v1432_v54 = vld [vmem:[#allocation10 + $0x3c8] sm:$0xff] }
 0x192   :  { %v6787_v57 = vcombine.high %v1424_v53, %v1432_v54 }
 0x194   :  { %1191 = vmatpush1.bf16.msra.mxu0 %v7714_v3  ;;  %1273 = vmatpush1.bf16.msra.mxu1 %v7717_v4  ;;  %v6691_v3 = vcombine.high %v1328_v41, %v1336_v62  ;;  %v1343_v4 = vld [vmem:[#allocation10 + $0x100] sm:$0xff] }
 0x195   :  { %1192 = vmatprep.subr.bf16.mxu0 %v7722_v5  ;;  %1274 = vmatprep.subr.bf16.mxu1 %v7725_v6  ;;  %v1351_v5 = vld [vmem:[#allocation10 + $0x140] sm:$0xff]  ;;  %v1344_v6 = vld [vmem:[#allocation10 + $0x108] sm:$0xff] }
 0x198   :  { %1193 = vmatpush1.bf16.msra.mxu0 %v7720_v7  ;;  %1275 = vmatpush1.bf16.msra.mxu1 %v7723_v8  ;;  %v1352_v7 = vld [vmem:[#allocation10 + $0x148] sm:$0xff]  ;;  %v6688_v8 = vcombine.low %v1327_v60, %v1335_v61 }
 0x199   :  { %1194 = vmatprep.subr.bf16.mxu0 %v7728_v9  ;;  %1276 = vmatprep.subr.bf16.mxu1 %v7731_v10  ;;  %v6690_v9 = vcombine.low %v1328_v41, %v1336_v62  ;;  %v6705_v10 = vcombine.high %v1343_v4, %v1351_v5  ;;  %v1440_v60 = vld [vmem:[#allocation10 + $0x408] sm:$0xff]  ;;  %v6786_v62 = vcombine.low %v1424_v53, %v1432_v54 }
 0x19a   :  { %v1448_v61 = vld [vmem:[#allocation10 + $0x448] sm:$0xff] }
 0x19b   :  { %v1544_v54 = vld [vmem:[#allocation10 + $0x748] sm:$0xff] }
 0x19c   :  { %1195 = vmatpush1.bf16.msra.mxu0 %v7726_v11  ;;  %1277 = vmatpush1.bf16.msra.mxu1 %v7729_v12  ;;  %v6707_v11 = vcombine.high %v1344_v6, %v1352_v7  ;;  %v1359_v12 = vld [vmem:[#allocation10 + $0x180] sm:$0xff] }
 0x19d   :  { %1196 = vmatprep.subr.bf16.mxu0 %v7734_v13  ;;  %1278 = vmatprep.subr.bf16.mxu1 %v7737_v14  ;;  %v1367_v13 = vld [vmem:[#allocation10 + $0x1c0] sm:$0xff]  ;;  %v1360_v14 = vld [vmem:[#allocation10 + $0x188] sm:$0xff] }
 0x1a0   :  { %1197 = vmatpush1.bf16.msra.mxu0 %v7732_v15  ;;  %1279 = vmatpush1.bf16.msra.mxu1 %v7735_v16  ;;  %v1368_v15 = vld [vmem:[#allocation10 + $0x1c8] sm:$0xff]  ;;  %v6704_v16 = vcombine.low %v1343_v4, %v1351_v5 }
 0x1a1   :  { %1198 = vmatprep.subr.bf16.mxu0 %v7740_v17  ;;  %1280 = vmatprep.subr.bf16.mxu1 %v7743_v18  ;;  %v6706_v17 = vcombine.low %v1344_v6, %v1352_v7  ;;  %v6721_v18 = vcombine.high %v1359_v12, %v1367_v13  ;;  %v1464_v4 = vld [vmem:[#allocation10 + $0x4c8] sm:$0xff]  ;;  %v6802_v6 = vcombine.low %v1440_v60, %v1448_v61 }
 0x1a4   :  { %1199 = vmatpush1.bf16.msra.mxu0 %v7738_v19  ;;  %1281 = vmatpush1.bf16.msra.mxu1 %v7741_v20  ;;  %v6723_v19 = vcombine.high %v1360_v14, %v1368_v15  ;;  %v1375_v20 = vld [vmem:[#allocation10 + $0x200] sm:$0xff] }
 0x1a5   :  { %1200 = vmatprep.subr.bf16.mxu0 %v7746_v21  ;;  %1282 = vmatprep.subr.bf16.mxu1 %v7749_v26  ;;  %v1383_v21 = vld [vmem:[#allocation10 + $0x240] sm:$0xff]  ;;  %v1376_v26 = vld [vmem:[#allocation10 + $0x208] sm:$0xff] }
 0x1a8   :  { %1201 = vmatpush1.bf16.msra.mxu0 %v7744_v27  ;;  %1283 = vmatpush1.bf16.msra.mxu1 %v7747_v28  ;;  %v1384_v27 = vld [vmem:[#allocation10 + $0x248] sm:$0xff]  ;;  %v6720_v28 = vcombine.low %v1359_v12, %v1367_v13 }
 0x1a9   :  { %1202 = vmatprep.subr.bf16.mxu0 %v7752_v30  ;;  %1284 = vmatprep.subr.bf16.mxu1 %v7755_v31  ;;  %v6722_v30 = vcombine.low %v1360_v14, %v1368_v15  ;;  %v6737_v31 = vcombine.high %v1375_v20, %v1383_v21  ;;  %v1480_v12 = vld [vmem:[#allocation10 + $0x548] sm:$0xff] }
 0x1ac   :  { %1203 = vmatpush1.bf16.msra.mxu0 %v7750_v32  ;;  %1285 = vmatpush1.bf16.msra.mxu1 %v7753_v33  ;;  %v6739_v32 = vcombine.high %v1376_v26, %v1384_v27  ;;  %v1391_v33 = vld [vmem:[#allocation10 + $0x280] sm:$0xff] }
 0x1ad   :  { %1204 = vmatprep.subr.bf16.mxu0 %v7758_v34  ;;  %1286 = vmatprep.subr.bf16.mxu1 %v7761_v35  ;;  %v1399_v34 = vld [vmem:[#allocation10 + $0x2c0] sm:$0xff]  ;;  %v1392_v35 = vld [vmem:[#allocation10 + $0x288] sm:$0xff] }
 0x1b0   :  { %1205 = vmatpush1.bf16.msra.mxu0 %v7756_v36  ;;  %1287 = vmatpush1.bf16.msra.mxu1 %v7759_v37  ;;  %v1400_v36 = vld [vmem:[#allocation10 + $0x2c8] sm:$0xff]  ;;  %v6736_v37 = vcombine.low %v1375_v20, %v1383_v21 }
 0x1b1   :  { %1206 = vmatprep.subr.bf16.mxu0 %v7764_v39  ;;  %1288 = vmatprep.subr.bf16.mxu1 %v7767_v40  ;;  %v6738_v39 = vcombine.low %v1376_v26, %v1384_v27  ;;  %v6753_v40 = vcombine.high %v1391_v33, %v1399_v34  ;;  %v1496_v20 = vld [vmem:[#allocation10 + $0x5c8] sm:$0xff] }
 0x1b4   :  { %1207 = vmatpush1.bf16.msra.mxu0 %v7762_v42  ;;  %1289 = vmatpush1.bf16.msra.mxu1 %v7765_v43  ;;  %v6755_v42 = vcombine.high %v1392_v35, %v1400_v36  ;;  %v1407_v43 = vld [vmem:[#allocation10 + $0x300] sm:$0xff] }
 0x1b5   :  { %1208 = vmatprep.subr.bf16.mxu0 %v7770_v45  ;;  %1290 = vmatprep.subr.bf16.mxu1 %v7773_v46  ;;  %v1408_v45 = vld [vmem:[#allocation10 + $0x308] sm:$0xff]  ;;  %v6769_v49 = vcombine.high %v1407_v43, %v1415_v44  ;;  %v6768_v55 = vcombine.low %v1407_v43, %v1415_v44 }
 0x1b6   :  { %v1416_v46 = vld [vmem:[#allocation10 + $0x348] sm:$0xff] }
 0x1b7   :  { %v1528_v43 = vld [vmem:[#allocation10 + $0x6c8] sm:$0xff] }
 0x1b8   :  { %1209 = vmatpush1.bf16.msra.mxu0 %v7768_v47  ;;  %1291 = vmatpush1.bf16.msra.mxu1 %v7771_v48  ;;  %v6752_v47 = vcombine.low %v1391_v33, %v1399_v34  ;;  %v6754_v48 = vcombine.low %v1392_v35, %v1400_v36  ;;  %v1512_v33 = vld [vmem:[#allocation10 + $0x648] sm:$0xff] }
 0x1b9   :  { %1210 = vmatprep.subr.bf16.mxu0 %v7776_v50  ;;  %1292 = vmatprep.subr.bf16.mxu1 %v7779_v51  ;;  %v6771_v50 = vcombine.high %v1408_v45, %v1416_v46  ;;  %v1423_v51 = vld [vmem:[#allocation10 + $0x380] sm:$0xff] }
 0x1ba   :  { %v6784_v41 = vcombine.low %v1423_v51, %v1431_v52 }
 0x1bc   :  { %1211 = vmatpush1.bf16.msra.mxu0 %v7774_v24  ;;  %1293 = vmatpush1.bf16.msra.mxu1 %v7777_v56  ;;  %v6770_v24 = vcombine.low %v1408_v45, %v1416_v46  ;;  %v6785_v56 = vcombine.high %v1423_v51, %v1431_v52  ;;  %v1543_v51 = vld [vmem:[#allocation10 + $0x740] sm:$0xff]  ;;  %v1536_v52 = vld [vmem:[#allocation10 + $0x708] sm:$0xff] }
 0x1bd   :  { %4467 = vmatprep.subr.bf16.mxu0 %v6673_v58  ;;  %4549 = vmatprep.subr.bf16.mxu1 %v6675_v59  ;;  %v1439_v58 = vld [vmem:[#allocation10 + $0x400] sm:$0xff] }
 0x1be   :  { %v1447_v59 = vld [vmem:[#allocation10 + $0x440] sm:$0xff] }
 0x1bf   :  { %1213 = vmatmul.mubr.bf16.vlgmr.msra.gmra.mrb[4].mxu0 %v347_v1  ;;  %1295 = vmatmul.mubr.bf16.vlgmr.msra.gmra.mrb[4].mxu1 %v347_v1  ;;  %v1455_v1 = vld [vmem:[#allocation10 + $0x480] sm:$0xff]  ;;  %v6800_v5 = vcombine.low %v1439_v58, %v1447_v59 }
 0x1c0   :  { %4468 = vmatpush1.bf16.msra.mxu0 %v6672_v63  ;;  %4550 = vmatpush1.bf16.msra.mxu1 %v6674_v0  ;;  %v6801_v63 = vcombine.high %v1439_v58, %v1447_v59  ;;  %v6803_v0 = vcombine.high %v1440_v60, %v1448_v61  ;;  %v1559_v58 = vld [vmem:[#allocation10 + $0x7c0] sm:$0xff]  ;;  %v1552_v59 = vld [vmem:[#allocation10 + $0x788] sm:$0xff] }
 0x1c1   :  { %4469 = vmatprep.subr.bf16.mxu0 %v6689_v2  ;;  %4551 = vmatprep.subr.bf16.mxu1 %v6691_v3  ;;  %v1463_v2 = vld [vmem:[#allocation10 + $0x4c0] sm:$0xff]  ;;  %v1456_v3 = vld [vmem:[#allocation10 + $0x488] sm:$0xff] }
 0x1c2   :  { %v6817_v7 = vcombine.high %v1455_v1, %v1463_v2  ;;  %v6816_v13 = vcombine.low %v1455_v1, %v1463_v2  ;;  %v6818_v14 = vcombine.low %v1456_v3, %v1464_v4  ;;  %v1560_v61 = vld [vmem:[#allocation10 + $0x7c8] sm:$0xff]  ;;  %v1575_v1 = vld [vmem:[#allocation10 + $0x840] sm:$0xff] }
 0x1c3   :  { %v1568_v2 = vld [vmem:[#allocation10 + $0x808] sm:$0xff] }
 0x1c4   :  { %4470 = vmatpush1.bf16.msra.mxu0 %v6688_v8  ;;  %4552 = vmatpush1.bf16.msra.mxu1 %v6690_v9  ;;  %v6819_v8 = vcombine.high %v1456_v3, %v1464_v4  ;;  %v1471_v9 = vld [vmem:[#allocation10 + $0x500] sm:$0xff]  ;;  %v1576_v4 = vld [vmem:[#allocation10 + $0x848] sm:$0xff] }
 0x1c5   :  { %4471 = vmatprep.subr.bf16.mxu0 %v6705_v10  ;;  %4553 = vmatprep.subr.bf16.mxu1 %v6707_v11  ;;  %v1479_v10 = vld [vmem:[#allocation10 + $0x540] sm:$0xff]  ;;  %v1472_v11 = vld [vmem:[#allocation10 + $0x508] sm:$0xff] }
 0x1c6   :  { %v6833_v15 = vcombine.high %v1471_v9, %v1479_v10  ;;  %v6832_v21 = vcombine.low %v1471_v9, %v1479_v10  ;;  %v6834_v26 = vcombine.low %v1472_v11, %v1480_v12 }
 0x1c8   :  { %4472 = vmatpush1.bf16.msra.mxu0 %v6704_v16  ;;  %4554 = vmatpush1.bf16.msra.mxu1 %v6706_v17  ;;  %v6835_v16 = vcombine.high %v1472_v11, %v1480_v12  ;;  %v1487_v17 = vld [vmem:[#allocation10 + $0x580] sm:$0xff] }
 0x1c9   :  { %4473 = vmatprep.subr.bf16.mxu0 %v6721_v18  ;;  %4555 = vmatprep.subr.bf16.mxu1 %v6723_v19  ;;  %v1495_v18 = vld [vmem:[#allocation10 + $0x5c0] sm:$0xff]  ;;  %v1488_v19 = vld [vmem:[#allocation10 + $0x588] sm:$0xff] }
 0x1ca   :  { %v6849_v27 = vcombine.high %v1487_v17, %v1495_v18  ;;  %v6848_v34 = vcombine.low %v1487_v17, %v1495_v18  ;;  %v6850_v35 = vcombine.low %v1488_v19, %v1496_v20 }
 0x1cc   :  { %4474 = vmatpush1.bf16.msra.mxu0 %v6720_v28  ;;  %4556 = vmatpush1.bf16.msra.mxu1 %v6722_v30  ;;  %v6851_v28 = vcombine.high %v1488_v19, %v1496_v20  ;;  %v1503_v30 = vld [vmem:[#allocation10 + $0x600] sm:$0xff] }
 0x1cd   :  { %4475 = vmatprep.subr.bf16.mxu0 %v6737_v31  ;;  %4557 = vmatprep.subr.bf16.mxu1 %v6739_v32  ;;  %v1511_v31 = vld [vmem:[#allocation10 + $0x640] sm:$0xff]  ;;  %v1504_v32 = vld [vmem:[#allocation10 + $0x608] sm:$0xff] }
 0x1ce   :  { %v6865_v36 = vcombine.high %v1503_v30, %v1511_v31  ;;  %v6864_v44 = vcombine.low %v1503_v30, %v1511_v31  ;;  %v6866_v45 = vcombine.low %v1504_v32, %v1512_v33  ;;  %v1583_v30 = vld [vmem:[#allocation10 + $0x880] sm:$0xff] }
 0x1d0   :  { %4476 = vmatpush1.bf16.msra.mxu0 %v6736_v37  ;;  %4558 = vmatpush1.bf16.msra.mxu1 %v6738_v39  ;;  %v6867_v37 = vcombine.high %v1504_v32, %v1512_v33  ;;  %v1519_v39 = vld [vmem:[#allocation10 + $0x680] sm:$0xff]  ;;  %v1584_v33 = vld [vmem:[#allocation10 + $0x888] sm:$0xff] }
 0x1d1   :  { %4477 = vmatprep.subr.bf16.mxu0 %v6753_v40  ;;  %4559 = vmatprep.subr.bf16.mxu1 %v6755_v42  ;;  %v1527_v40 = vld [vmem:[#allocation10 + $0x6c0] sm:$0xff]  ;;  %v1520_v42 = vld [vmem:[#allocation10 + $0x688] sm:$0xff] }
 0x1d2   :  { %v6881_v46 = vcombine.high %v1519_v39, %v1527_v40  ;;  %v1591_v32 = vld [vmem:[#allocation10 + $0x8c0] sm:$0xff] }
 0x1d4   :  { %4478 = vmatpush1.bf16.msra.mxu0 %v6752_v47  ;;  %4560 = vmatpush1.bf16.msra.mxu1 %v6754_v48  ;;  %v6883_v47 = vcombine.high %v1520_v42, %v1528_v43  ;;  %v6880_v48 = vcombine.low %v1519_v39, %v1527_v40  ;;  %v6945_v39 = vcombine.high %v1583_v30, %v1591_v32 }
 0x1d5   :  { %4479 = vmatprep.subr.bf16.mxu0 %v6769_v49  ;;  %4561 = vmatprep.subr.bf16.mxu1 %v6771_v50  ;;  %v6882_v49 = vcombine.low %v1520_v42, %v1528_v43  ;;  %v1535_v50 = vld [vmem:[#allocation10 + $0x700] sm:$0xff]  ;;  %v1600_v43 = vld [vmem:[#allocation10 + $0x908] sm:$0xff] }
 0x1d6   :  { %v6897_v53 = vcombine.high %v1535_v50, %v1543_v51  ;;  %v1607_v42 = vld [vmem:[#allocation10 + $0x940] sm:$0xff] }
 0x1d8   :  { %4480 = vmatpush1.bf16.msra.mxu0 %v6768_v55  ;;  %4562 = vmatpush1.bf16.msra.mxu1 %v6770_v24  ;;  %v6896_v55 = vcombine.low %v1535_v50, %v1543_v51  ;;  %v6898_v24 = vcombine.low %v1536_v52, %v1544_v54  ;;  %v1615_v50 = vld [vmem:[#allocation10 + $0x980] sm:$0xff] }
 0x1d9   :  { %4481 = vmatprep.subr.bf16.mxu0 %v6785_v56  ;;  %4563 = vmatprep.subr.bf16.mxu1 %v6787_v57  ;;  %v6899_v56 = vcombine.high %v1536_v52, %v1544_v54  ;;  %v1551_v57 = vld [vmem:[#allocation10 + $0x780] sm:$0xff]  ;;  %v1616_v52 = vld [vmem:[#allocation10 + $0x988] sm:$0xff] }
 0x1da   :  { %v6913_v60 = vcombine.high %v1551_v57, %v1559_v58  ;;  %v1623_v51 = vld [vmem:[#allocation10 + $0x9c0] sm:$0xff] }
 0x1dc   :  { %4482 = vmatpush1.bf16.msra.mxu0 %v6784_v41  ;;  %4564 = vmatpush1.bf16.msra.mxu1 %v6786_v62  ;;  %v6912_v41 = vcombine.low %v1551_v57, %v1559_v58  ;;  %v6914_v62 = vcombine.low %v1552_v59, %v1560_v61  ;;  %v1631_v57 = vld [vmem:[#allocation10 + $0xa00] sm:$0xff] }
 0x1dd   :  { %4483 = vmatprep.subr.bf16.mxu0 %v6801_v63  ;;  %4565 = vmatprep.subr.bf16.mxu1 %v6803_v0  ;;  %v6915_v63 = vcombine.high %v1552_v59, %v1560_v61  ;;  %v1567_v0 = vld [vmem:[#allocation10 + $0x800] sm:$0xff]  ;;  %v1632_v59 = vld [vmem:[#allocation10 + $0xa08] sm:$0xff]  ;;  %v6976_v61 = vcombine.low %v1615_v50, %v1623_v51 }
 0x1de   :  { %v6929_v3 = vcombine.high %v1567_v0, %v1575_v1  ;;  %v1639_v58 = vld [vmem:[#allocation10 + $0xa40] sm:$0xff] }
 0x1e0   :  { %4484 = vmatpush1.bf16.msra.mxu0 %v6800_v5  ;;  %4566 = vmatpush1.bf16.msra.mxu1 %v6802_v6  ;;  %v6928_v5 = vcombine.low %v1567_v0, %v1575_v1  ;;  %v6930_v6 = vcombine.low %v1568_v2, %v1576_v4  ;;  %v1647_v0 = vld [vmem:[#allocation10 + $0xa80] sm:$0xff] }
 0x1e1   :  { %4485 = vmatprep.subr.bf16.mxu0 %v6817_v7  ;;  %4567 = vmatprep.subr.bf16.mxu1 %v6819_v8  ;;  %v6931_v7 = vcombine.high %v1568_v2, %v1576_v4  ;;  %v8325_v8 = vld [vmem:[#allocation8] sm:$0xf]  ;;  %v1655_v1 = vld [vmem:[#allocation10 + $0xac0] sm:$0xff]  ;;  %v1648_v2 = vld [vmem:[#allocation10 + $0xa88] sm:$0xff]  ;;  %v6992_v4 = vcombine.low %v1631_v57, %v1639_v58 }
 0x1e2   :  { %v482_v9 = vrot.slane %v8325_v8, %v8301_v23  ;;  %v486_v10 = vrot.slane %v8325_v8, %v8306_v25  ;;  %v494_v11 = vrot.slane %v8325_v8, %v8313_v29 }
 0x1e4   :  { %4486 = vmatpush1.bf16.msra.mxu0 %v6816_v13  ;;  %4568 = vmatpush1.bf16.msra.mxu1 %v6818_v14 }
 0x1e5   :  { %4487 = vmatprep.subr.bf16.mxu0 %v6833_v15  ;;  %4569 = vmatprep.subr.bf16.mxu1 %v6835_v16 }
 0x1e8   :  { %4488 = vmatpush1.bf16.msra.mxu0 %v6832_v21  ;;  %4570 = vmatpush1.bf16.msra.mxu1 %v6834_v26 }
 0x1e9   :  { %4489 = vmatprep.subr.bf16.mxu0 %v6849_v27  ;;  %4571 = vmatprep.subr.bf16.mxu1 %v6851_v28 }
 0x1ec   :  { %4490 = vmatpush1.bf16.msra.mxu0 %v6848_v34  ;;  %4572 = vmatpush1.bf16.msra.mxu1 %v6850_v35  ;;  %v1592_v34 = vld [vmem:[#allocation10 + $0x8c8] sm:$0xff] }
 0x1ed   :  { %4491 = vmatprep.subr.bf16.mxu0 %v6865_v36  ;;  %4573 = vmatprep.subr.bf16.mxu1 %v6867_v37  ;;  %v1599_v37 = vld [vmem:[#allocation10 + $0x900] sm:$0xff]  ;;  %v6947_v40 = vcombine.high %v1584_v33, %v1592_v34 }
 0x1ee   :  { %v6960_v54 = vcombine.low %v1599_v37, %v1607_v42 }
 0x1f0   :  { %4492 = vmatpush1.bf16.msra.mxu0 %v6864_v44  ;;  %4574 = vmatpush1.bf16.msra.mxu1 %v6866_v45  ;;  %v1608_v44 = vld [vmem:[#allocation10 + $0x948] sm:$0xff] }
 0x1f1   :  { %4493 = vmatprep.subr.bf16.mxu0 %v6881_v46  ;;  %4575 = vmatprep.subr.bf16.mxu1 %v6883_v47  ;;  %v6944_v46 = vcombine.low %v1583_v30, %v1591_v32  ;;  %v6946_v47 = vcombine.low %v1584_v33, %v1592_v34  ;;  %v1703_v32 = vld [vmem:[#allocation10 + $0xc40] sm:$0xff]  ;;  %v1696_v33 = vld [vmem:[#allocation10 + $0xc08] sm:$0xff] }
 0x1f2   :  { %v1704_v34 = vld [vmem:[#allocation10 + $0xc48] sm:$0xff] }
 0x1f4   :  { %4494 = vmatpush1.bf16.msra.mxu0 %v6880_v48  ;;  %4576 = vmatpush1.bf16.msra.mxu1 %v6882_v49  ;;  %v6961_v48 = vcombine.high %v1599_v37, %v1607_v42  ;;  %v6963_v49 = vcombine.high %v1600_v43, %v1608_v44  ;;  %v7059_v42 = vcombine.high %v1696_v33, %v1704_v34 }
 0x1f5   :  { %4495 = vmatprep.subr.bf16.mxu0 %v6897_v53  ;;  %4577 = vmatprep.subr.bf16.mxu1 %v6899_v56  ;;  %v1624_v53 = vld [vmem:[#allocation10 + $0x9c8] sm:$0xff] }
 0x1f6   :  { %v6979_v56 = vcombine.high %v1616_v52, %v1624_v53 }
 0x1f8   :  { %4496 = vmatpush1.bf16.msra.mxu0 %v6896_v55  ;;  %4578 = vmatpush1.bf16.msra.mxu1 %v6898_v24  ;;  %v6962_v55 = vcombine.low %v1600_v43, %v1608_v44  ;;  %v6977_v24 = vcombine.high %v1615_v50, %v1623_v51  ;;  %v1711_v43 = vld [vmem:[#allocation10 + $0xc80] sm:$0xff] }
 0x1f9   :  { %4497 = vmatprep.subr.bf16.mxu0 %v6913_v60  ;;  %4579 = vmatprep.subr.bf16.mxu1 %v6915_v63  ;;  %v1640_v60 = vld [vmem:[#allocation10 + $0xa48] sm:$0xff]  ;;  %v1719_v44 = vld [vmem:[#allocation10 + $0xcc0] sm:$0xff] }
 0x1fa   :  { %v6995_v63 = vcombine.high %v1632_v59, %v1640_v60  ;;  %v7073_v50 = vcombine.high %v1711_v43, %v1719_v44 }
 0x1fc   :  { %4498 = vmatpush1.bf16.msra.mxu0 %v6912_v41  ;;  %4580 = vmatpush1.bf16.msra.mxu1 %v6914_v62  ;;  %v6978_v41 = vcombine.low %v1616_v52, %v1624_v53  ;;  %v6993_v62 = vcombine.high %v1631_v57, %v1639_v58  ;;  %v1727_v52 = vld [vmem:[#allocation10 + $0xd00] sm:$0xff] }
 0x1fd   :  { %4508 = vmatprep.subr.bf16.mxu0 %v6929_v3  ;;  %4590 = vmatprep.subr.bf16.mxu1 %v6931_v7  ;;  %v1656_v3 = vld [vmem:[#allocation10 + $0xac8] sm:$0xff]  ;;  %v1735_v53 = vld [vmem:[#allocation10 + $0xd40] sm:$0xff] }
 0x1fe   :  { %v7011_v7 = vcombine.high %v1648_v2, %v1656_v3  ;;  %v7089_v57 = vcombine.high %v1727_v52, %v1735_v53 }
 0x292   :  { %v1214_v12 = vpop.f32.mrb[4].mxu0  ;;  %v8333_v13 = vpop.f32.mrb[4].mxu1 }
 0x293   :  { %v7489_v14 = vadd.f32 %v1214_v12, %v482_v9  ;;  %v1216_v15 = vpop.f32.mrb[5].mxu0  ;;  %v1298_v16 = vpop.f32.mrb[5].mxu1  ;;  %v1663_v9 = vld [vmem:[#allocation10 + $0xb00] sm:$0xff]  ;;  %v1672_v12 = vld [vmem:[#allocation10 + $0xb48] sm:$0xff] }
 0x294   :  { %v7490_v17 = vadd.f32 %v1216_v15, %v486_v10  ;;  %v7492_v18 = vadd.f32 %v1298_v16, %v494_v11  ;;  %v1218_v19 = vpop.f32.mrb[6].mxu0  ;;  %v1300_v20 = vpop.f32.mrb[6].mxu1  ;;  %v1671_v10 = vld [vmem:[#allocation10 + $0xb40] sm:$0xff]  ;;  %v1664_v11 = vld [vmem:[#allocation10 + $0xb08] sm:$0xff]  ;;  %v7010_v15 = vcombine.low %v1648_v2, %v1656_v3 }
 0x295   :  { %v1303_v21 = vmax.f32 %v7489_v14, 0.0  ;;  %v1219_v26 = vpop.f32.mrb[7].mxu0  ;;  %v1301_v27 = vpop.f32.mrb[7].mxu1  ;;  %v7008_v14 = vcombine.low %v1647_v0, %v1655_v1  ;;  %v7025_v16 = vcombine.high %v1663_v9, %v1671_v10  ;;  %v1687_v19 = vld [vmem:[#allocation10 + $0xbc0] sm:$0xff]  ;;  %v1680_v20 = vld [vmem:[#allocation10 + $0xb88] sm:$0xff] }
 0x296   :  { %v1304_v28 = vmax.f32 %v7490_v17, 0.0  ;;  %v1306_v31 = vmax.f32 %v7492_v18, 0.0  ;;  %v7027_v17 = vcombine.high %v1664_v11, %v1672_v12  ;;  %v1679_v18 = vld [vmem:[#allocation10 + $0xb80] sm:$0xff]  ;;  %v7024_v26 = vcombine.low %v1663_v9, %v1671_v10 }
 0x297   :  { %v8337_v36 = vpack.c.bf16 %v1303_v21, %v1303_v21  ;;  %v1688_v21 = vld [vmem:[#allocation10 + $0xbc8] sm:$0xff]  ;;  %v7026_v27 = vcombine.low %v1664_v11, %v1672_v12  ;;  %v7040_v37 = vcombine.low %v1679_v18, %v1687_v19  ;;  %v1759_v2 = vld [vmem:[#allocation10 + $0xe00] sm:$0xff] }
 0x298   :  { %v8335_v35 = vpack.c.bf16 %v1304_v28, %v1304_v28  ;;  %v8341_v45 = vpack.c.bf16 %v1306_v31, %v1306_v31  ;;  %v7041_v28 = vcombine.high %v1679_v18, %v1687_v19  ;;  %v7043_v30 = vcombine.high %v1680_v20, %v1688_v21  ;;  %v1695_v31 = vld [vmem:[#allocation10 + $0xc00] sm:$0xff] }
 0x299   :  { %v1767_v3 = vld [vmem:[#allocation10 + $0xe40] sm:$0xff] }
 0x29a   :  { %4499 = vmatprep.mubr.bf16.mxu0 %v8335_v35  ;;  %4581 = vmatprep.mubr.bf16.mxu1 %v8335_v35  ;;  %v7121_v9 = vcombine.high %v1759_v2, %v1767_v3  ;;  %v1775_v11 = vld [vmem:[#allocation10 + $0xe80] sm:$0xff] }
 0x29b   :  { %4500 = vmatmul.mubr.bf16.vlgmr.msra.gmra.mrb[8].mxu0 %v8337_v36  ;;  %4582 = vmatmul.mubr.bf16.vlgmr.msra.gmra.mrb[8].mxu1 %v8337_v36  ;;  %v1783_v12 = vld [vmem:[#allocation10 + $0xec0] sm:$0xff] }
 0x29c   :  { %4509 = vmatpush1.bf16.msra.mxu0 %v6928_v5  ;;  %4591 = vmatpush1.bf16.msra.mxu1 %v6930_v6  ;;  %v6994_v5 = vcombine.low %v1632_v59, %v1640_v60  ;;  %v7009_v6 = vcombine.high %v1647_v0, %v1655_v1  ;;  %v1743_v59 = vld [vmem:[#allocation10 + $0xd80] sm:$0xff]  ;;  %v7137_v18 = vcombine.high %v1775_v11, %v1783_v12 }
 0x29d   :  { %4540 = vmatprep.mubr.bf16.mxu0 %v8341_v45  ;;  %4622 = vmatprep.mubr.bf16.mxu1 %v8341_v45  ;;  %v1751_v60 = vld [vmem:[#allocation10 + $0xdc0] sm:$0xff] }
 0x29e   :  { %4510 = vmatprep.subr.bf16.mxu0 %v6945_v39  ;;  %4592 = vmatprep.subr.bf16.mxu1 %v6947_v40  ;;  %v7042_v39 = vcombine.low %v1680_v20, %v1688_v21  ;;  %v7057_v40 = vcombine.high %v1695_v31, %v1703_v32  ;;  %v7105_v0 = vcombine.high %v1743_v59, %v1751_v60  ;;  %v1791_v20 = vld [vmem:[#allocation10 + $0xf00] sm:$0xff] }
 0x29f   :  { %v1799_v21 = vld [vmem:[#allocation10 + $0xf40] sm:$0xff] }
 0x2a0   :  { %4511 = vmatpush1.bf16.msra.mxu0 %v6944_v46  ;;  %4593 = vmatpush1.bf16.msra.mxu1 %v6946_v47  ;;  %v1712_v46 = vld [vmem:[#allocation10 + $0xc88] sm:$0xff] }
 0x2a1   :  { %4512 = vmatprep.subr.bf16.mxu0 %v6961_v48  ;;  %4594 = vmatprep.subr.bf16.mxu1 %v6963_v49  ;;  %v1720_v47 = vld [vmem:[#allocation10 + $0xcc8] sm:$0xff]  ;;  %v7056_v48 = vcombine.low %v1695_v31, %v1703_v32  ;;  %v7058_v49 = vcombine.low %v1696_v33, %v1704_v34  ;;  %v490_v31 = vrot.slane %v8325_v8, %v8320_v38  ;;  %v1807_v34 = vld [vmem:[#allocation10 + $0xf80] sm:$0xff]  ;;  %v1321_v8 = vld [vmem:[#allocation10 + $0x50] sm:$0xff] }
 0x2a2   :  { %v7075_v51 = vcombine.high %v1712_v46, %v1720_v47  ;;  %v7153_v32 = vcombine.high %v1791_v20, %v1799_v21 }
 0x2a4   :  { %4513 = vmatpush1.bf16.msra.mxu0 %v6960_v54  ;;  %4595 = vmatpush1.bf16.msra.mxu1 %v6962_v55  ;;  %v1728_v54 = vld [vmem:[#allocation10 + $0xd08] sm:$0xff] }
 0x2a5   :  { %4514 = vmatprep.subr.bf16.mxu0 %v6977_v24  ;;  %4596 = vmatprep.subr.bf16.mxu1 %v6979_v56  ;;  %v1736_v55 = vld [vmem:[#allocation10 + $0xd48] sm:$0xff]  ;;  %v7072_v24 = vcombine.low %v1711_v43, %v1719_v44  ;;  %v7074_v56 = vcombine.low %v1712_v46, %v1720_v47  ;;  %v7491_v44 = vadd.f32 %v8333_v13, %v490_v31  ;;  %v1330_v13 = vld [vmem:[#allocation10 + $0x98] sm:$0xff] }
 0x2a6   :  { %v7091_v58 = vcombine.high %v1728_v54, %v1736_v55  ;;  %v1394_v31 = vld [vmem:[#allocation10 + $0x298] sm:$0xff] }
 0x2a8   :  { %4515 = vmatpush1.bf16.msra.mxu0 %v6976_v61  ;;  %4597 = vmatpush1.bf16.msra.mxu1 %v6978_v41  ;;  %v1744_v61 = vld [vmem:[#allocation10 + $0xd88] sm:$0xff] }
 0x2a9   :  { %4516 = vmatprep.subr.bf16.mxu0 %v6993_v62  ;;  %4598 = vmatprep.subr.bf16.mxu1 %v6995_v63  ;;  %v1752_v41 = vld [vmem:[#allocation10 + $0xdc8] sm:$0xff]  ;;  %v7088_v62 = vcombine.low %v1727_v52, %v1735_v53  ;;  %v7090_v63 = vcombine.low %v1728_v54, %v1736_v55  ;;  %v1305_v53 = vmax.f32 %v7491_v44, 0.0  ;;  %v1418_v44 = vld [vmem:[#allocation10 + $0x358] sm:$0xff] }
 0x2aa   :  { %v7107_v1 = vcombine.high %v1744_v61, %v1752_v41 }
 0x2ac   :  { %4517 = vmatpush1.bf16.msra.mxu0 %v6992_v4  ;;  %4599 = vmatpush1.bf16.msra.mxu1 %v6994_v5  ;;  %v1760_v4 = vld [vmem:[#allocation10 + $0xe08] sm:$0xff] }
 0x2ad   :  { %4518 = vmatprep.subr.bf16.mxu0 %v7009_v6  ;;  %4600 = vmatprep.subr.bf16.mxu1 %v7011_v7  ;;  %v1768_v5 = vld [vmem:[#allocation10 + $0xe48] sm:$0xff]  ;;  %v7104_v6 = vcombine.low %v1743_v59, %v1751_v60  ;;  %v7106_v7 = vcombine.low %v1744_v61, %v1752_v41  ;;  %v8350_v59 = vpack.c.bf16 %v1305_v53, %v1305_v53 }
 0x2ae   :  { %v7123_v10 = vcombine.high %v1760_v4, %v1768_v5 }
 0x2b0   :  { %4519 = vmatpush1.bf16.msra.mxu0 %v7008_v14  ;;  %4601 = vmatpush1.bf16.msra.mxu1 %v7010_v15  ;;  %v1776_v14 = vld [vmem:[#allocation10 + $0xe88] sm:$0xff] }
 0x2b1   :  { %4520 = vmatprep.subr.bf16.mxu0 %v7025_v16  ;;  %4602 = vmatprep.subr.bf16.mxu1 %v7027_v17  ;;  %v1784_v15 = vld [vmem:[#allocation10 + $0xec8] sm:$0xff]  ;;  %v7120_v16 = vcombine.low %v1759_v2, %v1767_v3  ;;  %v7122_v17 = vcombine.low %v1760_v4, %v1768_v5 }
 0x2b2   :  { %v7139_v19 = vcombine.high %v1776_v14, %v1784_v15 }
 0x2b4   :  { %4521 = vmatpush1.bf16.msra.mxu0 %v7024_v26  ;;  %4603 = vmatpush1.bf16.msra.mxu1 %v7026_v27  ;;  %v1792_v26 = vld [vmem:[#allocation10 + $0xf08] sm:$0xff] }
 0x2b5   :  { %4522 = vmatprep.subr.bf16.mxu0 %v7041_v28  ;;  %4604 = vmatprep.subr.bf16.mxu1 %v7043_v30  ;;  %v1800_v27 = vld [vmem:[#allocation10 + $0xf48] sm:$0xff]  ;;  %v7136_v28 = vcombine.low %v1775_v11, %v1783_v12  ;;  %v7138_v30 = vcombine.low %v1776_v14, %v1784_v15 }
 0x2b6   :  { %v7155_v33 = vcombine.high %v1792_v26, %v1800_v27  ;;  %v7154_v43 = vcombine.low %v1792_v26, %v1800_v27 }
 0x2b8   :  { %4523 = vmatpush1.bf16.msra.mxu0 %v7040_v37  ;;  %4605 = vmatpush1.bf16.msra.mxu1 %v7042_v39  ;;  %v1815_v37 = vld [vmem:[#allocation10 + $0xfc0] sm:$0xff]  ;;  %v1808_v39 = vld [vmem:[#allocation10 + $0xf88] sm:$0xff] }
 0x2b9   :  { %4524 = vmatprep.subr.bf16.mxu0 %v7057_v40  ;;  %4606 = vmatprep.subr.bf16.mxu1 %v7059_v42  ;;  %v1816_v40 = vld [vmem:[#allocation10 + $0xfc8] sm:$0xff]  ;;  %v7152_v42 = vcombine.low %v1791_v20, %v1799_v21  ;;  %v7169_v46 = vcombine.high %v1807_v34, %v1815_v37 }
 0x2ba   :  { %v7171_v47 = vcombine.high %v1808_v39, %v1816_v40  ;;  %v7170_v52 = vcombine.low %v1808_v39, %v1816_v40  ;;  %v1409_v40 = vld [vmem:[#allocation10 + $0x310] sm:$0xff] }
 0x2bc   :  { %4525 = vmatpush1.bf16.msra.mxu0 %v7056_v48  ;;  %4607 = vmatpush1.bf16.msra.mxu1 %v7058_v49  ;;  %v1313_v48 = vld [vmem:[#allocation10 + $0x10] sm:$0xff]  ;;  %v1314_v49 = vld [vmem:[#allocation10 + $0x18] sm:$0xff] }
 0x2bd   :  { %4526 = vmatprep.subr.bf16.mxu0 %v7073_v50  ;;  %4608 = vmatprep.subr.bf16.mxu1 %v7075_v51  ;;  %v1322_v50 = vld [vmem:[#allocation10 + $0x58] sm:$0xff]  ;;  %v7168_v51 = vcombine.low %v1807_v34, %v1815_v37  ;;  %v6677_v54 = vcombine.high %v1313_v48, %v1321_v8 }
 0x2be   :  { %v6679_v55 = vcombine.high %v1314_v49, %v1322_v50  ;;  %v6678_v60 = vcombine.low %v1314_v49, %v1322_v50  ;;  %v1425_v49 = vld [vmem:[#allocation10 + $0x390] sm:$0xff] }
 0x2bf   :  { %v1433_v50 = vld [vmem:[#allocation10 + $0x3d0] sm:$0xff] }
 0x2c0   :  { %4527 = vmatpush1.bf16.msra.mxu0 %v7072_v24  ;;  %4609 = vmatpush1.bf16.msra.mxu1 %v7074_v56  ;;  %v1329_v24 = vld [vmem:[#allocation10 + $0x90] sm:$0xff] }
 0x2c1   :  { %4528 = vmatprep.subr.bf16.mxu0 %v7089_v57  ;;  %4610 = vmatprep.subr.bf16.mxu1 %v7091_v58  ;;  %v1337_v56 = vld [vmem:[#allocation10 + $0xd0] sm:$0xff]  ;;  %v1338_v57 = vld [vmem:[#allocation10 + $0xd8] sm:$0xff]  ;;  %v6676_v58 = vcombine.low %v1313_v48, %v1321_v8 }
 0x2c2   :  { %v6693_v61 = vcombine.high %v1329_v24, %v1337_v56  ;;  %v6695_v41 = vcombine.high %v1330_v13, %v1338_v57  ;;  %v6692_v2 = vcombine.low %v1329_v24, %v1337_v56  ;;  %v6694_v3 = vcombine.low %v1330_v13, %v1338_v57  ;;  %v1441_v56 = vld [vmem:[#allocation10 + $0x410] sm:$0xff]  ;;  %v1442_v57 = vld [vmem:[#allocation10 + $0x418] sm:$0xff] }
 0x2c3   :  { %v1449_v13 = vld [vmem:[#allocation10 + $0x450] sm:$0xff] }
 0x2c4   :  { %4529 = vmatpush1.bf16.msra.mxu0 %v7088_v62  ;;  %4611 = vmatpush1.bf16.msra.mxu1 %v7090_v63  ;;  %v1345_v62 = vld [vmem:[#allocation10 + $0x110] sm:$0xff] }
 0x2c5   :  { %4530 = vmatprep.subr.bf16.mxu0 %v7105_v0  ;;  %4612 = vmatprep.subr.bf16.mxu1 %v7107_v1  ;;  %v1353_v63 = vld [vmem:[#allocation10 + $0x150] sm:$0xff]  ;;  %v1346_v0 = vld [vmem:[#allocation10 + $0x118] sm:$0xff] }
 0x2c6   :  { %v1354_v1 = vld [vmem:[#allocation10 + $0x158] sm:$0xff]  ;;  %v6709_v4 = vcombine.high %v1345_v62, %v1353_v63  ;;  %v6708_v11 = vcombine.low %v1345_v62, %v1353_v63  ;;  %v1457_v63 = vld [vmem:[#allocation10 + $0x490] sm:$0xff] }
 0x2c7   :  { %v6711_v5 = vcombine.high %v1346_v0, %v1354_v1  ;;  %v6710_v12 = vcombine.low %v1346_v0, %v1354_v1  ;;  %v1465_v0 = vld [vmem:[#allocation10 + $0x4d0] sm:$0xff]  ;;  %v1458_v1 = vld [vmem:[#allocation10 + $0x498] sm:$0xff] }
 0x2c8   :  { %4531 = vmatpush1.bf16.msra.mxu0 %v7104_v6  ;;  %4613 = vmatpush1.bf16.msra.mxu1 %v7106_v7  ;;  %v1361_v6 = vld [vmem:[#allocation10 + $0x190] sm:$0xff] }
 0x2c9   :  { %4532 = vmatprep.subr.bf16.mxu0 %v7121_v9  ;;  %4614 = vmatprep.subr.bf16.mxu1 %v7123_v10  ;;  %v1369_v7 = vld [vmem:[#allocation10 + $0x1d0] sm:$0xff]  ;;  %v1362_v9 = vld [vmem:[#allocation10 + $0x198] sm:$0xff] }
 0x2ca   :  { %v1370_v10 = vld [vmem:[#allocation10 + $0x1d8] sm:$0xff]  ;;  %v6725_v14 = vcombine.high %v1361_v6, %v1369_v7  ;;  %v6724_v20 = vcombine.low %v1361_v6, %v1369_v7  ;;  %v1473_v7 = vld [vmem:[#allocation10 + $0x510] sm:$0xff] }
 0x2cb   :  { %v6727_v15 = vcombine.high %v1362_v9, %v1370_v10  ;;  %v6726_v21 = vcombine.low %v1362_v9, %v1370_v10  ;;  %v1481_v9 = vld [vmem:[#allocation10 + $0x550] sm:$0xff]  ;;  %v1474_v10 = vld [vmem:[#allocation10 + $0x518] sm:$0xff] }
 0x2cc   :  { %4533 = vmatpush1.bf16.msra.mxu0 %v7120_v16  ;;  %4615 = vmatpush1.bf16.msra.mxu1 %v7122_v17  ;;  %v1377_v16 = vld [vmem:[#allocation10 + $0x210] sm:$0xff] }
 0x2cd   :  { %4534 = vmatprep.subr.bf16.mxu0 %v7137_v18  ;;  %4616 = vmatprep.subr.bf16.mxu1 %v7139_v19  ;;  %v1385_v17 = vld [vmem:[#allocation10 + $0x250] sm:$0xff]  ;;  %v1378_v18 = vld [vmem:[#allocation10 + $0x218] sm:$0xff] }
 0x2ce   :  { %v1386_v19 = vld [vmem:[#allocation10 + $0x258] sm:$0xff]  ;;  %v6741_v26 = vcombine.high %v1377_v16, %v1385_v17 }
 0x2cf   :  { %v6743_v27 = vcombine.high %v1378_v18, %v1386_v19  ;;  %v6742_v34 = vcombine.low %v1378_v18, %v1386_v19  ;;  %v1497_v18 = vld [vmem:[#allocation10 + $0x5d0] sm:$0xff]  ;;  %v1490_v19 = vld [vmem:[#allocation10 + $0x598] sm:$0xff] }
 0x2d0   :  { %4535 = vmatpush1.bf16.msra.mxu0 %v7136_v28  ;;  %4617 = vmatpush1.bf16.msra.mxu1 %v7138_v30  ;;  %v1393_v28 = vld [vmem:[#allocation10 + $0x290] sm:$0xff] }
 0x2d1   :  { %4536 = vmatprep.subr.bf16.mxu0 %v7153_v32  ;;  %4618 = vmatprep.subr.bf16.mxu1 %v7155_v33  ;;  %v1401_v30 = vld [vmem:[#allocation10 + $0x2d0] sm:$0xff]  ;;  %v1402_v32 = vld [vmem:[#allocation10 + $0x2d8] sm:$0xff]  ;;  %v6740_v33 = vcombine.low %v1377_v16, %v1385_v17 }
 0x2d2   :  { %v6757_v37 = vcombine.high %v1393_v28, %v1401_v30  ;;  %v6759_v39 = vcombine.high %v1394_v31, %v1402_v32  ;;  %v1489_v17 = vld [vmem:[#allocation10 + $0x590] sm:$0xff] }
 0x2d4   :  { %4537 = vmatpush1.bf16.msra.mxu0 %v7152_v42  ;;  %4619 = vmatpush1.bf16.msra.mxu1 %v7154_v43  ;;  %v1417_v42 = vld [vmem:[#allocation10 + $0x350] sm:$0xff]  ;;  %v1410_v43 = vld [vmem:[#allocation10 + $0x318] sm:$0xff] }
 0x2d5   :  { %4538 = vmatprep.subr.bf16.mxu0 %v7169_v46  ;;  %4620 = vmatprep.subr.bf16.mxu1 %v7171_v47  ;;  %v6756_v46 = vcombine.low %v1393_v28, %v1401_v30  ;;  %v6758_v47 = vcombine.low %v1394_v31, %v1402_v32  ;;  %v6773_v48 = vcombine.high %v1409_v40, %v1417_v42  ;;  %v1505_v30 = vld [vmem:[#allocation10 + $0x610] sm:$0xff]  ;;  %v1506_v32 = vld [vmem:[#allocation10 + $0x618] sm:$0xff] }
 0x2d6   :  { %v6775_v8 = vcombine.high %v1410_v43, %v1418_v44  ;;  %v6772_v53 = vcombine.low %v1409_v40, %v1417_v42  ;;  %v1513_v31 = vld [vmem:[#allocation10 + $0x650] sm:$0xff] }
 0x2d7   :  { %v1521_v42 = vld [vmem:[#allocation10 + $0x690] sm:$0xff] }
 0x2d8   :  { %4539 = vmatpush1.bf16.msra.mxu0 %v7168_v51  ;;  %4621 = vmatpush1.bf16.msra.mxu1 %v7170_v52  ;;  %v1426_v51 = vld [vmem:[#allocation10 + $0x398] sm:$0xff] }
 0x2d9   :  { %4631 = vmatprep.subr.bf16.mxu0 %v6677_v54  ;;  %4713 = vmatprep.subr.bf16.mxu1 %v6679_v55  ;;  %v1434_v52 = vld [vmem:[#allocation10 + $0x3d8] sm:$0xff]  ;;  %v6774_v54 = vcombine.low %v1410_v43, %v1418_v44  ;;  %v6789_v55 = vcombine.high %v1425_v49, %v1433_v50  ;;  %v1529_v43 = vld [vmem:[#allocation10 + $0x6d0] sm:$0xff] }
 0x2da   :  { %v6791_v24 = vcombine.high %v1426_v51, %v1434_v52  ;;  %v1522_v44 = vld [vmem:[#allocation10 + $0x698] sm:$0xff] }
 0x2db   :  { %4541 = vmatmul.mubr.bf16.vlgmr.msra.gmra.mrb[8].mxu0 %v8350_v59  ;;  %4623 = vmatmul.mubr.bf16.vlgmr.msra.gmra.mrb[8].mxu1 %v8350_v59 }
 0x2dc   :  { %4632 = vmatpush1.bf16.msra.mxu0 %v6676_v58  ;;  %4663 = vmatprep.mubr.bf16.mxu0 %v8335_v35  ;;  %v1450_v58 = vld [vmem:[#allocation10 + $0x458] sm:$0xff] }
 0x2dd   :  { %4714 = vmatpush1.bf16.msra.mxu1 %v6678_v60  ;;  %4745 = vmatprep.mubr.bf16.mxu1 %v8335_v35  ;;  %v6788_v60 = vcombine.low %v1425_v49, %v1433_v50  ;;  %v6807_v62 = vcombine.high %v1442_v57, %v1450_v58  ;;  %v1537_v50 = vld [vmem:[#allocation10 + $0x710] sm:$0xff] }
 0x2de   :  { %4633 = vmatprep.subr.bf16.mxu0 %v6693_v61  ;;  %4715 = vmatprep.subr.bf16.mxu1 %v6695_v41  ;;  %v6790_v61 = vcombine.low %v1426_v51, %v1434_v52  ;;  %v6805_v41 = vcombine.high %v1441_v56, %v1449_v13  ;;  %v1545_v51 = vld [vmem:[#allocation10 + $0x750] sm:$0xff]  ;;  %v1538_v52 = vld [vmem:[#allocation10 + $0x718] sm:$0xff] }
 0x2e0   :  { %4634 = vmatpush1.bf16.msra.mxu0 %v6692_v2  ;;  %v1466_v2 = vld [vmem:[#allocation10 + $0x4d8] sm:$0xff] }
 0x2e1   :  { %4716 = vmatpush1.bf16.msra.mxu1 %v6694_v3  ;;  %4635 = vmatprep.subr.bf16.mxu0 %v6709_v4  ;;  %v6804_v3 = vcombine.low %v1441_v56, %v1449_v13  ;;  %v6806_v4 = vcombine.low %v1442_v57, %v1450_v58  ;;  %v6823_v6 = vcombine.high %v1458_v1, %v1466_v2  ;;  %v1553_v13 = vld [vmem:[#allocation10 + $0x790] sm:$0xff]  ;;  %v1554_v58 = vld [vmem:[#allocation10 + $0x798] sm:$0xff] }
 0x2e2   :  { %4717 = vmatprep.subr.bf16.mxu1 %v6711_v5  ;;  %v6821_v5 = vcombine.high %v1457_v63, %v1465_v0  ;;  %v1561_v57 = vld [vmem:[#allocation10 + $0x7d0] sm:$0xff] }
 0x2e4   :  { %4636 = vmatpush1.bf16.msra.mxu0 %v6708_v11  ;;  %v1482_v11 = vld [vmem:[#allocation10 + $0x558] sm:$0xff] }
 0x2e5   :  { %4718 = vmatpush1.bf16.msra.mxu1 %v6710_v12  ;;  %4637 = vmatprep.subr.bf16.mxu0 %v6725_v14  ;;  %v6820_v12 = vcombine.low %v1457_v63, %v1465_v0  ;;  %v6822_v14 = vcombine.low %v1458_v1, %v1466_v2  ;;  %v6839_v16 = vcombine.high %v1474_v10, %v1482_v11  ;;  %v1569_v0 = vld [vmem:[#allocation10 + $0x810] sm:$0xff]  ;;  %v1570_v2 = vld [vmem:[#allocation10 + $0x818] sm:$0xff] }
 0x2e6   :  { %4719 = vmatprep.subr.bf16.mxu1 %v6727_v15  ;;  %v6837_v15 = vcombine.high %v1473_v7, %v1481_v9  ;;  %v1577_v1 = vld [vmem:[#allocation10 + $0x850] sm:$0xff] }
 0x2e8   :  { %4638 = vmatpush1.bf16.msra.mxu0 %v6724_v20  ;;  %v1498_v20 = vld [vmem:[#allocation10 + $0x5d8] sm:$0xff] }
 0x2e9   :  { %4720 = vmatpush1.bf16.msra.mxu1 %v6726_v21  ;;  %4639 = vmatprep.subr.bf16.mxu0 %v6741_v26  ;;  %v6836_v21 = vcombine.low %v1473_v7, %v1481_v9  ;;  %v6838_v26 = vcombine.low %v1474_v10, %v1482_v11  ;;  %v6855_v28 = vcombine.high %v1490_v19, %v1498_v20  ;;  %v1585_v9 = vld [vmem:[#allocation10 + $0x890] sm:$0xff] }
 0x2ea   :  { %4721 = vmatprep.subr.bf16.mxu1 %v6743_v27  ;;  %v6853_v27 = vcombine.high %v1489_v17, %v1497_v18  ;;  %v1593_v10 = vld [vmem:[#allocation10 + $0x8d0] sm:$0xff]  ;;  %v6932_v11 = vcombine.low %v1569_v0, %v1577_v1 }
 0x2ec   :  { %4640 = vmatpush1.bf16.msra.mxu0 %v6740_v33  ;;  %v1514_v33 = vld [vmem:[#allocation10 + $0x658] sm:$0xff] }
 0x2ed   :  { %4722 = vmatpush1.bf16.msra.mxu1 %v6742_v34  ;;  %4641 = vmatprep.subr.bf16.mxu0 %v6757_v37  ;;  %v6852_v34 = vcombine.low %v1489_v17, %v1497_v18  ;;  %v6854_v37 = vcombine.low %v1490_v19, %v1498_v20  ;;  %v6871_v40 = vcombine.high %v1506_v32, %v1514_v33  ;;  %v1601_v17 = vld [vmem:[#allocation10 + $0x910] sm:$0xff]  ;;  %v1602_v20 = vld [vmem:[#allocation10 + $0x918] sm:$0xff] }
 0x2ee   :  { %4723 = vmatprep.subr.bf16.mxu1 %v6759_v39  ;;  %v6869_v39 = vcombine.high %v1505_v30, %v1513_v31  ;;  %v1609_v18 = vld [vmem:[#allocation10 + $0x950] sm:$0xff] }
 0x2f0   :  { %4642 = vmatpush1.bf16.msra.mxu0 %v6756_v46  ;;  %v1530_v46 = vld [vmem:[#allocation10 + $0x6d8] sm:$0xff] }
 0x2f1   :  { %4724 = vmatpush1.bf16.msra.mxu1 %v6758_v47  ;;  %4643 = vmatprep.subr.bf16.mxu0 %v6773_v48  ;;  %v6868_v47 = vcombine.low %v1505_v30, %v1513_v31  ;;  %v6870_v48 = vcombine.low %v1506_v32, %v1514_v33  ;;  %v6887_v49 = vcombine.high %v1522_v44, %v1530_v46  ;;  %v1617_v31 = vld [vmem:[#allocation10 + $0x990] sm:$0xff]  ;;  %v1618_v33 = vld [vmem:[#allocation10 + $0x998] sm:$0xff] }
 0x2f2   :  { %4725 = vmatprep.subr.bf16.mxu1 %v6775_v8  ;;  %v6885_v8 = vcombine.high %v1521_v42, %v1529_v43  ;;  %v1625_v32 = vld [vmem:[#allocation10 + $0x9d0] sm:$0xff] }
 0x2f4   :  { %4644 = vmatpush1.bf16.msra.mxu0 %v6772_v53  ;;  %v1546_v53 = vld [vmem:[#allocation10 + $0x758] sm:$0xff] }
 0x2f5   :  { %4726 = vmatpush1.bf16.msra.mxu1 %v6774_v54  ;;  %4645 = vmatprep.subr.bf16.mxu0 %v6789_v55  ;;  %v6884_v54 = vcombine.low %v1521_v42, %v1529_v43  ;;  %v6886_v55 = vcombine.low %v1522_v44, %v1530_v46  ;;  %v6903_v56 = vcombine.high %v1538_v52, %v1546_v53  ;;  %v1633_v43 = vld [vmem:[#allocation10 + $0xa10] sm:$0xff]  ;;  %v1634_v46 = vld [vmem:[#allocation10 + $0xa18] sm:$0xff] }
 0x2f6   :  { %4727 = vmatprep.subr.bf16.mxu1 %v6791_v24  ;;  %v6901_v24 = vcombine.high %v1537_v50, %v1545_v51  ;;  %v1641_v44 = vld [vmem:[#allocation10 + $0xa50] sm:$0xff] }
 0x2f8   :  { %4646 = vmatpush1.bf16.msra.mxu0 %v6788_v60  ;;  %v1562_v60 = vld [vmem:[#allocation10 + $0x7d8] sm:$0xff] }
 0x2f9   :  { %4728 = vmatpush1.bf16.msra.mxu1 %v6790_v61  ;;  %4647 = vmatprep.subr.bf16.mxu0 %v6805_v41  ;;  %v6900_v61 = vcombine.low %v1537_v50, %v1545_v51  ;;  %v6902_v41 = vcombine.low %v1538_v52, %v1546_v53  ;;  %v6919_v63 = vcombine.high %v1554_v58, %v1562_v60  ;;  %v1649_v51 = vld [vmem:[#allocation10 + $0xa90] sm:$0xff]  ;;  %v1650_v53 = vld [vmem:[#allocation10 + $0xa98] sm:$0xff] }
 0x2fa   :  { %4729 = vmatprep.subr.bf16.mxu1 %v6807_v62  ;;  %v6917_v62 = vcombine.high %v1553_v13, %v1561_v57  ;;  %v1657_v52 = vld [vmem:[#allocation10 + $0xad0] sm:$0xff] }
 0x2fc   :  { %4648 = vmatpush1.bf16.msra.mxu0 %v6804_v3  ;;  %v1578_v3 = vld [vmem:[#allocation10 + $0x858] sm:$0xff] }
 0x2fd   :  { %4730 = vmatpush1.bf16.msra.mxu1 %v6806_v4  ;;  %4649 = vmatprep.subr.bf16.mxu0 %v6821_v5  ;;  %v6916_v4 = vcombine.low %v1553_v13, %v1561_v57  ;;  %v6918_v5 = vcombine.low %v1554_v58, %v1562_v60  ;;  %v6935_v7 = vcombine.high %v1570_v2, %v1578_v3  ;;  %v1665_v57 = vld [vmem:[#allocation10 + $0xb10] sm:$0xff]  ;;  %v1666_v60 = vld [vmem:[#allocation10 + $0xb18] sm:$0xff] }
 0x2fe   :  { %4731 = vmatprep.subr.bf16.mxu1 %v6823_v6  ;;  %v6933_v6 = vcombine.high %v1569_v0, %v1577_v1  ;;  %v1673_v58 = vld [vmem:[#allocation10 + $0xb50] sm:$0xff] }
 0x2ff   :  { %v1681_v1 = vld [vmem:[#allocation10 + $0xb90] sm:$0xff] }
 0x300   :  { %4650 = vmatpush1.bf16.msra.mxu0 %v6820_v12  ;;  %v1586_v12 = vld [vmem:[#allocation10 + $0x898] sm:$0xff] }
 0x301   :  { %4732 = vmatpush1.bf16.msra.mxu1 %v6822_v14  ;;  %4651 = vmatprep.subr.bf16.mxu0 %v6837_v15  ;;  %v1594_v14 = vld [vmem:[#allocation10 + $0x8d8] sm:$0xff]  ;;  %v6934_v15 = vcombine.low %v1570_v2, %v1578_v3  ;;  %v1689_v2 = vld [vmem:[#allocation10 + $0xbd0] sm:$0xff] }
 0x302   :  { %4733 = vmatprep.subr.bf16.mxu1 %v6839_v16  ;;  %v6949_v16 = vcombine.high %v1585_v9, %v1593_v10  ;;  %v6951_v19 = vcombine.high %v1586_v12, %v1594_v14  ;;  %v1682_v3 = vld [vmem:[#allocation10 + $0xb98] sm:$0xff] }
 0x304   :  { %4652 = vmatpush1.bf16.msra.mxu0 %v6836_v21  ;;  %v1610_v21 = vld [vmem:[#allocation10 + $0x958] sm:$0xff] }
 0x305   :  { %4734 = vmatpush1.bf16.msra.mxu1 %v6838_v26  ;;  %4653 = vmatprep.subr.bf16.mxu0 %v6853_v27  ;;  %v6948_v26 = vcombine.low %v1585_v9, %v1593_v10  ;;  %v6950_v27 = vcombine.low %v1586_v12, %v1594_v14  ;;  %v6967_v30 = vcombine.high %v1602_v20, %v1610_v21  ;;  %v1697_v10 = vld [vmem:[#allocation10 + $0xc10] sm:$0xff]  ;;  %v1698_v12 = vld [vmem:[#allocation10 + $0xc18] sm:$0xff] }
 0x306   :  { %4735 = vmatprep.subr.bf16.mxu1 %v6855_v28  ;;  %v6965_v28 = vcombine.high %v1601_v17, %v1609_v18  ;;  %v1706_v14 = vld [vmem:[#allocation10 + $0xc58] sm:$0xff] }
 0x308   :  { %4654 = vmatpush1.bf16.msra.mxu0 %v6852_v34  ;;  %v1626_v34 = vld [vmem:[#allocation10 + $0x9d8] sm:$0xff] }
 0x309   :  { %4736 = vmatpush1.bf16.msra.mxu1 %v6854_v37  ;;  %4655 = vmatprep.subr.bf16.mxu0 %v6869_v39  ;;  %v6964_v37 = vcombine.low %v1601_v17, %v1609_v18  ;;  %v6966_v39 = vcombine.low %v1602_v20, %v1610_v21  ;;  %v6983_v42 = vcombine.high %v1618_v33, %v1626_v34  ;;  %v1721_v20 = vld [vmem:[#allocation10 + $0xcd0] sm:$0xff]  ;;  %v1714_v21 = vld [vmem:[#allocation10 + $0xc98] sm:$0xff] }
 0x30a   :  { %4737 = vmatprep.subr.bf16.mxu1 %v6871_v40  ;;  %v6981_v40 = vcombine.high %v1617_v31, %v1625_v32  ;;  %v7063_v18 = vcombine.high %v1698_v12, %v1706_v14 }
 0x30c   :  { %4656 = vmatpush1.bf16.msra.mxu0 %v6868_v47  ;;  %v1642_v47 = vld [vmem:[#allocation10 + $0xa58] sm:$0xff] }
 0x30d   :  { %4738 = vmatpush1.bf16.msra.mxu1 %v6870_v48  ;;  %4657 = vmatprep.subr.bf16.mxu0 %v6885_v8  ;;  %v6980_v48 = vcombine.low %v1617_v31, %v1625_v32  ;;  %v6982_v8 = vcombine.low %v1618_v33, %v1626_v34  ;;  %v6999_v50 = vcombine.high %v1634_v46, %v1642_v47  ;;  %v1729_v32 = vld [vmem:[#allocation10 + $0xd10] sm:$0xff]  ;;  %v1730_v34 = vld [vmem:[#allocation10 + $0xd18] sm:$0xff] }
 0x30e   :  { %4739 = vmatprep.subr.bf16.mxu1 %v6887_v49  ;;  %v6997_v49 = vcombine.high %v1633_v43, %v1641_v44  ;;  %v1737_v33 = vld [vmem:[#allocation10 + $0xd50] sm:$0xff] }
 0x310   :  { %4658 = vmatpush1.bf16.msra.mxu0 %v6884_v54  ;;  %v1658_v54 = vld [vmem:[#allocation10 + $0xad8] sm:$0xff] }
 0x311   :  { %4740 = vmatpush1.bf16.msra.mxu1 %v6886_v55  ;;  %4659 = vmatprep.subr.bf16.mxu0 %v6901_v24  ;;  %v6996_v55 = vcombine.low %v1633_v43, %v1641_v44  ;;  %v6998_v24 = vcombine.low %v1634_v46, %v1642_v47  ;;  %v7015_v13 = vcombine.high %v1650_v53, %v1658_v54  ;;  %v1745_v44 = vld [vmem:[#allocation10 + $0xd90] sm:$0xff]  ;;  %v1746_v47 = vld [vmem:[#allocation10 + $0xd98] sm:$0xff] }
 0x312   :  { %4741 = vmatprep.subr.bf16.mxu1 %v6903_v56  ;;  %v7013_v56 = vcombine.high %v1649_v51, %v1657_v52  ;;  %v1753_v46 = vld [vmem:[#allocation10 + $0xdd0] sm:$0xff] }
 0x314   :  { %4660 = vmatpush1.bf16.msra.mxu0 %v6900_v61  ;;  %v1674_v61 = vld [vmem:[#allocation10 + $0xb58] sm:$0xff] }
 0x315   :  { %4742 = vmatpush1.bf16.msra.mxu1 %v6902_v41  ;;  %4661 = vmatprep.subr.bf16.mxu0 %v6917_v62  ;;  %v7012_v41 = vcombine.low %v1649_v51, %v1657_v52  ;;  %v7014_v62 = vcombine.low %v1650_v53, %v1658_v54  ;;  %v7031_v0 = vcombine.high %v1666_v60, %v1674_v61  ;;  %v1761_v52 = vld [vmem:[#allocation10 + $0xe10] sm:$0xff]  ;;  %v1762_v54 = vld [vmem:[#allocation10 + $0xe18] sm:$0xff] }
 0x316   :  { %4743 = vmatprep.subr.bf16.mxu1 %v6919_v63  ;;  %v7029_v63 = vcombine.high %v1665_v57, %v1673_v58  ;;  %v1769_v53 = vld [vmem:[#allocation10 + $0xe50] sm:$0xff] }
 0x318   :  { %4662 = vmatpush1.bf16.msra.mxu0 %v6916_v4  ;;  %v1690_v4 = vld [vmem:[#allocation10 + $0xbd8] sm:$0xff] }
 0x319   :  { %4744 = vmatpush1.bf16.msra.mxu1 %v6918_v5  ;;  %4672 = vmatprep.subr.bf16.mxu0 %v6933_v6  ;;  %v7028_v5 = vcombine.low %v1665_v57, %v1673_v58  ;;  %v7030_v6 = vcombine.low %v1666_v60, %v1674_v61  ;;  %v7047_v9 = vcombine.high %v1682_v3, %v1690_v4  ;;  %v1777_v58 = vld [vmem:[#allocation10 + $0xe90] sm:$0xff]  ;;  %v1778_v61 = vld [vmem:[#allocation10 + $0xe98] sm:$0xff] }
 0x31a   :  { %4754 = vmatprep.subr.bf16.mxu1 %v6935_v7  ;;  %v7045_v7 = vcombine.high %v1681_v1, %v1689_v2  ;;  %v1785_v60 = vld [vmem:[#allocation10 + $0xed0] sm:$0xff] }
 0x31b   :  { %4664 = vmatmul.mubr.bf16.vlgmr.msra.gmra.mrb[12].mxu0 %v8337_v36 }
 0x31c   :  { %4746 = vmatmul.mubr.bf16.vlgmr.msra.gmra.mrb[12].mxu1 %v8337_v36  ;;  %4673 = vmatpush1.bf16.msra.mxu0 %v6932_v11  ;;  %v1705_v11 = vld [vmem:[#allocation10 + $0xc50] sm:$0xff] }
 0x31d   :  { %4704 = vmatprep.mubr.bf16.mxu0 %v8341_v45  ;;  %4755 = vmatpush1.bf16.msra.mxu1 %v6934_v15  ;;  %v7044_v15 = vcombine.low %v1681_v1, %v1689_v2  ;;  %v7061_v17 = vcombine.high %v1697_v10, %v1705_v11  ;;  %v1793_v2 = vld [vmem:[#allocation10 + $0xf10] sm:$0xff] }
 0x31e   :  { %4786 = vmatprep.mubr.bf16.mxu1 %v8341_v45  ;;  %4674 = vmatprep.subr.bf16.mxu0 %v6949_v16  ;;  %v7046_v16 = vcombine.low %v1682_v3, %v1690_v4  ;;  %v1801_v3 = vld [vmem:[#allocation10 + $0xf50] sm:$0xff]  ;;  %v1794_v4 = vld [vmem:[#allocation10 + $0xf18] sm:$0xff] }
 0x31f   :  { %4756 = vmatprep.subr.bf16.mxu1 %v6951_v19  ;;  %v1713_v19 = vld [vmem:[#allocation10 + $0xc90] sm:$0xff] }
 0x320   :  { %4675 = vmatpush1.bf16.msra.mxu0 %v6948_v26  ;;  %v1722_v26 = vld [vmem:[#allocation10 + $0xcd8] sm:$0xff] }
 0x321   :  { %4757 = vmatpush1.bf16.msra.mxu1 %v6950_v27  ;;  %4676 = vmatprep.subr.bf16.mxu0 %v6965_v28  ;;  %v7060_v27 = vcombine.low %v1697_v10, %v1705_v11  ;;  %v7062_v28 = vcombine.low %v1698_v12, %v1706_v14  ;;  %v7079_v31 = vcombine.high %v1714_v21, %v1722_v26  ;;  %v1809_v11 = vld [vmem:[#allocation10 + $0xf90] sm:$0xff]  ;;  %v1810_v14 = vld [vmem:[#allocation10 + $0xf98] sm:$0xff] }
 0x322   :  { %4758 = vmatprep.subr.bf16.mxu1 %v6967_v30  ;;  %v7077_v30 = vcombine.high %v1713_v19, %v1721_v20  ;;  %v1817_v12 = vld [vmem:[#allocation10 + $0xfd0] sm:$0xff] }
 0x324   :  { %4677 = vmatpush1.bf16.msra.mxu0 %v6964_v37  ;;  %v1738_v37 = vld [vmem:[#allocation10 + $0xd58] sm:$0xff] }
 0x325   :  { %4759 = vmatpush1.bf16.msra.mxu1 %v6966_v39  ;;  %4678 = vmatprep.subr.bf16.mxu0 %v6981_v40  ;;  %v7076_v39 = vcombine.low %v1713_v19, %v1721_v20  ;;  %v7078_v40 = vcombine.low %v1714_v21, %v1722_v26  ;;  %v7095_v43 = vcombine.high %v1730_v34, %v1738_v37  ;;  %v1315_v20 = vld [vmem:[#allocation10 + $0x20] sm:$0xff]  ;;  %v1316_v26 = vld [vmem:[#allocation10 + $0x28] sm:$0xff] }
 0x326   :  { %4760 = vmatprep.subr.bf16.mxu1 %v6983_v42  ;;  %v7093_v42 = vcombine.high %v1729_v32, %v1737_v33  ;;  %v1323_v21 = vld [vmem:[#allocation10 + $0x60] sm:$0xff] }
 0x328   :  { %4679 = vmatpush1.bf16.msra.mxu0 %v6980_v48  ;;  %v1754_v48 = vld [vmem:[#allocation10 + $0xdd8] sm:$0xff] }
 0x329   :  { %4761 = vmatpush1.bf16.msra.mxu1 %v6982_v8  ;;  %4680 = vmatprep.subr.bf16.mxu0 %v6997_v49  ;;  %v7092_v8 = vcombine.low %v1729_v32, %v1737_v33  ;;  %v7094_v49 = vcombine.low %v1730_v34, %v1738_v37  ;;  %v7111_v51 = vcombine.high %v1746_v47, %v1754_v48  ;;  %v1331_v33 = vld [vmem:[#allocation10 + $0xa0] sm:$0xff] }
 0x32a   :  { %4762 = vmatprep.subr.bf16.mxu1 %v6999_v50  ;;  %v7109_v50 = vcombine.high %v1745_v44, %v1753_v46  ;;  %v1339_v34 = vld [vmem:[#allocation10 + $0xe0] sm:$0xff]  ;;  %v6680_v37 = vcombine.low %v1315_v20, %v1323_v21 }
 0x32c   :  { %4681 = vmatpush1.bf16.msra.mxu0 %v6996_v55  ;;  %v1770_v55 = vld [vmem:[#allocation10 + $0xe58] sm:$0xff] }
 0x32d   :  { %4763 = vmatpush1.bf16.msra.mxu1 %v6998_v24  ;;  %4682 = vmatprep.subr.bf16.mxu0 %v7013_v56  ;;  %v7108_v24 = vcombine.low %v1745_v44, %v1753_v46  ;;  %v7110_v56 = vcombine.low %v1746_v47, %v1754_v48  ;;  %v7127_v57 = vcombine.high %v1762_v54, %v1770_v55  ;;  %v1347_v44 = vld [vmem:[#allocation10 + $0x120] sm:$0xff]  ;;  %v1348_v48 = vld [vmem:[#allocation10 + $0x128] sm:$0xff] }
 0x32e   :  { %4764 = vmatprep.subr.bf16.mxu1 %v7015_v13  ;;  %v7125_v13 = vcombine.high %v1761_v52, %v1769_v53  ;;  %v1355_v46 = vld [vmem:[#allocation10 + $0x160] sm:$0xff] }
 0x330   :  { %4683 = vmatpush1.bf16.msra.mxu0 %v7012_v41  ;;  %v1786_v41 = vld [vmem:[#allocation10 + $0xed8] sm:$0xff] }
 0x331   :  { %4765 = vmatpush1.bf16.msra.mxu1 %v7014_v62  ;;  %4684 = vmatprep.subr.bf16.mxu0 %v7029_v63  ;;  %v7124_v62 = vcombine.low %v1761_v52, %v1769_v53  ;;  %v7126_v63 = vcombine.low %v1762_v54, %v1770_v55  ;;  %v7143_v1 = vcombine.high %v1778_v61, %v1786_v41  ;;  %v1363_v53 = vld [vmem:[#allocation10 + $0x1a0] sm:$0xff]  ;;  %v1364_v55 = vld [vmem:[#allocation10 + $0x1a8] sm:$0xff] }
 0x332   :  { %4766 = vmatprep.subr.bf16.mxu1 %v7031_v0  ;;  %v7141_v0 = vcombine.high %v1777_v58, %v1785_v60  ;;  %v1371_v54 = vld [vmem:[#allocation10 + $0x1e0] sm:$0xff] }
 0x334   :  { %4685 = vmatpush1.bf16.msra.mxu0 %v7028_v5  ;;  %v1802_v5 = vld [vmem:[#allocation10 + $0xf58] sm:$0xff] }
 0x335   :  { %4767 = vmatpush1.bf16.msra.mxu1 %v7030_v6  ;;  %4686 = vmatprep.subr.bf16.mxu0 %v7045_v7  ;;  %v7140_v6 = vcombine.low %v1777_v58, %v1785_v60  ;;  %v7142_v7 = vcombine.low %v1778_v61, %v1786_v41  ;;  %v7159_v10 = vcombine.high %v1794_v4, %v1802_v5  ;;  %v1379_v60 = vld [vmem:[#allocation10 + $0x220] sm:$0xff]  ;;  %v1380_v41 = vld [vmem:[#allocation10 + $0x228] sm:$0xff] }
 0x336   :  { %4768 = vmatprep.subr.bf16.mxu1 %v7047_v9  ;;  %v7157_v9 = vcombine.high %v1793_v2, %v1801_v3  ;;  %v1387_v61 = vld [vmem:[#allocation10 + $0x260] sm:$0xff] }
 0x338   :  { %4687 = vmatpush1.bf16.msra.mxu0 %v7044_v15  ;;  %v1818_v15 = vld [vmem:[#allocation10 + $0xfd8] sm:$0xff] }
 0x339   :  { %4769 = vmatpush1.bf16.msra.mxu1 %v7046_v16  ;;  %4688 = vmatprep.subr.bf16.mxu0 %v7061_v17  ;;  %v7156_v16 = vcombine.low %v1793_v2, %v1801_v3  ;;  %v7158_v17 = vcombine.low %v1794_v4, %v1802_v5  ;;  %v7175_v19 = vcombine.high %v1810_v14, %v1818_v15  ;;  %v1395_v3 = vld [vmem:[#allocation10 + $0x2a0] sm:$0xff]  ;;  %v1396_v5 = vld [vmem:[#allocation10 + $0x2a8] sm:$0xff] }
 0x33a   :  { %4770 = vmatprep.subr.bf16.mxu1 %v7063_v18  ;;  %v7173_v18 = vcombine.high %v1809_v11, %v1817_v12  ;;  %v1403_v4 = vld [vmem:[#allocation10 + $0x2e0] sm:$0xff] }
 0x33c   :  { %4689 = vmatpush1.bf16.msra.mxu0 %v7060_v27  ;;  %v1324_v27 = vld [vmem:[#allocation10 + $0x68] sm:$0xff] }
 0x33d   :  { %4771 = vmatpush1.bf16.msra.mxu1 %v7062_v28  ;;  %4690 = vmatprep.subr.bf16.mxu0 %v7077_v30  ;;  %v7172_v28 = vcombine.low %v1809_v11, %v1817_v12  ;;  %v7174_v30 = vcombine.low %v1810_v14, %v1818_v15  ;;  %v6683_v32 = vcombine.high %v1316_v26, %v1324_v27  ;;  %v1411_v12 = vld [vmem:[#allocation10 + $0x320] sm:$0xff]  ;;  %v1412_v15 = vld [vmem:[#allocation10 + $0x328] sm:$0xff] }
 0x33e   :  { %4772 = vmatprep.subr.bf16.mxu1 %v7079_v31  ;;  %v6681_v31 = vcombine.high %v1315_v20, %v1323_v21  ;;  %v1419_v14 = vld [vmem:[#allocation10 + $0x360] sm:$0xff] }
 0x33f   :  { %v1427_v21 = vld [vmem:[#allocation10 + $0x3a0] sm:$0xff] }
 0x340   :  { %4691 = vmatpush1.bf16.msra.mxu0 %v7076_v39  ;;  %v1332_v39 = vld [vmem:[#allocation10 + $0xa8] sm:$0xff] }
 0x341   :  { %4773 = vmatpush1.bf16.msra.mxu1 %v7078_v40  ;;  %4692 = vmatprep.subr.bf16.mxu0 %v7093_v42  ;;  %v1340_v40 = vld [vmem:[#allocation10 + $0xe8] sm:$0xff]  ;;  %v6682_v42 = vcombine.low %v1316_v26, %v1324_v27  ;;  %v1435_v26 = vld [vmem:[#allocation10 + $0x3e0] sm:$0xff] }
 0x342   :  { %4774 = vmatprep.subr.bf16.mxu1 %v7095_v43  ;;  %v6697_v43 = vcombine.high %v1331_v33, %v1339_v34  ;;  %v6699_v47 = vcombine.high %v1332_v39, %v1340_v40  ;;  %v1428_v27 = vld [vmem:[#allocation10 + $0x3a8] sm:$0xff] }
 0x344   :  { %4693 = vmatpush1.bf16.msra.mxu0 %v7092_v8  ;;  %v1356_v8 = vld [vmem:[#allocation10 + $0x168] sm:$0xff] }
 0x345   :  { %4775 = vmatpush1.bf16.msra.mxu1 %v7094_v49  ;;  %4694 = vmatprep.subr.bf16.mxu0 %v7109_v50  ;;  %v6696_v49 = vcombine.low %v1331_v33, %v1339_v34  ;;  %v6698_v50 = vcombine.low %v1332_v39, %v1340_v40  ;;  %v6715_v52 = vcombine.high %v1348_v48, %v1356_v8  ;;  %v1443_v34 = vld [vmem:[#allocation10 + $0x420] sm:$0xff]  ;;  %v1444_v39 = vld [vmem:[#allocation10 + $0x428] sm:$0xff] }
 0x346   :  { %4776 = vmatprep.subr.bf16.mxu1 %v7111_v51  ;;  %v6713_v51 = vcombine.high %v1347_v44, %v1355_v46  ;;  %v1452_v40 = vld [vmem:[#allocation10 + $0x468] sm:$0xff] }
 0x348   :  { %4695 = vmatpush1.bf16.msra.mxu0 %v7108_v24  ;;  %v1372_v24 = vld [vmem:[#allocation10 + $0x1e8] sm:$0xff] }
 0x349   :  { %4777 = vmatpush1.bf16.msra.mxu1 %v7110_v56  ;;  %4696 = vmatprep.subr.bf16.mxu0 %v7125_v13  ;;  %v6712_v56 = vcombine.low %v1347_v44, %v1355_v46  ;;  %v6714_v13 = vcombine.low %v1348_v48, %v1356_v8  ;;  %v6731_v58 = vcombine.high %v1364_v55, %v1372_v24  ;;  %v1467_v48 = vld [vmem:[#allocation10 + $0x4e0] sm:$0xff]  ;;  %v1460_v8 = vld [vmem:[#allocation10 + $0x4a8] sm:$0xff] }
 0x34a   :  { %4778 = vmatprep.subr.bf16.mxu1 %v7127_v57  ;;  %v6729_v57 = vcombine.high %v1363_v53, %v1371_v54  ;;  %v6811_v46 = vcombine.high %v1444_v39, %v1452_v40 }
 0x34c   :  { %4697 = vmatpush1.bf16.msra.mxu0 %v7124_v62  ;;  %v1388_v62 = vld [vmem:[#allocation10 + $0x268] sm:$0xff] }
 0x34d   :  { %4779 = vmatpush1.bf16.msra.mxu1 %v7126_v63  ;;  %4698 = vmatprep.subr.bf16.mxu0 %v7141_v0  ;;  %v6728_v63 = vcombine.low %v1363_v53, %v1371_v54  ;;  %v6730_v0 = vcombine.low %v1364_v55, %v1372_v24  ;;  %v6747_v2 = vcombine.high %v1380_v41, %v1388_v62  ;;  %v1475_v54 = vld [vmem:[#allocation10 + $0x520] sm:$0xff]  ;;  %v1476_v24 = vld [vmem:[#allocation10 + $0x528] sm:$0xff] }
 0x34e   :  { %4780 = vmatprep.subr.bf16.mxu1 %v7143_v1  ;;  %v6745_v1 = vcombine.high %v1379_v60, %v1387_v61  ;;  %v1483_v55 = vld [vmem:[#allocation10 + $0x560] sm:$0xff] }
 0x350   :  { %4699 = vmatpush1.bf16.msra.mxu0 %v7140_v6  ;;  %v1404_v6 = vld [vmem:[#allocation10 + $0x2e8] sm:$0xff] }
 0x351   :  { %4781 = vmatpush1.bf16.msra.mxu1 %v7142_v7  ;;  %4700 = vmatprep.subr.bf16.mxu0 %v7157_v9  ;;  %v6744_v7 = vcombine.low %v1379_v60, %v1387_v61  ;;  %v6746_v9 = vcombine.low %v1380_v41, %v1388_v62  ;;  %v6763_v11 = vcombine.high %v1396_v5, %v1404_v6  ;;  %v1491_v61 = vld [vmem:[#allocation10 + $0x5a0] sm:$0xff]  ;;  %v1492_v62 = vld [vmem:[#allocation10 + $0x5a8] sm:$0xff] }
 0x352   :  { %4782 = vmatprep.subr.bf16.mxu1 %v7159_v10  ;;  %v6761_v10 = vcombine.high %v1395_v3, %v1403_v4  ;;  %v1499_v41 = vld [vmem:[#allocation10 + $0x5e0] sm:$0xff] }
 0x354   :  { %4701 = vmatpush1.bf16.msra.mxu0 %v7156_v16  ;;  %v1420_v16 = vld [vmem:[#allocation10 + $0x368] sm:$0xff] }
 0x355   :  { %4783 = vmatpush1.bf16.msra.mxu1 %v7158_v17  ;;  %4702 = vmatprep.subr.bf16.mxu0 %v7173_v18  ;;  %v6760_v17 = vcombine.low %v1395_v3, %v1403_v4  ;;  %v6762_v18 = vcombine.low %v1396_v5, %v1404_v6  ;;  %v6779_v20 = vcombine.high %v1412_v15, %v1420_v16  ;;  %v1507_v4 = vld [vmem:[#allocation10 + $0x620] sm:$0xff]  ;;  %v1508_v6 = vld [vmem:[#allocation10 + $0x628] sm:$0xff] }
 0x356   :  { %4784 = vmatprep.subr.bf16.mxu1 %v7175_v19  ;;  %v6777_v19 = vcombine.high %v1411_v12, %v1419_v14  ;;  %v1515_v5 = vld [vmem:[#allocation10 + $0x660] sm:$0xff] }
 0x358   :  { %4703 = vmatpush1.bf16.msra.mxu0 %v7172_v28  ;;  %v1436_v28 = vld [vmem:[#allocation10 + $0x3e8] sm:$0xff] }
 0x359   :  { %4785 = vmatpush1.bf16.msra.mxu1 %v7174_v30  ;;  %4795 = vmatprep.subr.bf16.mxu0 %v6681_v31  ;;  %v6776_v30 = vcombine.low %v1411_v12, %v1419_v14  ;;  %v6778_v31 = vcombine.low %v1412_v15, %v1420_v16  ;;  %v6795_v33 = vcombine.high %v1428_v27, %v1436_v28  ;;  %v1523_v14 = vld [vmem:[#allocation10 + $0x6a0] sm:$0xff]  ;;  %v1524_v16 = vld [vmem:[#allocation10 + $0x6a8] sm:$0xff] }
 0x35a   :  { %4877 = vmatprep.subr.bf16.mxu1 %v6683_v32  ;;  %v6793_v32 = vcombine.high %v1427_v21, %v1435_v26  ;;  %v1531_v15 = vld [vmem:[#allocation10 + $0x6e0] sm:$0xff] }
 0x35b   :  { %4705 = vmatmul.mubr.bf16.vlgmr.msra.gmra.mrb[12].mxu0 %v8350_v59 }
 0x35c   :  { %4787 = vmatmul.mubr.bf16.vlgmr.msra.gmra.mrb[12].mxu1 %v8350_v59  ;;  %4796 = vmatpush1.bf16.msra.mxu0 %v6680_v37  ;;  %v1451_v37 = vld [vmem:[#allocation10 + $0x460] sm:$0xff] }
 0x35d   :  { %4827 = vmatprep.mubr.bf16.mxu0 %v8335_v35  ;;  %4878 = vmatpush1.bf16.msra.mxu1 %v6682_v42  ;;  %v6792_v42 = vcombine.low %v1427_v21, %v1435_v26  ;;  %v6809_v44 = vcombine.high %v1443_v34, %v1451_v37  ;;  %v1539_v26 = vld [vmem:[#allocation10 + $0x720] sm:$0xff] }
 0x35e   :  { %4909 = vmatprep.mubr.bf16.mxu1 %v8335_v35  ;;  %4797 = vmatprep.subr.bf16.mxu0 %v6697_v43  ;;  %v6794_v43 = vcombine.low %v1428_v27, %v1436_v28  ;;  %v1547_v27 = vld [vmem:[#allocation10 + $0x760] sm:$0xff]  ;;  %v1540_v28 = vld [vmem:[#allocation10 + $0x728] sm:$0xff] }
 0x35f   :  { %4879 = vmatprep.subr.bf16.mxu1 %v6699_v47  ;;  %v1459_v47 = vld [vmem:[#allocation10 + $0x4a0] sm:$0xff] }
 0x360   :  { %4798 = vmatpush1.bf16.msra.mxu0 %v6696_v49  ;;  %v1468_v49 = vld [vmem:[#allocation10 + $0x4e8] sm:$0xff] }
 0x361   :  { %4880 = vmatpush1.bf16.msra.mxu1 %v6698_v50  ;;  %4799 = vmatprep.subr.bf16.mxu0 %v6713_v51  ;;  %v6808_v50 = vcombine.low %v1443_v34, %v1451_v37  ;;  %v6810_v51 = vcombine.low %v1444_v39, %v1452_v40  ;;  %v6827_v53 = vcombine.high %v1460_v8, %v1468_v49  ;;  %v1555_v37 = vld [vmem:[#allocation10 + $0x7a0] sm:$0xff]  ;;  %v1556_v40 = vld [vmem:[#allocation10 + $0x7a8] sm:$0xff] }
 0x362   :  { %4881 = vmatprep.subr.bf16.mxu1 %v6715_v52  ;;  %v6825_v52 = vcombine.high %v1459_v47, %v1467_v48  ;;  %v1563_v39 = vld [vmem:[#allocation10 + $0x7e0] sm:$0xff] }
 0x364   :  { %4800 = vmatpush1.bf16.msra.mxu0 %v6712_v56  ;;  %v1484_v56 = vld [vmem:[#allocation10 + $0x568] sm:$0xff] }
 0x365   :  { %4882 = vmatpush1.bf16.msra.mxu1 %v6714_v13  ;;  %4801 = vmatprep.subr.bf16.mxu0 %v6729_v57  ;;  %v6824_v13 = vcombine.low %v1459_v47, %v1467_v48  ;;  %v6826_v57 = vcombine.low %v1460_v8, %v1468_v49  ;;  %v6843_v60 = vcombine.high %v1476_v24, %v1484_v56  ;;  %v1571_v48 = vld [vmem:[#allocation10 + $0x820] sm:$0xff]  ;;  %v1572_v49 = vld [vmem:[#allocation10 + $0x828] sm:$0xff] }
 0x366   :  { %4883 = vmatprep.subr.bf16.mxu1 %v6731_v58  ;;  %v6841_v58 = vcombine.high %v1475_v54, %v1483_v55  ;;  %v1579_v8 = vld [vmem:[#allocation10 + $0x860] sm:$0xff] }
 0x368   :  { %4802 = vmatpush1.bf16.msra.mxu0 %v6728_v63  ;;  %v1500_v63 = vld [vmem:[#allocation10 + $0x5e8] sm:$0xff] }
 0x369   :  { %4884 = vmatpush1.bf16.msra.mxu1 %v6730_v0  ;;  %4803 = vmatprep.subr.bf16.mxu0 %v6745_v1  ;;  %v6840_v0 = vcombine.low %v1475_v54, %v1483_v55  ;;  %v6842_v1 = vcombine.low %v1476_v24, %v1484_v56  ;;  %v6859_v3 = vcombine.high %v1492_v62, %v1500_v63  ;;  %v1587_v55 = vld [vmem:[#allocation10 + $0x8a0] sm:$0xff] }
 0x36a   :  { %4885 = vmatprep.subr.bf16.mxu1 %v6747_v2  ;;  %v6857_v2 = vcombine.high %v1491_v61, %v1499_v41  ;;  %v1595_v24 = vld [vmem:[#allocation10 + $0x8e0] sm:$0xff]  ;;  %v6936_v56 = vcombine.low %v1571_v48, %v1579_v8 }
 0x36c   :  { %4804 = vmatpush1.bf16.msra.mxu0 %v6744_v7  ;;  %v1516_v7 = vld [vmem:[#allocation10 + $0x668] sm:$0xff] }
 0x36d   :  { %4886 = vmatpush1.bf16.msra.mxu1 %v6746_v9  ;;  %4805 = vmatprep.subr.bf16.mxu0 %v6761_v10  ;;  %v6856_v9 = vcombine.low %v1491_v61, %v1499_v41  ;;  %v6858_v10 = vcombine.low %v1492_v62, %v1500_v63  ;;  %v6875_v12 = vcombine.high %v1508_v6, %v1516_v7  ;;  %v1603_v61 = vld [vmem:[#allocation10 + $0x920] sm:$0xff]  ;;  %v1604_v63 = vld [vmem:[#allocation10 + $0x928] sm:$0xff] }
 0x36e   :  { %4887 = vmatprep.subr.bf16.mxu1 %v6763_v11  ;;  %v6873_v11 = vcombine.high %v1507_v4, %v1515_v5  ;;  %v1611_v41 = vld [vmem:[#allocation10 + $0x960] sm:$0xff] }
 0x370   :  { %4806 = vmatpush1.bf16.msra.mxu0 %v6760_v17  ;;  %v1532_v17 = vld [vmem:[#allocation10 + $0x6e8] sm:$0xff] }
 0x371   :  { %4888 = vmatpush1.bf16.msra.mxu1 %v6762_v18  ;;  %4807 = vmatprep.subr.bf16.mxu0 %v6777_v19  ;;  %v6872_v18 = vcombine.low %v1507_v4, %v1515_v5  ;;  %v6874_v19 = vcombine.low %v1508_v6, %v1516_v7  ;;  %v6891_v21 = vcombine.high %v1524_v16, %v1532_v17  ;;  %v1619_v5 = vld [vmem:[#allocation10 + $0x9a0] sm:$0xff]  ;;  %v1620_v7 = vld [vmem:[#allocation10 + $0x9a8] sm:$0xff] }
 0x372   :  { %4889 = vmatprep.subr.bf16.mxu1 %v6779_v20  ;;  %v6889_v20 = vcombine.high %v1523_v14, %v1531_v15  ;;  %v1627_v6 = vld [vmem:[#allocation10 + $0x9e0] sm:$0xff] }
 0x374   :  { %4808 = vmatpush1.bf16.msra.mxu0 %v6776_v30  ;;  %v1548_v30 = vld [vmem:[#allocation10 + $0x768] sm:$0xff] }
 0x375   :  { %4890 = vmatpush1.bf16.msra.mxu1 %v6778_v31  ;;  %4809 = vmatprep.subr.bf16.mxu0 %v6793_v32  ;;  %v6888_v31 = vcombine.low %v1523_v14, %v1531_v15  ;;  %v6890_v32 = vcombine.low %v1524_v16, %v1532_v17  ;;  %v6907_v34 = vcombine.high %v1540_v28, %v1548_v30  ;;  %v1635_v15 = vld [vmem:[#allocation10 + $0xa20] sm:$0xff]  ;;  %v1636_v17 = vld [vmem:[#allocation10 + $0xa28] sm:$0xff] }
 0x376   :  { %4891 = vmatprep.subr.bf16.mxu1 %v6795_v33  ;;  %v6905_v33 = vcombine.high %v1539_v26, %v1547_v27  ;;  %v1643_v16 = vld [vmem:[#allocation10 + $0xa60] sm:$0xff] }
 0x378   :  { %4810 = vmatpush1.bf16.msra.mxu0 %v6792_v42  ;;  %v1564_v42 = vld [vmem:[#allocation10 + $0x7e8] sm:$0xff] }
 0x379   :  { %4892 = vmatpush1.bf16.msra.mxu1 %v6794_v43  ;;  %4811 = vmatprep.subr.bf16.mxu0 %v6809_v44  ;;  %v6904_v43 = vcombine.low %v1539_v26, %v1547_v27  ;;  %v6906_v44 = vcombine.low %v1540_v28, %v1548_v30  ;;  %v6923_v47 = vcombine.high %v1556_v40, %v1564_v42  ;;  %v1651_v27 = vld [vmem:[#allocation10 + $0xaa0] sm:$0xff]  ;;  %v1652_v30 = vld [vmem:[#allocation10 + $0xaa8] sm:$0xff] }
 0x37a   :  { %4893 = vmatprep.subr.bf16.mxu1 %v6811_v46  ;;  %v6921_v46 = vcombine.high %v1555_v37, %v1563_v39  ;;  %v1659_v28 = vld [vmem:[#allocation10 + $0xae0] sm:$0xff] }
 0x37c   :  { %4812 = vmatpush1.bf16.msra.mxu0 %v6808_v50  ;;  %v1580_v50 = vld [vmem:[#allocation10 + $0x868] sm:$0xff] }
 0x37d   :  { %4894 = vmatpush1.bf16.msra.mxu1 %v6810_v51  ;;  %4813 = vmatprep.subr.bf16.mxu0 %v6825_v52  ;;  %v6920_v51 = vcombine.low %v1555_v37, %v1563_v39  ;;  %v6922_v52 = vcombine.low %v1556_v40, %v1564_v42  ;;  %v6939_v54 = vcombine.high %v1572_v49, %v1580_v50  ;;  %v1667_v39 = vld [vmem:[#allocation10 + $0xb20] sm:$0xff]  ;;  %v1668_v42 = vld [vmem:[#allocation10 + $0xb28] sm:$0xff] }
 0x37e   :  { %4895 = vmatprep.subr.bf16.mxu1 %v6827_v53  ;;  %v6937_v53 = vcombine.high %v1571_v48, %v1579_v8  ;;  %v1675_v40 = vld [vmem:[#allocation10 + $0xb60] sm:$0xff] }
 0x380   :  { %4814 = vmatpush1.bf16.msra.mxu0 %v6824_v13  ;;  %v1588_v13 = vld [vmem:[#allocation10 + $0x8a8] sm:$0xff] }
 0x381   :  { %4896 = vmatpush1.bf16.msra.mxu1 %v6826_v57  ;;  %4815 = vmatprep.subr.bf16.mxu0 %v6841_v58  ;;  %v1596_v57 = vld [vmem:[#allocation10 + $0x8e8] sm:$0xff]  ;;  %v6938_v58 = vcombine.low %v1572_v49, %v1580_v50  ;;  %v1683_v50 = vld [vmem:[#allocation10 + $0xba0] sm:$0xff] }
 0x382   :  { %4897 = vmatprep.subr.bf16.mxu1 %v6843_v60  ;;  %v6953_v60 = vcombine.high %v1587_v55, %v1595_v24  ;;  %v6955_v62 = vcombine.high %v1588_v13, %v1596_v57 }
 0x384   :  { %4816 = vmatpush1.bf16.msra.mxu0 %v6840_v0  ;;  %v1612_v0 = vld [vmem:[#allocation10 + $0x968] sm:$0xff] }
 0x385   :  { %4898 = vmatpush1.bf16.msra.mxu1 %v6842_v1  ;;  %4817 = vmatprep.subr.bf16.mxu0 %v6857_v2  ;;  %v6952_v1 = vcombine.low %v1587_v55, %v1595_v24  ;;  %v6954_v2 = vcombine.low %v1588_v13, %v1596_v57  ;;  %v6971_v4 = vcombine.high %v1604_v63, %v1612_v0  ;;  %v1692_v55 = vld [vmem:[#allocation10 + $0xbe8] sm:$0xff] }
 0x386   :  { %4899 = vmatprep.subr.bf16.mxu1 %v6859_v3  ;;  %v6969_v3 = vcombine.high %v1603_v61, %v1611_v41  ;;  %v7032_v13 = vcombine.low %v1667_v39, %v1675_v40 }
 0x388   :  { %4818 = vmatpush1.bf16.msra.mxu0 %v6856_v9  ;;  %v1628_v9 = vld [vmem:[#allocation10 + $0x9e8] sm:$0xff] }
 0x389   :  { %4900 = vmatpush1.bf16.msra.mxu1 %v6858_v10  ;;  %4819 = vmatprep.subr.bf16.mxu0 %v6873_v11  ;;  %v6968_v10 = vcombine.low %v1603_v61, %v1611_v41  ;;  %v6970_v11 = vcombine.low %v1604_v63, %v1612_v0  ;;  %v6987_v14 = vcombine.high %v1620_v7, %v1628_v9  ;;  %v1707_v63 = vld [vmem:[#allocation10 + $0xc60] sm:$0xff]  ;;  %v1700_v0 = vld [vmem:[#allocation10 + $0xc28] sm:$0xff] }
 0x38a   :  { %4901 = vmatprep.subr.bf16.mxu1 %v6875_v12  ;;  %v6985_v12 = vcombine.high %v1619_v5, %v1627_v6 }
 0x38c   :  { %4820 = vmatpush1.bf16.msra.mxu0 %v6872_v18  ;;  %v1644_v18 = vld [vmem:[#allocation10 + $0xa68] sm:$0xff] }
 0x38d   :  { %4902 = vmatpush1.bf16.msra.mxu1 %v6874_v19  ;;  %4821 = vmatprep.subr.bf16.mxu0 %v6889_v20  ;;  %v6984_v19 = vcombine.low %v1619_v5, %v1627_v6  ;;  %v6986_v20 = vcombine.low %v1620_v7, %v1628_v9  ;;  %v7003_v26 = vcombine.high %v1636_v17, %v1644_v18  ;;  %v1715_v6 = vld [vmem:[#allocation10 + $0xca0] sm:$0xff]  ;;  %v1716_v9 = vld [vmem:[#allocation10 + $0xca8] sm:$0xff] }
 0x38e   :  { %4903 = vmatprep.subr.bf16.mxu1 %v6891_v21  ;;  %v7001_v21 = vcombine.high %v1635_v15, %v1643_v16  ;;  %v1723_v7 = vld [vmem:[#allocation10 + $0xce0] sm:$0xff] }
 0x390   :  { %4822 = vmatpush1.bf16.msra.mxu0 %v6888_v31  ;;  %v1660_v31 = vld [vmem:[#allocation10 + $0xae8] sm:$0xff] }
 0x391   :  { %4904 = vmatpush1.bf16.msra.mxu1 %v6890_v32  ;;  %4823 = vmatprep.subr.bf16.mxu0 %v6905_v33  ;;  %v7000_v32 = vcombine.low %v1635_v15, %v1643_v16  ;;  %v7002_v33 = vcombine.low %v1636_v17, %v1644_v18  ;;  %v7019_v37 = vcombine.high %v1652_v30, %v1660_v31  ;;  %v1731_v16 = vld [vmem:[#allocation10 + $0xd20] sm:$0xff]  ;;  %v1732_v18 = vld [vmem:[#allocation10 + $0xd28] sm:$0xff] }
 0x392   :  { %4905 = vmatprep.subr.bf16.mxu1 %v6907_v34  ;;  %v7017_v34 = vcombine.high %v1651_v27, %v1659_v28  ;;  %v1739_v17 = vld [vmem:[#allocation10 + $0xd60] sm:$0xff] }
 0x394   :  { %4824 = vmatpush1.bf16.msra.mxu0 %v6904_v43  ;;  %v1676_v43 = vld [vmem:[#allocation10 + $0xb68] sm:$0xff] }
 0x395   :  { %4906 = vmatpush1.bf16.msra.mxu1 %v6906_v44  ;;  %4825 = vmatprep.subr.bf16.mxu0 %v6921_v46  ;;  %v7016_v44 = vcombine.low %v1651_v27, %v1659_v28  ;;  %v7018_v46 = vcombine.low %v1652_v30, %v1660_v31  ;;  %v7035_v49 = vcombine.high %v1668_v42, %v1676_v43  ;;  %v1747_v28 = vld [vmem:[#allocation10 + $0xda0] sm:$0xff]  ;;  %v1748_v31 = vld [vmem:[#allocation10 + $0xda8] sm:$0xff] }
 0x396   :  { %4907 = vmatprep.subr.bf16.mxu1 %v6923_v47  ;;  %v7033_v47 = vcombine.high %v1667_v39, %v1675_v40  ;;  %v1755_v30 = vld [vmem:[#allocation10 + $0xde0] sm:$0xff] }
 0x397   :  { %v1763_v40 = vld [vmem:[#allocation10 + $0xe20] sm:$0xff] }
 0x398   :  { %4826 = vmatpush1.bf16.msra.mxu0 %v6920_v51  ;;  %v1691_v51 = vld [vmem:[#allocation10 + $0xbe0] sm:$0xff] }
 0x399   :  { %4908 = vmatpush1.bf16.msra.mxu1 %v6922_v52  ;;  %4836 = vmatprep.subr.bf16.mxu0 %v6937_v53  ;;  %v7049_v61 = vcombine.high %v1683_v50, %v1691_v51 }
 0x39a   :  { %4918 = vmatprep.subr.bf16.mxu1 %v6939_v54  ;;  %v1684_v54 = vld [vmem:[#allocation10 + $0xba8] sm:$0xff] }
 0x39b   :  { %4828 = vmatmul.mubr.bf16.vlgmr.msra.gmra.mrb[16].mxu0 %v8337_v36  ;;  %v7051_v41 = vcombine.high %v1684_v54, %v1692_v55 }
 0x39c   :  { %4910 = vmatmul.mubr.bf16.vlgmr.msra.gmra.mrb[16].mxu1 %v8337_v36  ;;  %4837 = vmatpush1.bf16.msra.mxu0 %v6936_v56 }
 0x39d   :  { %4868 = vmatprep.mubr.bf16.mxu0 %v8341_v45  ;;  %4919 = vmatpush1.bf16.msra.mxu1 %v6938_v58 }
 0x39e   :  { %4950 = vmatprep.mubr.bf16.mxu1 %v8341_v45  ;;  %4838 = vmatprep.subr.bf16.mxu0 %v6953_v60  ;;  %v7034_v60 = vcombine.low %v1668_v42, %v1676_v43  ;;  %v1771_v42 = vld [vmem:[#allocation10 + $0xe60] sm:$0xff]  ;;  %v1764_v43 = vld [vmem:[#allocation10 + $0xe28] sm:$0xff] }
 0x39f   :  { %4920 = vmatprep.subr.bf16.mxu1 %v6955_v62  ;;  %v1699_v62 = vld [vmem:[#allocation10 + $0xc20] sm:$0xff] }
 0x3a0   :  { %4839 = vmatpush1.bf16.msra.mxu0 %v6952_v1  ;;  %v1708_v1 = vld [vmem:[#allocation10 + $0xc68] sm:$0xff] }
 0x3a1   :  { %4921 = vmatpush1.bf16.msra.mxu1 %v6954_v2  ;;  %4840 = vmatprep.subr.bf16.mxu0 %v6969_v3  ;;  %v7048_v2 = vcombine.low %v1683_v50, %v1691_v51  ;;  %v7050_v3 = vcombine.low %v1684_v54, %v1692_v55  ;;  %v7067_v5 = vcombine.high %v1700_v0, %v1708_v1  ;;  %v1779_v51 = vld [vmem:[#allocation10 + $0xea0] sm:$0xff]  ;;  %v1780_v55 = vld [vmem:[#allocation10 + $0xea8] sm:$0xff] }
 0x3a2   :  { %4922 = vmatprep.subr.bf16.mxu1 %v6971_v4  ;;  %v7065_v4 = vcombine.high %v1699_v62, %v1707_v63  ;;  %v1787_v54 = vld [vmem:[#allocation10 + $0xee0] sm:$0xff] }
 0x3a4   :  { %4841 = vmatpush1.bf16.msra.mxu0 %v6968_v10  ;;  %v1724_v10 = vld [vmem:[#allocation10 + $0xce8] sm:$0xff] }
 0x3a5   :  { %4923 = vmatpush1.bf16.msra.mxu1 %v6970_v11  ;;  %4842 = vmatprep.subr.bf16.mxu0 %v6985_v12  ;;  %v7064_v11 = vcombine.low %v1699_v62, %v1707_v63  ;;  %v7066_v12 = vcombine.low %v1700_v0, %v1708_v1  ;;  %v7083_v15 = vcombine.high %v1716_v9, %v1724_v10  ;;  %v1804_v62 = vld [vmem:[#allocation10 + $0xf68] sm:$0xff] }
 0x3a6   :  { %4924 = vmatprep.subr.bf16.mxu1 %v6987_v14  ;;  %v7081_v14 = vcombine.high %v1715_v6, %v1723_v7  ;;  %v7144_v63 = vcombine.low %v1779_v51, %v1787_v54 }
 0x3a8   :  { %4843 = vmatpush1.bf16.msra.mxu0 %v6984_v19  ;;  %v1740_v19 = vld [vmem:[#allocation10 + $0xd68] sm:$0xff] }
 0x3a9   :  { %4925 = vmatpush1.bf16.msra.mxu1 %v6986_v20  ;;  %4844 = vmatprep.subr.bf16.mxu0 %v7001_v21  ;;  %v7080_v20 = vcombine.low %v1715_v6, %v1723_v7  ;;  %v7082_v21 = vcombine.low %v1716_v9, %v1724_v10  ;;  %v7099_v27 = vcombine.high %v1732_v18, %v1740_v19  ;;  %v1820_v6 = vld [vmem:[#allocation10 + $0xfe8] sm:$0xff] }
 0x3aa   :  { %4926 = vmatprep.subr.bf16.mxu1 %v7003_v26  ;;  %v7097_v26 = vcombine.high %v1731_v16, %v1739_v17 }
 0x3ac   :  { %4845 = vmatpush1.bf16.msra.mxu0 %v7000_v32  ;;  %v1756_v32 = vld [vmem:[#allocation10 + $0xde8] sm:$0xff] }
 0x3ad   :  { %4927 = vmatpush1.bf16.msra.mxu1 %v7002_v33  ;;  %4846 = vmatprep.subr.bf16.mxu0 %v7017_v34  ;;  %v7096_v33 = vcombine.low %v1731_v16, %v1739_v17  ;;  %v7098_v34 = vcombine.low %v1732_v18, %v1740_v19  ;;  %v7115_v39 = vcombine.high %v1748_v31, %v1756_v32  ;;  %v1326_v16 = vld [vmem:[#allocation10 + $0x78] sm:$0xff] }
 0x3ae   :  { %v8368_v48 = vpop.f32.mrb[8].mxu0  ;;  %v8370_v8 = vpop.f32.mrb[8].mxu1  ;;  %4928 = vmatprep.subr.bf16.mxu1 %v7019_v37  ;;  %v7113_v37 = vcombine.high %v1747_v28, %v1755_v30 }
 0x3af   :  { %v8372_v52 = vpop.f32.mrb[9].mxu0  ;;  %v8374_v53 = vpop.f32.mrb[9].mxu1 }
 0x3b0   :  { %v4546_v24 = vpop.f32.mrb[10].mxu0  ;;  %v4628_v56 = vpop.f32.mrb[10].mxu1  ;;  %4847 = vmatpush1.bf16.msra.mxu0 %v7016_v44  ;;  %v1772_v44 = vld [vmem:[#allocation10 + $0xe68] sm:$0xff] }
 0x3b1   :  { %4929 = vmatpush1.bf16.msra.mxu1 %v7018_v46  ;;  %v4547_v57 = vpop.f32.mrb[11].mxu0  ;;  %v4629_v58 = vpop.f32.mrb[11].mxu1  ;;  %4848 = vmatprep.subr.bf16.mxu0 %v7033_v47  ;;  %v7112_v46 = vcombine.low %v1747_v28, %v1755_v30  ;;  %v7114_v47 = vcombine.low %v1748_v31, %v1756_v32  ;;  %v7131_v50 = vcombine.high %v1764_v43, %v1772_v44  ;;  %v1788_v24 = vld [vmem:[#allocation10 + $0xee8] sm:$0xff]  ;;  %v1334_v28 = vld [vmem:[#allocation10 + $0xb8] sm:$0xff] }
 0x3b2   :  { %4930 = vmatprep.subr.bf16.mxu1 %v7035_v49  ;;  %v7129_v49 = vcombine.high %v1763_v40, %v1771_v42  ;;  %v7128_v56 = vcombine.low %v1763_v40, %v1771_v42  ;;  %v7145_v57 = vcombine.high %v1779_v51, %v1787_v54  ;;  %v7147_v58 = vcombine.high %v1780_v55, %v1788_v24  ;;  %v1342_v30 = vld [vmem:[#allocation10 + $0xf8] sm:$0xff] }
 0x3b3   :  { %v7146_v0 = vcombine.low %v1780_v55, %v1788_v24  ;;  %v1358_v40 = vld [vmem:[#allocation10 + $0x178] sm:$0xff] }
 0x3b4   :  { %4849 = vmatpush1.bf16.msra.mxu0 %v7032_v13  ;;  %v7130_v13 = vcombine.low %v1764_v43, %v1772_v44  ;;  %v6702_v43 = vcombine.low %v1334_v28, %v1342_v30  ;;  %v1374_v51 = vld [vmem:[#allocation10 + $0x1f8] sm:$0xff] }
 0x3b5   :  { %4931 = vmatpush1.bf16.msra.mxu1 %v7034_v60  ;;  %4850 = vmatprep.subr.bf16.mxu0 %v7049_v61  ;;  %v1795_v60 = vld [vmem:[#allocation10 + $0xf20] sm:$0xff] }
 0x3b6   :  { %4932 = vmatprep.subr.bf16.mxu1 %v7051_v41  ;;  %v1803_v61 = vld [vmem:[#allocation10 + $0xf60] sm:$0xff]  ;;  %v1796_v41 = vld [vmem:[#allocation10 + $0xf28] sm:$0xff] }
 0x3b7   :  { %v7161_v1 = vcombine.high %v1795_v60, %v1803_v61  ;;  %v7160_v7 = vcombine.low %v1795_v60, %v1803_v61  ;;  %v7162_v9 = vcombine.low %v1796_v41, %v1804_v62  ;;  %v1390_v60 = vld [vmem:[#allocation10 + $0x278] sm:$0xff] }
 0x3b8   :  { %4851 = vmatpush1.bf16.msra.mxu0 %v7048_v2  ;;  %v7163_v2 = vcombine.high %v1796_v41, %v1804_v62 }
 0x3b9   :  { %4933 = vmatpush1.bf16.msra.mxu1 %v7050_v3  ;;  %4852 = vmatprep.subr.bf16.mxu0 %v7065_v4  ;;  %v1811_v3 = vld [vmem:[#allocation10 + $0xfa0] sm:$0xff] }
 0x3ba   :  { %4934 = vmatprep.subr.bf16.mxu1 %v7067_v5  ;;  %v1819_v4 = vld [vmem:[#allocation10 + $0xfe0] sm:$0xff]  ;;  %v1812_v5 = vld [vmem:[#allocation10 + $0xfa8] sm:$0xff] }
 0x3bb   :  { %v7177_v10 = vcombine.high %v1811_v3, %v1819_v4  ;;  %v7176_v17 = vcombine.low %v1811_v3, %v1819_v4  ;;  %v7178_v18 = vcombine.low %v1812_v5, %v1820_v6 }
 0x3bc   :  { %4853 = vmatpush1.bf16.msra.mxu0 %v7064_v11  ;;  %v7179_v11 = vcombine.high %v1812_v5, %v1820_v6 }
 0x3bd   :  { %4935 = vmatpush1.bf16.msra.mxu1 %v7066_v12  ;;  %4854 = vmatprep.subr.bf16.mxu0 %v7081_v14  ;;  %v1317_v12 = vld [vmem:[#allocation10 + $0x30] sm:$0xff] }
 0x3be   :  { %4936 = vmatprep.subr.bf16.mxu1 %v7083_v15  ;;  %v1325_v14 = vld [vmem:[#allocation10 + $0x70] sm:$0xff]  ;;  %v1318_v15 = vld [vmem:[#allocation10 + $0x38] sm:$0xff] }
 0x3bf   :  { %v6685_v19 = vcombine.high %v1317_v12, %v1325_v14  ;;  %v6686_v31 = vcombine.low %v1318_v15, %v1326_v16 }
 0x3c0   :  { %4855 = vmatpush1.bf16.msra.mxu0 %v7080_v20  ;;  %v6687_v20 = vcombine.high %v1318_v15, %v1326_v16 }
 0x3c1   :  { %4937 = vmatpush1.bf16.msra.mxu1 %v7082_v21  ;;  %4856 = vmatprep.subr.bf16.mxu0 %v7097_v26  ;;  %v1333_v21 = vld [vmem:[#allocation10 + $0xb0] sm:$0xff] }
 0x3c2   :  { %4938 = vmatprep.subr.bf16.mxu1 %v7099_v27  ;;  %v1341_v26 = vld [vmem:[#allocation10 + $0xf0] sm:$0xff]  ;;  %v6684_v27 = vcombine.low %v1317_v12, %v1325_v14 }
 0x3c3   :  { %v6701_v32 = vcombine.high %v1333_v21, %v1341_v26  ;;  %v6700_v42 = vcombine.low %v1333_v21, %v1341_v26 }
 0x3c4   :  { %4857 = vmatpush1.bf16.msra.mxu0 %v7096_v33  ;;  %v1349_v33 = vld [vmem:[#allocation10 + $0x130] sm:$0xff] }
 0x3c5   :  { %4939 = vmatpush1.bf16.msra.mxu1 %v7098_v34  ;;  %4858 = vmatprep.subr.bf16.mxu0 %v7113_v37  ;;  %v1357_v34 = vld [vmem:[#allocation10 + $0x170] sm:$0xff]  ;;  %v6703_v37 = vcombine.high %v1334_v28, %v1342_v30 }
 0x3c6   :  { %4940 = vmatprep.subr.bf16.mxu1 %v7115_v39  ;;  %v1350_v39 = vld [vmem:[#allocation10 + $0x138] sm:$0xff]  ;;  %v6717_v44 = vcombine.high %v1349_v33, %v1357_v34  ;;  %v6716_v54 = vcombine.low %v1349_v33, %v1357_v34  ;;  %v1445_v30 = vld [vmem:[#allocation10 + $0x430] sm:$0xff] }
 0x3c7   :  { %v6718_v55 = vcombine.low %v1350_v39, %v1358_v40  ;;  %v1454_v33 = vld [vmem:[#allocation10 + $0x478] sm:$0xff] }
 0x3c8   :  { %4859 = vmatpush1.bf16.msra.mxu0 %v7112_v46  ;;  %v6719_v46 = vcombine.high %v1350_v39, %v1358_v40 }
 0x3c9   :  { %4941 = vmatpush1.bf16.msra.mxu1 %v7114_v47  ;;  %4860 = vmatprep.subr.bf16.mxu0 %v7129_v49  ;;  %v1365_v47 = vld [vmem:[#allocation10 + $0x1b0] sm:$0xff] }
 0x3ca   :  { %4942 = vmatprep.subr.bf16.mxu1 %v7131_v50  ;;  %v1373_v49 = vld [vmem:[#allocation10 + $0x1f0] sm:$0xff]  ;;  %v1366_v50 = vld [vmem:[#allocation10 + $0x1b8] sm:$0xff] }
 0x3cb   :  { %v6733_v24 = vcombine.high %v1365_v47, %v1373_v49  ;;  %v6734_v61 = vcombine.low %v1366_v50, %v1374_v51 }
 0x3cc   :  { %4861 = vmatpush1.bf16.msra.mxu0 %v7128_v56  ;;  %v6735_v56 = vcombine.high %v1366_v50, %v1374_v51 }
 0x3cd   :  { %4943 = vmatpush1.bf16.msra.mxu1 %v7130_v13  ;;  %4862 = vmatprep.subr.bf16.mxu0 %v7145_v57  ;;  %v1381_v13 = vld [vmem:[#allocation10 + $0x230] sm:$0xff] }
 0x3ce   :  { %4944 = vmatprep.subr.bf16.mxu1 %v7147_v58  ;;  %v1389_v57 = vld [vmem:[#allocation10 + $0x270] sm:$0xff]  ;;  %v1382_v58 = vld [vmem:[#allocation10 + $0x238] sm:$0xff] }
 0x3cf   :  { %v6749_v41 = vcombine.high %v1381_v13, %v1389_v57  ;;  %v6751_v62 = vcombine.high %v1382_v58, %v1390_v60  ;;  %v6748_v3 = vcombine.low %v1381_v13, %v1389_v57  ;;  %v6750_v4 = vcombine.low %v1382_v58, %v1390_v60 }
 0x3d0   :  { %4863 = vmatpush1.bf16.msra.mxu0 %v7144_v63  ;;  %v1397_v63 = vld [vmem:[#allocation10 + $0x2b0] sm:$0xff] }
 0x3d1   :  { %4945 = vmatpush1.bf16.msra.mxu1 %v7146_v0  ;;  %4864 = vmatprep.subr.bf16.mxu0 %v7161_v1  ;;  %v1405_v0 = vld [vmem:[#allocation10 + $0x2f0] sm:$0xff]  ;;  %v1398_v1 = vld [vmem:[#allocation10 + $0x2b8] sm:$0xff] }
 0x3d2   :  { %4946 = vmatprep.subr.bf16.mxu1 %v7163_v2  ;;  %v1406_v2 = vld [vmem:[#allocation10 + $0x2f8] sm:$0xff]  ;;  %v6765_v5 = vcombine.high %v1397_v63, %v1405_v0  ;;  %v6764_v12 = vcombine.low %v1397_v63, %v1405_v0 }
 0x3d3   :  { %v6767_v6 = vcombine.high %v1398_v1, %v1406_v2  ;;  %v6766_v14 = vcombine.low %v1398_v1, %v1406_v2 }
 0x3d4   :  { %4865 = vmatpush1.bf16.msra.mxu0 %v7160_v7  ;;  %v1413_v7 = vld [vmem:[#allocation10 + $0x330] sm:$0xff] }
 0x3d5   :  { %4947 = vmatpush1.bf16.msra.mxu1 %v7162_v9  ;;  %4866 = vmatprep.subr.bf16.mxu0 %v7177_v10  ;;  %v1421_v9 = vld [vmem:[#allocation10 + $0x370] sm:$0xff]  ;;  %v1414_v10 = vld [vmem:[#allocation10 + $0x338] sm:$0xff] }
 0x3d6   :  { %4948 = vmatprep.subr.bf16.mxu1 %v7179_v11  ;;  %v1422_v11 = vld [vmem:[#allocation10 + $0x378] sm:$0xff]  ;;  %v6781_v15 = vcombine.high %v1413_v7, %v1421_v9  ;;  %v6780_v21 = vcombine.low %v1413_v7, %v1421_v9 }
 0x3d7   :  { %v6783_v16 = vcombine.high %v1414_v10, %v1422_v11  ;;  %v6782_v26 = vcombine.low %v1414_v10, %v1422_v11 }
 0x3d8   :  { %4867 = vmatpush1.bf16.msra.mxu0 %v7176_v17  ;;  %v1429_v17 = vld [vmem:[#allocation10 + $0x3b0] sm:$0xff] }
 0x3d9   :  { %4949 = vmatpush1.bf16.msra.mxu1 %v7178_v18  ;;  %4959 = vmatprep.subr.bf16.mxu0 %v6685_v19  ;;  %v1437_v18 = vld [vmem:[#allocation10 + $0x3f0] sm:$0xff]  ;;  %v1430_v19 = vld [vmem:[#allocation10 + $0x3b8] sm:$0xff] }
 0x3da   :  { %5041 = vmatprep.subr.bf16.mxu1 %v6687_v20  ;;  %v1438_v20 = vld [vmem:[#allocation10 + $0x3f8] sm:$0xff]  ;;  %v6796_v34 = vcombine.low %v1429_v17, %v1437_v18 }
 0x3db   :  { %4869 = vmatmul.mubr.bf16.vlgmr.msra.gmra.mrb[16].mxu0 %v8350_v59  ;;  %v6799_v28 = vcombine.high %v1430_v19, %v1438_v20 }
 0x3dc   :  { %4951 = vmatmul.mubr.bf16.vlgmr.msra.gmra.mrb[16].mxu1 %v8350_v59  ;;  %4960 = vmatpush1.bf16.msra.mxu0 %v6684_v27  ;;  %v6797_v27 = vcombine.high %v1429_v17, %v1437_v18 }
 0x3dd   :  { %4991 = vmatprep.mubr.bf16.mxu0 %v8335_v35  ;;  %5042 = vmatpush1.bf16.msra.mxu1 %v6686_v31  ;;  %v1453_v31 = vld [vmem:[#allocation10 + $0x470] sm:$0xff] }
 0x3de   :  { %5073 = vmatprep.mubr.bf16.mxu1 %v8335_v35  ;;  %4961 = vmatprep.subr.bf16.mxu0 %v6701_v32  ;;  %v6732_v35 = vcombine.low %v1365_v47, %v1373_v49  ;;  %v1446_v32 = vld [vmem:[#allocation10 + $0x438] sm:$0xff]  ;;  %v6813_v39 = vcombine.high %v1445_v30, %v1453_v31  ;;  %v6812_v47 = vcombine.low %v1445_v30, %v1453_v31 }
 0x3df   :  { %5043 = vmatprep.subr.bf16.mxu1 %v6703_v37  ;;  %v6798_v37 = vcombine.low %v1430_v19, %v1438_v20  ;;  %v6815_v40 = vcombine.high %v1446_v32, %v1454_v33  ;;  %v6814_v49 = vcombine.low %v1446_v32, %v1454_v33 }
 0x3e0   :  { %4962 = vmatpush1.bf16.msra.mxu0 %v6700_v42  ;;  %v1461_v42 = vld [vmem:[#allocation10 + $0x4b0] sm:$0xff] }
 0x3e1   :  { %5044 = vmatpush1.bf16.msra.mxu1 %v6702_v43  ;;  %4963 = vmatprep.subr.bf16.mxu0 %v6717_v44  ;;  %v1469_v43 = vld [vmem:[#allocation10 + $0x4f0] sm:$0xff]  ;;  %v1462_v44 = vld [vmem:[#allocation10 + $0x4b8] sm:$0xff] }
 0x3e2   :  { %5045 = vmatprep.subr.bf16.mxu1 %v6719_v46  ;;  %v1470_v46 = vld [vmem:[#allocation10 + $0x4f8] sm:$0xff]  ;;  %v6829_v50 = vcombine.high %v1461_v42, %v1469_v43  ;;  %v6828_v13 = vcombine.low %v1461_v42, %v1469_v43 }
 0x3e3   :  { %v6831_v51 = vcombine.high %v1462_v44, %v1470_v46  ;;  %v6830_v57 = vcombine.low %v1462_v44, %v1470_v46 }
 0x3e4   :  { %4964 = vmatpush1.bf16.msra.mxu0 %v6716_v54  ;;  %v1477_v54 = vld [vmem:[#allocation10 + $0x530] sm:$0xff] }
 0x3e5   :  { %5046 = vmatpush1.bf16.msra.mxu1 %v6718_v55  ;;  %4965 = vmatprep.subr.bf16.mxu0 %v6733_v24  ;;  %v1485_v55 = vld [vmem:[#allocation10 + $0x570] sm:$0xff]  ;;  %v1478_v24 = vld [vmem:[#allocation10 + $0x538] sm:$0xff] }
 0x3e6   :  { %5047 = vmatprep.subr.bf16.mxu1 %v6735_v56  ;;  %v1486_v56 = vld [vmem:[#allocation10 + $0x578] sm:$0xff]  ;;  %v6845_v58 = vcombine.high %v1477_v54, %v1485_v55  ;;  %v6844_v63 = vcombine.low %v1477_v54, %v1485_v55 }
 0x3e7   :  { %v6847_v60 = vcombine.high %v1478_v24, %v1486_v56  ;;  %v6846_v0 = vcombine.low %v1478_v24, %v1486_v56 }
 0x3e8   :  { %4966 = vmatpush1.bf16.msra.mxu0 %v6732_v35  ;;  %v1493_v35 = vld [vmem:[#allocation10 + $0x5b0] sm:$0xff] }
 0x3e9   :  { %5048 = vmatpush1.bf16.msra.mxu1 %v6734_v61  ;;  %4967 = vmatprep.subr.bf16.mxu0 %v6749_v41  ;;  %v1501_v61 = vld [vmem:[#allocation10 + $0x5f0] sm:$0xff]  ;;  %v1494_v41 = vld [vmem:[#allocation10 + $0x5b8] sm:$0xff] }
 0x3ea   :  { %5049 = vmatprep.subr.bf16.mxu1 %v6751_v62  ;;  %v1502_v62 = vld [vmem:[#allocation10 + $0x5f8] sm:$0xff]  ;;  %v6861_v1 = vcombine.high %v1493_v35, %v1501_v61  ;;  %v6860_v7 = vcombine.low %v1493_v35, %v1501_v61 }
 0x3eb   :  { %v6863_v2 = vcombine.high %v1494_v41, %v1502_v62  ;;  %v6862_v9 = vcombine.low %v1494_v41, %v1502_v62  ;;  %v1598_v35 = vld [vmem:[#allocation10 + $0x8f8] sm:$0xff]  ;;  %v1605_v62 = vld [vmem:[#allocation10 + $0x930] sm:$0xff] }
 0x3ec   :  { %4968 = vmatpush1.bf16.msra.mxu0 %v6748_v3  ;;  %v1509_v3 = vld [vmem:[#allocation10 + $0x630] sm:$0xff] }
 0x3ed   :  { %5050 = vmatpush1.bf16.msra.mxu1 %v6750_v4  ;;  %4969 = vmatprep.subr.bf16.mxu0 %v6765_v5  ;;  %v1517_v4 = vld [vmem:[#allocation10 + $0x670] sm:$0xff]  ;;  %v1510_v5 = vld [vmem:[#allocation10 + $0x638] sm:$0xff] }
 0x3ee   :  { %5051 = vmatprep.subr.bf16.mxu1 %v6767_v6  ;;  %v1518_v6 = vld [vmem:[#allocation10 + $0x678] sm:$0xff]  ;;  %v6877_v10 = vcombine.high %v1509_v3, %v1517_v4  ;;  %v6876_v17 = vcombine.low %v1509_v3, %v1517_v4 }
 0x3ef   :  { %v6879_v11 = vcombine.high %v1510_v5, %v1518_v6  ;;  %v6878_v18 = vcombine.low %v1510_v5, %v1518_v6 }
 0x3f0   :  { %4970 = vmatpush1.bf16.msra.mxu0 %v6764_v12  ;;  %v1525_v12 = vld [vmem:[#allocation10 + $0x6b0] sm:$0xff] }
 0x3f1   :  { %5052 = vmatpush1.bf16.msra.mxu1 %v6766_v14  ;;  %4971 = vmatprep.subr.bf16.mxu0 %v6781_v15  ;;  %v1533_v14 = vld [vmem:[#allocation10 + $0x6f0] sm:$0xff]  ;;  %v1526_v15 = vld [vmem:[#allocation10 + $0x6b8] sm:$0xff] }
 0x3f2   :  { %5053 = vmatprep.subr.bf16.mxu1 %v6783_v16  ;;  %v1534_v16 = vld [vmem:[#allocation10 + $0x6f8] sm:$0xff]  ;;  %v6893_v19 = vcombine.high %v1525_v12, %v1533_v14  ;;  %v6892_v30 = vcombine.low %v1525_v12, %v1533_v14 }
 0x3f3   :  { %v6895_v20 = vcombine.high %v1526_v15, %v1534_v16  ;;  %v6894_v31 = vcombine.low %v1526_v15, %v1534_v16  ;;  %v1637_v16 = vld [vmem:[#allocation10 + $0xa30] sm:$0xff] }
 0x3f4   :  { %4972 = vmatpush1.bf16.msra.mxu0 %v6780_v21  ;;  %v1541_v21 = vld [vmem:[#allocation10 + $0x730] sm:$0xff] }
 0x3f5   :  { %5054 = vmatpush1.bf16.msra.mxu1 %v6782_v26  ;;  %4973 = vmatprep.subr.bf16.mxu0 %v6797_v27  ;;  %v1549_v26 = vld [vmem:[#allocation10 + $0x770] sm:$0xff]  ;;  %v1542_v27 = vld [vmem:[#allocation10 + $0x738] sm:$0xff] }
 0x3f6   :  { %5055 = vmatprep.subr.bf16.mxu1 %v6799_v28  ;;  %v1550_v28 = vld [vmem:[#allocation10 + $0x778] sm:$0xff]  ;;  %v6909_v32 = vcombine.high %v1541_v21, %v1549_v26  ;;  %v6908_v42 = vcombine.low %v1541_v21, %v1549_v26 }
 0x3f7   :  { %v6911_v33 = vcombine.high %v1542_v27, %v1550_v28  ;;  %v6910_v43 = vcombine.low %v1542_v27, %v1550_v28  ;;  %v1653_v27 = vld [vmem:[#allocation10 + $0xab0] sm:$0xff] }
 0x3f8   :  { %4974 = vmatpush1.bf16.msra.mxu0 %v6796_v34  ;;  %v1557_v34 = vld [vmem:[#allocation10 + $0x7b0] sm:$0xff] }
 0x3f9   :  { %5056 = vmatpush1.bf16.msra.mxu1 %v6798_v37  ;;  %4975 = vmatprep.subr.bf16.mxu0 %v6813_v39  ;;  %v1565_v37 = vld [vmem:[#allocation10 + $0x7f0] sm:$0xff]  ;;  %v1558_v39 = vld [vmem:[#allocation10 + $0x7b8] sm:$0xff] }
 0x3fa   :  { %5057 = vmatprep.subr.bf16.mxu1 %v6815_v40  ;;  %v1566_v40 = vld [vmem:[#allocation10 + $0x7f8] sm:$0xff]  ;;  %v6925_v44 = vcombine.high %v1557_v34, %v1565_v37  ;;  %v6924_v54 = vcombine.low %v1557_v34, %v1565_v37  ;;  %v1661_v28 = vld [vmem:[#allocation10 + $0xaf0] sm:$0xff] }
 0x3fb   :  { %v6927_v46 = vcombine.high %v1558_v39, %v1566_v40  ;;  %v6926_v55 = vcombine.low %v1558_v39, %v1566_v40  ;;  %v7021_v34 = vcombine.high %v1653_v27, %v1661_v28  ;;  %v1669_v39 = vld [vmem:[#allocation10 + $0xb30] sm:$0xff] }
 0x3fc   :  { %4976 = vmatpush1.bf16.msra.mxu0 %v6812_v47  ;;  %v1573_v47 = vld [vmem:[#allocation10 + $0x830] sm:$0xff] }
 0x3fd   :  { %5058 = vmatpush1.bf16.msra.mxu1 %v6814_v49  ;;  %4977 = vmatprep.subr.bf16.mxu0 %v6829_v50  ;;  %v1581_v49 = vld [vmem:[#allocation10 + $0x870] sm:$0xff]  ;;  %v1574_v50 = vld [vmem:[#allocation10 + $0x838] sm:$0xff] }
 0x3fe   :  { %5059 = vmatprep.subr.bf16.mxu1 %v6831_v51  ;;  %v1582_v51 = vld [vmem:[#allocation10 + $0x878] sm:$0xff]  ;;  %v6941_v24 = vcombine.high %v1573_v47, %v1581_v49  ;;  %v1677_v40 = vld [vmem:[#allocation10 + $0xb70] sm:$0xff] }
 0x3ff   :  { %v6943_v56 = vcombine.high %v1574_v50, %v1582_v51  ;;  %v6942_v61 = vcombine.low %v1574_v50, %v1582_v51  ;;  %v1685_v51 = vld [vmem:[#allocation10 + $0xbb0] sm:$0xff] }
 0x400   :  { %4978 = vmatpush1.bf16.msra.mxu0 %v6828_v13  ;;  %v1589_v13 = vld [vmem:[#allocation10 + $0x8b0] sm:$0xff] }
 0x401   :  { %5060 = vmatpush1.bf16.msra.mxu1 %v6830_v57  ;;  %4979 = vmatprep.subr.bf16.mxu0 %v6845_v58  ;;  %v1597_v57 = vld [vmem:[#allocation10 + $0x8f0] sm:$0xff]  ;;  %v6940_v58 = vcombine.low %v1573_v47, %v1581_v49  ;;  %v7037_v47 = vcombine.high %v1669_v39, %v1677_v40 }
 0x402   :  { %5061 = vmatprep.subr.bf16.mxu1 %v6847_v60  ;;  %v1590_v60 = vld [vmem:[#allocation10 + $0x8b8] sm:$0xff]  ;;  %v6957_v41 = vcombine.high %v1589_v13, %v1597_v57  ;;  %v6956_v3 = vcombine.low %v1589_v13, %v1597_v57 }
 0x403   :  { %v6958_v4 = vcombine.low %v1590_v60, %v1598_v35  ;;  %v1694_v13 = vld [vmem:[#allocation10 + $0xbf8] sm:$0xff] }
 0x404   :  { %4980 = vmatpush1.bf16.msra.mxu0 %v6844_v63  ;;  %v1613_v63 = vld [vmem:[#allocation10 + $0x970] sm:$0xff] }
 0x405   :  { %5062 = vmatpush1.bf16.msra.mxu1 %v6846_v0  ;;  %4981 = vmatprep.subr.bf16.mxu0 %v6861_v1  ;;  %v6959_v0 = vcombine.high %v1590_v60, %v1598_v35  ;;  %v1606_v1 = vld [vmem:[#allocation10 + $0x938] sm:$0xff]  ;;  %v6973_v5 = vcombine.high %v1605_v62, %v1613_v63  ;;  %v6972_v12 = vcombine.low %v1605_v62, %v1613_v63 }
 0x406   :  { %5063 = vmatprep.subr.bf16.mxu1 %v6863_v2  ;;  %v1614_v2 = vld [vmem:[#allocation10 + $0x978] sm:$0xff]  ;;  %v7036_v60 = vcombine.low %v1669_v39, %v1677_v40 }
 0x407   :  { %v6975_v6 = vcombine.high %v1606_v1, %v1614_v2 }
 0x408   :  { %4982 = vmatpush1.bf16.msra.mxu0 %v6860_v7  ;;  %v1621_v7 = vld [vmem:[#allocation10 + $0x9b0] sm:$0xff] }
 0x409   :  { %5064 = vmatpush1.bf16.msra.mxu1 %v6862_v9  ;;  %4983 = vmatprep.subr.bf16.mxu0 %v6877_v10  ;;  %v1629_v9 = vld [vmem:[#allocation10 + $0x9f0] sm:$0xff]  ;;  %v1622_v10 = vld [vmem:[#allocation10 + $0x9b8] sm:$0xff] }
 0x40a   :  { %5065 = vmatprep.subr.bf16.mxu1 %v6879_v11  ;;  %v1630_v11 = vld [vmem:[#allocation10 + $0x9f8] sm:$0xff]  ;;  %v6989_v14 = vcombine.high %v1621_v7, %v1629_v9 }
 0x40b   :  { %v6991_v15 = vcombine.high %v1622_v10, %v1630_v11 }
 0x40c   :  { %4984 = vmatpush1.bf16.msra.mxu0 %v6876_v17  ;;  %v1645_v17 = vld [vmem:[#allocation10 + $0xa70] sm:$0xff] }
 0x40d   :  { %5066 = vmatpush1.bf16.msra.mxu1 %v6878_v18  ;;  %4985 = vmatprep.subr.bf16.mxu0 %v6893_v19  ;;  %v1638_v18 = vld [vmem:[#allocation10 + $0xa38] sm:$0xff]  ;;  %v7005_v21 = vcombine.high %v1637_v16, %v1645_v17 }
 0x40e   :  { %5067 = vmatprep.subr.bf16.mxu1 %v6895_v20  ;;  %v1646_v19 = vld [vmem:[#allocation10 + $0xa78] sm:$0xff]  ;;  %v6990_v20 = vcombine.low %v1622_v10, %v1630_v11  ;;  %v1717_v10 = vld [vmem:[#allocation10 + $0xcb0] sm:$0xff] }
 0x40f   :  { %v7007_v26 = vcombine.high %v1638_v18, %v1646_v19  ;;  %v1725_v11 = vld [vmem:[#allocation10 + $0xcf0] sm:$0xff] }
 0x410   :  { %4986 = vmatpush1.bf16.msra.mxu0 %v6892_v30  ;;  %v1654_v30 = vld [vmem:[#allocation10 + $0xab8] sm:$0xff] }
 0x411   :  { %5068 = vmatpush1.bf16.msra.mxu1 %v6894_v31  ;;  %4987 = vmatprep.subr.bf16.mxu0 %v6909_v32  ;;  %v1662_v31 = vld [vmem:[#allocation10 + $0xaf8] sm:$0xff]  ;;  %v7004_v32 = vcombine.low %v1637_v16, %v1645_v17  ;;  %v7085_v16 = vcombine.high %v1717_v10, %v1725_v11 }
 0x412   :  { %5069 = vmatprep.subr.bf16.mxu1 %v6911_v33  ;;  %v7006_v33 = vcombine.low %v1638_v18, %v1646_v19  ;;  %v7023_v37 = vcombine.high %v1654_v30, %v1662_v31  ;;  %v1733_v18 = vld [vmem:[#allocation10 + $0xd30] sm:$0xff] }
 0x413   :  { %v1741_v19 = vld [vmem:[#allocation10 + $0xd70] sm:$0xff] }
 0x414   :  { %4988 = vmatpush1.bf16.msra.mxu0 %v6908_v42  ;;  %v1670_v42 = vld [vmem:[#allocation10 + $0xb38] sm:$0xff] }
 0x415   :  { %5070 = vmatpush1.bf16.msra.mxu1 %v6910_v43  ;;  %4989 = vmatprep.subr.bf16.mxu0 %v6925_v44  ;;  %v1678_v43 = vld [vmem:[#allocation10 + $0xb78] sm:$0xff]  ;;  %v7020_v44 = vcombine.low %v1653_v27, %v1661_v28  ;;  %v7101_v27 = vcombine.high %v1733_v18, %v1741_v19 }
 0x416   :  { %5071 = vmatprep.subr.bf16.mxu1 %v6927_v46  ;;  %v7022_v46 = vcombine.low %v1654_v30, %v1662_v31  ;;  %v7039_v50 = vcombine.high %v1670_v42, %v1678_v43  ;;  %v1749_v30 = vld [vmem:[#allocation10 + $0xdb0] sm:$0xff] }
 0x417   :  { %v1757_v31 = vld [vmem:[#allocation10 + $0xdf0] sm:$0xff] }
 0x418   :  { %4990 = vmatpush1.bf16.msra.mxu0 %v6924_v54  ;;  %v1693_v54 = vld [vmem:[#allocation10 + $0xbf0] sm:$0xff]  ;;  %v7117_v39 = vcombine.high %v1749_v30, %v1757_v31 }
 0x419   :  { %5072 = vmatpush1.bf16.msra.mxu1 %v6926_v55  ;;  %5000 = vmatprep.subr.bf16.mxu0 %v6941_v24  ;;  %v7053_v62 = vcombine.high %v1685_v51, %v1693_v54 }
 0x41a   :  { %5082 = vmatprep.subr.bf16.mxu1 %v6943_v56  ;;  %v1686_v56 = vld [vmem:[#allocation10 + $0xbb8] sm:$0xff] }
 0x41b   :  { %4992 = vmatmul.mubr.bf16.vlgmr.msra.gmra.mrb[20].mxu0 %v8337_v36 }
 0x41c   :  { %5074 = vmatmul.mubr.bf16.vlgmr.msra.gmra.mrb[20].mxu1 %v8337_v36  ;;  %5001 = vmatpush1.bf16.msra.mxu0 %v6940_v58  ;;  %v6974_v36 = vcombine.low %v1606_v1, %v1614_v2  ;;  %v1701_v1 = vld [vmem:[#allocation10 + $0xc30] sm:$0xff] }
 0x41d   :  { %5032 = vmatprep.mubr.bf16.mxu0 %v8341_v45  ;;  %5083 = vmatpush1.bf16.msra.mxu1 %v6942_v61  ;;  %v1709_v2 = vld [vmem:[#allocation10 + $0xc70] sm:$0xff] }
 0x41e   :  { %5114 = vmatprep.mubr.bf16.mxu1 %v8341_v45  ;;  %5002 = vmatprep.subr.bf16.mxu0 %v6957_v41  ;;  %v6988_v45 = vcombine.low %v1621_v7, %v1629_v9  ;;  %v7038_v41 = vcombine.low %v1670_v42, %v1678_v43  ;;  %v7069_v7 = vcombine.high %v1701_v1, %v1709_v2  ;;  %v1765_v42 = vld [vmem:[#allocation10 + $0xe30] sm:$0xff] }
 0x41f   :  { %5084 = vmatprep.subr.bf16.mxu1 %v6959_v0  ;;  %v7055_v0 = vcombine.high %v1686_v56, %v1694_v13  ;;  %v1773_v43 = vld [vmem:[#allocation10 + $0xe70] sm:$0xff] }
 0x420   :  { %5003 = vmatpush1.bf16.msra.mxu0 %v6956_v3  ;;  %v1702_v3 = vld [vmem:[#allocation10 + $0xc38] sm:$0xff] }
 0x421   :  { %5085 = vmatpush1.bf16.msra.mxu1 %v6958_v4  ;;  %5004 = vmatprep.subr.bf16.mxu0 %v6973_v5  ;;  %v1710_v4 = vld [vmem:[#allocation10 + $0xc78] sm:$0xff]  ;;  %v7052_v5 = vcombine.low %v1685_v51, %v1693_v54  ;;  %v7133_v51 = vcombine.high %v1765_v42, %v1773_v43 }
 0x422   :  { %5086 = vmatprep.subr.bf16.mxu1 %v6975_v6  ;;  %v7054_v6 = vcombine.low %v1686_v56, %v1694_v13  ;;  %v7071_v9 = vcombine.high %v1702_v3, %v1710_v4  ;;  %v1781_v56 = vld [vmem:[#allocation10 + $0xeb0] sm:$0xff] }
 0x423   :  { %v1789_v13 = vld [vmem:[#allocation10 + $0xef0] sm:$0xff] }
 0x424   :  { %5005 = vmatpush1.bf16.msra.mxu0 %v6972_v12  ;;  %v1718_v12 = vld [vmem:[#allocation10 + $0xcb8] sm:$0xff] }
 0x425   :  { %5087 = vmatpush1.bf16.msra.mxu1 %v6974_v36  ;;  %5006 = vmatprep.subr.bf16.mxu0 %v6989_v14  ;;  %v1726_v36 = vld [vmem:[#allocation10 + $0xcf8] sm:$0xff]  ;;  %v7068_v14 = vcombine.low %v1701_v1, %v1709_v2 }
 0x426   :  { %5088 = vmatprep.subr.bf16.mxu1 %v6991_v15  ;;  %v7070_v15 = vcombine.low %v1702_v3, %v1710_v4  ;;  %v7087_v17 = vcombine.high %v1718_v12, %v1726_v36  ;;  %v1798_v1 = vld [vmem:[#allocation10 + $0xf38] sm:$0xff]  ;;  %v8392_v3 = vld [vmem:[#allocation11] sm:$0xff]  ;;  %v7148_v4 = vcombine.low %v1781_v56, %v1789_v13 }
 0x427   :  { %v1806_v2 = vld [vmem:[#allocation10 + $0xf78] sm:$0xff] }
 0x428   :  { %5007 = vmatpush1.bf16.msra.mxu0 %v6988_v45  ;;  %v1734_v45 = vld [vmem:[#allocation10 + $0xd38] sm:$0xff] }
 0x429   :  { %5089 = vmatpush1.bf16.msra.mxu1 %v6990_v20  ;;  %5008 = vmatprep.subr.bf16.mxu0 %v7005_v21  ;;  %v1742_v20 = vld [vmem:[#allocation10 + $0xd78] sm:$0xff]  ;;  %v7084_v21 = vcombine.low %v1717_v10, %v1725_v11  ;;  %v1821_v10 = vld [vmem:[#allocation10 + $0xff0] sm:$0xff]  ;;  %v1834_v11 = vrot.slane %v8392_v3, %v8306_v25 }
 0x42a   :  { %5090 = vmatprep.subr.bf16.mxu1 %v7007_v26  ;;  %v7086_v26 = vcombine.low %v1718_v12, %v1726_v36  ;;  %v7103_v28 = vcombine.high %v1734_v45, %v1742_v20  ;;  %v1814_v12 = vld [vmem:[#allocation10 + $0xfb8] sm:$0xff] }
 0x42b   :  { %v1822_v36 = vld [vmem:[#allocation10 + $0xff8] sm:$0xff] }
 0x42c   :  { %5009 = vmatpush1.bf16.msra.mxu0 %v7004_v32  ;;  %v1750_v32 = vld [vmem:[#allocation10 + $0xdb8] sm:$0xff] }
 0x42d   :  { %5091 = vmatpush1.bf16.msra.mxu1 %v7006_v33  ;;  %5010 = vmatprep.subr.bf16.mxu0 %v7021_v34  ;;  %v1758_v33 = vld [vmem:[#allocation10 + $0xdf8] sm:$0xff]  ;;  %v7100_v34 = vcombine.low %v1733_v18, %v1741_v19  ;;  %v7183_v18 = vcombine.high %v1814_v12, %v1822_v36  ;;  %v7494_v19 = vadd.f32 %v8372_v52, %v1834_v11 }
 0x42e   :  { %v8384_v49 = vpop.f32.mrb[12].mxu0  ;;  %5092 = vmatprep.subr.bf16.mxu1 %v7023_v37  ;;  %v7102_v37 = vcombine.low %v1734_v45, %v1742_v20  ;;  %v7119_v40 = vcombine.high %v1750_v32, %v1758_v33 }
 0x42f   :  { %v8386_v55 = vpop.f32.mrb[12].mxu1  ;;  %v8388_v24 = vpop.f32.mrb[13].mxu0 }
 0x430   :  { %v8390_v57 = vpop.f32.mrb[13].mxu1  ;;  %v4710_v58 = vpop.f32.mrb[14].mxu0  ;;  %5011 = vmatpush1.bf16.msra.mxu0 %v7020_v44  ;;  %v1766_v44 = vld [vmem:[#allocation10 + $0xe38] sm:$0xff] }
 0x431   :  { %v4792_v35 = vpop.f32.mrb[14].mxu1  ;;  %5093 = vmatpush1.bf16.msra.mxu1 %v7022_v46  ;;  %v4711_v61 = vpop.f32.mrb[15].mxu0  ;;  %5012 = vmatprep.subr.bf16.mxu0 %v7037_v47  ;;  %v1774_v46 = vld [vmem:[#allocation10 + $0xe78] sm:$0xff]  ;;  %v7116_v47 = vcombine.low %v1749_v30, %v1757_v31  ;;  %v7782_v31 = vld [vmem:[#allocation13] sm:$0xff]  }
 0x432   :  { %v4793_v63 = vpop.f32.mrb[15].mxu1  ;;  %5094 = vmatprep.subr.bf16.mxu1 %v7039_v50  ;;  %v7118_v50 = vcombine.low %v1750_v32, %v1758_v33  ;;  %v7135_v54 = vcombine.high %v1766_v44, %v1774_v46  ;;  %v1782_v58 = vld [vmem:[#allocation10 + $0xeb8] sm:$0xff]  ;;  %v7132_v35 = vcombine.low %v1765_v42, %v1773_v43  ;;  %v7134_v61 = vcombine.low %v1766_v44, %v1774_v46  ;;  %v7783_v32 = vld [vmem:[#allocation13 + $0x80] sm:$0xff]   ;;  %v7789_v42 = vld [vmem:[#allocation13 + $0xd0] sm:$0xff]  }
 0x433   :  { %v1797_v63 = vld [vmem:[#allocation10 + $0xf30] sm:$0xff]  ;;  %v7784_v33 = vld [vmem:[#allocation13 + $0x48] sm:$0xff]   ;;  %v7790_v43 = vld [vmem:[#allocation13 + $0x10] sm:$0xff]  }
 0x434   :  { %5013 = vmatpush1.bf16.msra.mxu0 %v7036_v60  ;;  %v1790_v60 = vld [vmem:[#allocation10 + $0xef8] sm:$0xff]  ;;  %v7791_v44 = vld [vmem:[#allocation13 + $0x90] sm:$0xff]   ;;  %v7792_v46 = vld [vmem:[#allocation13 + $0x58] sm:$0xff]  }
 0x435   :  { %5095 = vmatpush1.bf16.msra.mxu1 %v7038_v41  ;;  %5014 = vmatprep.subr.bf16.mxu0 %v7053_v62  ;;  %v7149_v41 = vcombine.high %v1781_v56, %v1789_v13  ;;  %v7151_v62 = vcombine.high %v1782_v58, %v1790_v60  ;;  %v7798_v56 = vld [vmem:[#allocation13 + $0x20] sm:$0xff]  }
 0x436   :  { %5096 = vmatprep.subr.bf16.mxu1 %v7055_v0  ;;  %v1805_v0 = vld [vmem:[#allocation10 + $0xf70] sm:$0xff] }
 0x437   :  { %v7799_v13 = vld [vmem:[#allocation13 + $0xa0] sm:$0xff]  }
 0x438   :  { %5015 = vmatpush1.bf16.msra.mxu0 %v7052_v5  ;;  %v7150_v5 = vcombine.low %v1782_v58, %v1790_v60  ;;  %v7800_v58 = vld [vmem:[#allocation13 + $0x68] sm:$0xff]  }
 0x439   :  { %5097 = vmatpush1.bf16.msra.mxu1 %v7054_v6  ;;  %5016 = vmatprep.subr.bf16.mxu0 %v7069_v7  ;;  %v7165_v6 = vcombine.high %v1797_v63, %v1805_v0  ;;  %v7167_v7 = vcombine.high %v1798_v1, %v1806_v2  ;;  %v7801_v60 = vld [vmem:[#allocation13 + $0xe8] sm:$0xff]  }
 0x43a   :  { %5098 = vmatprep.subr.bf16.mxu1 %v7071_v9  ;;  %v1813_v9 = vld [vmem:[#allocation10 + $0xfb0] sm:$0xff] }
 0x43b   :  { %v7180_v20 = vcombine.low %v1813_v9, %v1821_v10 }
 0x43c   :  { %5017 = vmatpush1.bf16.msra.mxu0 %v7068_v14  ;;  %v1842_v14 = vrot.slane %v8392_v3, %v8313_v29 }
 0x43d   :  { %5099 = vmatpush1.bf16.msra.mxu1 %v7070_v15  ;;  %5018 = vmatprep.subr.bf16.mxu0 %v7085_v16  ;;  %v7164_v15 = vcombine.low %v1797_v63, %v1805_v0  ;;  %v7166_v16 = vcombine.low %v1798_v1, %v1806_v2  ;;  %v7803_v63 = vld [vmem:[#allocation13 + $0xa8] sm:$0xff]   ;;  %v7804_v0 = vld [vmem:[#allocation13 + $0x70] sm:$0xff]   ;;  %v1838_v1 = vrot.slane %v8392_v3, %v8320_v38 }
 0x43e   :  { %5100 = vmatprep.subr.bf16.mxu1 %v7087_v17  ;;  %v7181_v17 = vcombine.high %v1813_v9, %v1821_v10  ;;  %v7496_v45 = vadd.f32 %v8374_v53, %v1842_v14  ;;  %v7785_v53 = vld [vmem:[#allocation13 + $0xc8] sm:$0xff]   ;;  %v7805_v2 = vld [vmem:[#allocation13 + $0xf0] sm:$0xff]   ;;  %v7808_v10 = vld [vmem:[#allocation13 + $0x78] sm:$0xff]  }
 0x43f   :  { %v7807_v9 = vld [vmem:[#allocation13 + $0xb0] sm:$0xff]   ;;  %v7495_v11 = vadd.f32 %v8370_v8, %v1838_v1  ;;  %v7814_v8 = vld [vmem:[#allocation13 + $0x100] sm:$0xff]  }
 0x440   :  { %5019 = vmatpush1.bf16.msra.mxu0 %v7084_v21  ;;  %v7182_v21 = vcombine.low %v1814_v12, %v1822_v36  ;;  %v5126_v30 = vmax.f32 %v7496_v45, 0.0  ;;  %v7809_v12 = vld [vmem:[#allocation13 + $0xf8] sm:$0xff]   ;;  %v7839_v1 = vld [vmem:[#allocation13 + $0x1b0] sm:$0xff]  }
 0x441   :  { %5101 = vmatpush1.bf16.msra.mxu1 %v7086_v26  ;;  %5020 = vmatprep.subr.bf16.mxu0 %v7101_v27  ;;  %v7780_v26 = vld [vmem:[#allocation13 + $0x40] sm:$0xff]  }
 0x442   :  { %5102 = vmatprep.subr.bf16.mxu1 %v7103_v28  ;;  %v7781_v27 = vld [vmem:[#allocation13 + $0xc0] sm:$0xff]   ;;  %v5124_v28 = vmax.f32 %v7494_v19, 0.0 }
 0x443   :  { %v7813_v19 = vld [vmem:[#allocation13 + $0x1c0] sm:$0xff]  }
 0x444   :  { %5021 = vmatpush1.bf16.msra.mxu0 %v7100_v34  ;;  %v5140_v52 = vpack.c.bf16 %v5124_v28, %v5124_v28  ;;  %v5142_v34 = vpack.c.bf16 %v5126_v30, %v5126_v30  ;;  %v7817_v28 = vld [vmem:[#allocation13 + $0x1c8] sm:$0xff]  }
 0x445   :  { %5103 = vmatpush1.bf16.msra.mxu1 %v7102_v37  ;;  %5022 = vmatprep.subr.bf16.mxu0 %v7117_v39  ;;  %v7786_v37 = vld [vmem:[#allocation13 + $0x8] sm:$0xff]  }
 0x446   :  { %5104 = vmatprep.subr.bf16.mxu1 %v7119_v40  ;;  %v7787_v39 = vld [vmem:[#allocation13 + $0x88] sm:$0xff]   ;;  %v7788_v40 = vld [vmem:[#allocation13 + $0x50] sm:$0xff]  }
 0x448   :  { %5023 = vmatpush1.bf16.msra.mxu0 %v7116_v47  ;;  %v7793_v47 = vld [vmem:[#allocation13 + $0xd8] sm:$0xff]  }
 0x449   :  { %5105 = vmatpush1.bf16.msra.mxu1 %v7118_v50  ;;  %5024 = vmatprep.subr.bf16.mxu0 %v7133_v51  ;;  %v7795_v50 = vld [vmem:[#allocation13 + $0x98] sm:$0xff]   ;;  %v7796_v51 = vld [vmem:[#allocation13 + $0x60] sm:$0xff]  }
 0x44a   :  { %5106 = vmatprep.subr.bf16.mxu1 %v7135_v54  ;;  %v7797_v54 = vld [vmem:[#allocation13 + $0xe0] sm:$0xff]  }
 0x44c   :  { %5025 = vmatpush1.bf16.msra.mxu0 %v7132_v35  ;;  %v1849_v35 = vsub.s32 5, %v8298_v22 }
 0x44d   :  { %5107 = vmatpush1.bf16.msra.mxu1 %v7134_v61  ;;  %5026 = vmatprep.subr.bf16.mxu0 %v7149_v41  ;;  %v1857_v61 = vsub.s32 7, %v8298_v22  ;;  %v7802_v41 = vld [vmem:[#allocation13 + $0x28] sm:$0xff]  }
 0x44e   :  { %5108 = vmatprep.subr.bf16.mxu1 %v7151_v62  ;;  %v1830_v62 = vrot.slane %v8392_v3, %v8301_v23 }
 0x450   :  { %5027 = vmatpush1.bf16.msra.mxu0 %v7148_v4  ;;  %v1850_v4 = vrot.slane %v8392_v3, %v1849_v35 }
 0x451   :  { %5109 = vmatpush1.bf16.msra.mxu1 %v7150_v5  ;;  %5028 = vmatprep.subr.bf16.mxu0 %v7165_v6  ;;  %v1858_v5 = vrot.slane %v8392_v3, %v1857_v61  ;;  %v7806_v6 = vld [vmem:[#allocation13 + $0x30] sm:$0xff]  }
 0x452   :  { %5110 = vmatprep.subr.bf16.mxu1 %v7167_v7  ;;  %v7493_v7 = vadd.f32 %v8368_v48, %v1830_v62  ;;  %v7498_v36 = vadd.f32 %v8388_v24, %v1850_v4  ;;  %v5125_v48 = vmax.f32 %v7495_v11, 0.0  ;;  %v7815_v24 = vld [vmem:[#allocation13 + $0x180] sm:$0xff]   ;;  %v7837_v62 = vld [vmem:[#allocation13 + $0x1f0] sm:$0xff]  }
 0x453   :  { %v7500_v14 = vadd.f32 %v8390_v57, %v1858_v5  ;;  %v7816_v57 = vld [vmem:[#allocation13 + $0x148] sm:$0xff]   ;;  %v7841_v5 = vld [vmem:[#allocation13 + $0x1f8] sm:$0xff]   ;;  %v7845_v11 = vld [vmem:[#allocation13 + $0x2c0] sm:$0xff]  }
 0x454   :  { %5029 = vmatpush1.bf16.msra.mxu0 %v7164_v15  ;;  %v7810_v15 = vld [vmem:[#allocation13 + $0x38] sm:$0xff]   ;;  %v5128_v45 = vmax.f32 %v7498_v36, 0.0  ;;  %v7847_v36 = vld [vmem:[#allocation13 + $0x280] sm:$0xff]  }
 0x455   :  { %5111 = vmatpush1.bf16.msra.mxu1 %v7166_v16  ;;  %5030 = vmatprep.subr.bf16.mxu0 %v7181_v17  ;;  %v5123_v16 = vmax.f32 %v7493_v7, 0.0  ;;  %v7811_v17 = vld [vmem:[#allocation13 + $0xb8] sm:$0xff]  }
 0x456   :  { %5112 = vmatprep.subr.bf16.mxu1 %v7183_v18  ;;  %v7812_v18 = vld [vmem:[#allocation13 + $0x140] sm:$0xff]  }
 0x458   :  { %5031 = vmatpush1.bf16.msra.mxu0 %v7180_v20  ;;  %v5130_v20 = vmax.f32 %v7500_v14, 0.0  ;;  %v7848_v14 = vld [vmem:[#allocation13 + $0x248] sm:$0xff]  }
 0x459   :  { %5113 = vmatpush1.bf16.msra.mxu1 %v7182_v21  ;;  %7313 = vmatprep.subr.bf16.mxu0 %v7780_v26  ;;  %v5139_v21 = vpack.c.bf16 %v5123_v16, %v5123_v16  ;;  %v5141_v26 = vpack.c.bf16 %v5125_v48, %v5125_v48  ;;  %v7850_v16 = vld [vmem:[#allocation13 + $0x208] sm:$0xff]   ;;  %v7853_v48 = vld [vmem:[#allocation13 + $0x2d0] sm:$0xff]  }
 0x45a   :  { %7335 = vmatprep.subr.bf16.mxu1 %v7781_v27  ;;  %v5144_v27 = vpack.c.bf16 %v5128_v45, %v5128_v45  ;;  %v5146_v30 = vpack.c.bf16 %v5130_v20, %v5130_v20  ;;  %v7855_v45 = vld [vmem:[#allocation13 + $0x290] sm:$0xff]   ;;  %v7856_v20 = vld [vmem:[#allocation13 + $0x258] sm:$0xff]  }
 0x45b   :  { %5033 = vmatmul.mubr.bf16.vlgmr.msra.gmra.mrb[20].mxu0 %v8350_v59 }
 0x45c   :  { %5115 = vmatmul.mubr.bf16.vlgmr.msra.gmra.mrb[20].mxu1 %v8350_v59  ;;  %7314 = vmatpush3.bf16.msra.mxu0 %v7782_v31  ;;  %v7794_v59 = vld [vmem:[#allocation13 + $0x18] sm:$0xff]   ;;  %v7818_v31 = vld [vmem:[#allocation13 + $0x108] sm:$0xff]  }
 0x45d   :  { %6218 = vmatprep.mubr.bf16.mxu0 %v5140_v52  ;;  %7336 = vmatpush3.bf16.msra.mxu1 %v7783_v32  ;;  %v7819_v32 = vld [vmem:[#allocation13 + $0x188] sm:$0xff]   ;;  %v7821_v52 = vld [vmem:[#allocation13 + $0x1d0] sm:$0xff]  }
 0x45e   :  { %6258 = vmatprep.mubr.bf16.mxu1 %v5142_v34  ;;  %7315 = vmatprep.subr.bf16.mxu0 %v7784_v33  ;;  %v7820_v33 = vld [vmem:[#allocation13 + $0x150] sm:$0xff]  }
 0x45f   :  { %7337 = vmatprep.subr.bf16.mxu1 %v7785_v53  ;;  %v7822_v53 = vld [vmem:[#allocation13 + $0x110] sm:$0xff]  }
 0x460   :  { %7316 = vmatpush3.bf16.msra.mxu0 %v7786_v37  ;;  %v7823_v34 = vld [vmem:[#allocation13 + $0x190] sm:$0xff]   ;;  %v7824_v37 = vld [vmem:[#allocation13 + $0x158] sm:$0xff]  }
 0x461   :  { %7338 = vmatpush3.bf16.msra.mxu1 %v7787_v39  ;;  %7317 = vmatprep.subr.bf16.mxu0 %v7788_v40  ;;  %v7825_v39 = vld [vmem:[#allocation13 + $0x1d8] sm:$0xff]  }
 0x462   :  { %7339 = vmatprep.subr.bf16.mxu1 %v7789_v42  ;;  %v7826_v40 = vld [vmem:[#allocation13 + $0x118] sm:$0xff]  }
 0x463   :  { %v7827_v42 = vld [vmem:[#allocation13 + $0x198] sm:$0xff]  }
 0x464   :  { %7318 = vmatpush3.bf16.msra.mxu0 %v7790_v43  ;;  %v7828_v43 = vld [vmem:[#allocation13 + $0x160] sm:$0xff]  }
 0x465   :  { %7340 = vmatpush3.bf16.msra.mxu1 %v7791_v44  ;;  %7319 = vmatprep.subr.bf16.mxu0 %v7792_v46  ;;  %v7829_v44 = vld [vmem:[#allocation13 + $0x1e0] sm:$0xff]  }
 0x466   :  { %7341 = vmatprep.subr.bf16.mxu1 %v7793_v47  ;;  %v7830_v46 = vld [vmem:[#allocation13 + $0x120] sm:$0xff]   ;;  %v1845_v47 = vsub.s32 4, %v8298_v22 }
 0x468   :  { %7320 = vmatpush3.bf16.msra.mxu0 %v7794_v59  ;;  %v7831_v59 = vld [vmem:[#allocation13 + $0x1a0] sm:$0xff]  }
 0x469   :  { %7342 = vmatpush3.bf16.msra.mxu1 %v7795_v50  ;;  %7321 = vmatprep.subr.bf16.mxu0 %v7796_v51  ;;  %v7832_v50 = vld [vmem:[#allocation13 + $0x168] sm:$0xff]   ;;  %v1853_v51 = vsub.s32 6, %v8298_v22 }
 0x46a   :  { %7343 = vmatprep.subr.bf16.mxu1 %v7797_v54  ;;  %v7833_v54 = vld [vmem:[#allocation13 + $0x1e8] sm:$0xff]  }
 0x46c   :  { %7322 = vmatpush3.bf16.msra.mxu0 %v7798_v56  ;;  %v7834_v56 = vld [vmem:[#allocation13 + $0x128] sm:$0xff]  }
 0x46d   :  { %7344 = vmatpush3.bf16.msra.mxu1 %v7799_v13  ;;  %7323 = vmatprep.subr.bf16.mxu0 %v7800_v58  ;;  %v1846_v13 = vrot.slane %v8392_v3, %v1845_v47  ;;  %v7835_v58 = vld [vmem:[#allocation13 + $0x1a8] sm:$0xff]  }
 0x46e   :  { %7345 = vmatprep.subr.bf16.mxu1 %v7801_v60  ;;  %v7836_v60 = vld [vmem:[#allocation13 + $0x170] sm:$0xff]  }
 0x470   :  { %7324 = vmatpush3.bf16.msra.mxu0 %v7802_v41  ;;  %v1854_v41 = vrot.slane %v8392_v3, %v1853_v51  ;;  %v7843_v3 = vld [vmem:[#allocation13 + $0x1b8] sm:$0xff]  }
 0x471   :  { %7346 = vmatpush3.bf16.msra.mxu1 %v7803_v63  ;;  %7325 = vmatprep.subr.bf16.mxu0 %v7804_v0  ;;  %v7838_v63 = vld [vmem:[#allocation13 + $0x130] sm:$0xff]   ;;  %v7497_v0 = vadd.f32 %v8384_v49, %v1846_v13  ;;  %v7846_v49 = vld [vmem:[#allocation13 + $0x200] sm:$0xff]  }
 0x472   :  { %7347 = vmatprep.subr.bf16.mxu1 %v7805_v2  ;;  %v7840_v2 = vld [vmem:[#allocation13 + $0x178] sm:$0xff]   ;;  %v7499_v4 = vadd.f32 %v8386_v55, %v1854_v41 }
 0x473   :  { %v5127_v7 = vmax.f32 %v7497_v0, 0.0 }
 0x474   :  { %7326 = vmatpush3.bf16.msra.mxu0 %v7806_v6  ;;  %v7842_v6 = vld [vmem:[#allocation13 + $0x138] sm:$0xff]  }
 0x475   :  { %7348 = vmatpush3.bf16.msra.mxu1 %v7807_v9  ;;  %7327 = vmatprep.subr.bf16.mxu0 %v7808_v10  ;;  %v7844_v9 = vld [vmem:[#allocation13 + $0x240] sm:$0xff]   ;;  %v5129_v10 = vmax.f32 %v7499_v4, 0.0 }
 0x476   :  { %7349 = vmatprep.subr.bf16.mxu1 %v7809_v12  ;;  %v5143_v12 = vpack.c.bf16 %v5127_v7, %v5127_v7  ;;  %v7876_v7 = vld [vmem:[#allocation13 + $0x340] sm:$0xff]  }
 0x477   :  { %v5145_v55 = vpack.c.bf16 %v5129_v10, %v5129_v10  ;;  %v7878_v10 = vld [vmem:[#allocation13 + $0x300] sm:$0xff]  }
 0x478   :  { %7328 = vmatpush3.bf16.msra.mxu0 %v7810_v15  ;;  %v7849_v15 = vld [vmem:[#allocation13 + $0x2c8] sm:$0xff]  }
 0x479   :  { %7350 = vmatpush3.bf16.msra.mxu1 %v7811_v17  ;;  %7357 = vmatprep.subr.bf16.mxu0 %v7812_v18  ;;  %v7851_v17 = vld [vmem:[#allocation13 + $0x288] sm:$0xff]   ;;  %v7852_v18 = vld [vmem:[#allocation13 + $0x250] sm:$0xff]  }
 0x47a   :  { %7379 = vmatprep.subr.bf16.mxu1 %v7813_v19  ;;  %v7854_v19 = vld [vmem:[#allocation13 + $0x210] sm:$0xff]  }
 0x47b   :  { %6219 = vmatmul.mubr.bf16.vlgmr.msra.gmra.mrb[24].mxu0 %v5139_v21  ;;  %v7858_v21 = vld [vmem:[#allocation13 + $0x218] sm:$0xff]  }
 0x47c   :  { %6259 = vmatmul.mubr.bf16.vlgmr.msra.gmra.mrb[24].mxu1 %v5141_v26  ;;  %7358 = vmatpush3.bf16.msra.mxu0 %v7814_v8  ;;  %v7857_v8 = vld [vmem:[#allocation13 + $0x2d8] sm:$0xff]   ;;  %v7860_v26 = vld [vmem:[#allocation13 + $0x260] sm:$0xff]  }
 0x47d   :  { %6298 = vmatprep.mubr.bf16.mxu0 %v5144_v27  ;;  %7380 = vmatpush3.bf16.msra.mxu1 %v7815_v24  ;;  %v7859_v24 = vld [vmem:[#allocation13 + $0x298] sm:$0xff]   ;;  %v7862_v27 = vld [vmem:[#allocation13 + $0x220] sm:$0xff]  }
 0x47e   :  { %6338 = vmatprep.mubr.bf16.mxu1 %v5146_v30  ;;  %7359 = vmatprep.subr.bf16.mxu0 %v7816_v57  ;;  %v7861_v57 = vld [vmem:[#allocation13 + $0x2e0] sm:$0xff]   ;;  %v8428_v30 = vld [vmem:[#allocation11 + $0x8] sm:$0xff] }
 0x47f   :  { %7381 = vmatprep.subr.bf16.mxu1 %v7817_v28  ;;  %v7863_v28 = vld [vmem:[#allocation13 + $0x2a0] sm:$0xff]  }
 0x480   :  { %7360 = vmatpush3.bf16.msra.mxu0 %v7818_v31  ;;  %v7864_v31 = vld [vmem:[#allocation13 + $0x268] sm:$0xff]  }
 0x481   :  { %7382 = vmatpush3.bf16.msra.mxu1 %v7819_v32  ;;  %7361 = vmatprep.subr.bf16.mxu0 %v7820_v33  ;;  %v7865_v32 = vld [vmem:[#allocation13 + $0x2e8] sm:$0xff]   ;;  %v1866_v33 = vrot.slane %v8428_v30, %v8306_v25 }
 0x482   :  { %7383 = vmatprep.subr.bf16.mxu1 %v7821_v52  ;;  %v7866_v52 = vld [vmem:[#allocation13 + $0x228] sm:$0xff]  }
 0x484   :  { %7362 = vmatpush3.bf16.msra.mxu0 %v7822_v53  ;;  %v1862_v53 = vrot.slane %v8428_v30, %v8301_v23 }
 0x485   :  { %7384 = vmatpush3.bf16.msra.mxu1 %v7823_v34  ;;  %7363 = vmatprep.subr.bf16.mxu0 %v7824_v37  ;;  %v1874_v34 = vrot.slane %v8428_v30, %v8313_v29  ;;  %v7867_v37 = vld [vmem:[#allocation13 + $0x2a8] sm:$0xff]  }
 0x486   :  { %7385 = vmatprep.subr.bf16.mxu1 %v7825_v39  ;;  %v7868_v39 = vld [vmem:[#allocation13 + $0x270] sm:$0xff]  }
 0x488   :  { %7364 = vmatpush3.bf16.msra.mxu0 %v7826_v40 }
 0x489   :  { %7386 = vmatpush3.bf16.msra.mxu1 %v7827_v42  ;;  %7365 = vmatprep.subr.bf16.mxu0 %v7828_v43  ;;  %v1870_v42 = vrot.slane %v8428_v30, %v8320_v38  ;;  %v7869_v43 = vld [vmem:[#allocation13 + $0x2f0] sm:$0xff]  }
 0x48a   :  { %7387 = vmatprep.subr.bf16.mxu1 %v7829_v44 }
 0x48c   :  { %7366 = vmatpush3.bf16.msra.mxu0 %v7830_v46 }
 0x48d   :  { %7388 = vmatpush3.bf16.msra.mxu1 %v7831_v59  ;;  %7367 = vmatprep.subr.bf16.mxu0 %v7832_v50 }
 0x48e   :  { %7389 = vmatprep.subr.bf16.mxu1 %v7833_v54  ;;  %v7870_v54 = vld [vmem:[#allocation13 + $0x230] sm:$0xff]  }
 0x490   :  { %7368 = vmatpush3.bf16.msra.mxu0 %v7834_v56 }
 0x491   :  { %7390 = vmatpush3.bf16.msra.mxu1 %v7835_v58  ;;  %7369 = vmatprep.subr.bf16.mxu0 %v7836_v60  ;;  %v7871_v58 = vld [vmem:[#allocation13 + $0x2b0] sm:$0xff]   ;;  %v7872_v60 = vld [vmem:[#allocation13 + $0x278] sm:$0xff]  }
 0x492   :  { %7391 = vmatprep.subr.bf16.mxu1 %v7837_v62 }
 0x494   :  { %7370 = vmatpush3.bf16.msra.mxu0 %v7838_v63  ;;  %v7873_v63 = vld [vmem:[#allocation13 + $0x2f8] sm:$0xff]  }
 0x495   :  { %7392 = vmatpush3.bf16.msra.mxu1 %v7839_v1  ;;  %7371 = vmatprep.subr.bf16.mxu0 %v7840_v2  ;;  %v7874_v2 = vld [vmem:[#allocation13 + $0x238] sm:$0xff]  }
 0x496   :  { %7393 = vmatprep.subr.bf16.mxu1 %v7841_v5 }
 0x498   :  { %7372 = vmatpush3.bf16.msra.mxu0 %v7842_v6  ;;  %v7875_v6 = vld [vmem:[#allocation13 + $0x2b8] sm:$0xff]  }
 0x499   :  { %7394 = vmatpush3.bf16.msra.mxu1 %v7843_v3  ;;  %7401 = vmatprep.subr.bf16.mxu0 %v7844_v9  ;;  %v7877_v9 = vld [vmem:[#allocation13 + $0x3c0] sm:$0xff]  }
 0x49a   :  { %7423 = vmatprep.subr.bf16.mxu1 %v7845_v11 }
 0x49b   :  { %6299 = vmatmul.mubr.bf16.vlgmr.msra.gmra.mrb[28].mxu0 %v5143_v12  ;;  %v7880_v12 = vld [vmem:[#allocation13 + $0x348] sm:$0xff]  }
 0x49c   :  { %6339 = vmatmul.mubr.bf16.vlgmr.msra.gmra.mrb[28].mxu1 %v5145_v55  ;;  %7402 = vmatpush3.bf16.msra.mxu0 %v7846_v49  ;;  %v7879_v49 = vld [vmem:[#allocation13 + $0x380] sm:$0xff]   ;;  %v7882_v55 = vld [vmem:[#allocation13 + $0x308] sm:$0xff]  }
 0x49d   :  { %7424 = vmatpush3.bf16.msra.mxu1 %v7847_v36  ;;  %7403 = vmatprep.subr.bf16.mxu0 %v7848_v14  ;;  %v7881_v14 = vld [vmem:[#allocation13 + $0x3c8] sm:$0xff]  }
 0x49e   :  { %7425 = vmatprep.subr.bf16.mxu1 %v7849_v15  ;;  %v7883_v15 = vld [vmem:[#allocation13 + $0x388] sm:$0xff]  }
 0x4a0   :  { %7404 = vmatpush3.bf16.msra.mxu0 %v7850_v16  ;;  %v7884_v16 = vld [vmem:[#allocation13 + $0x350] sm:$0xff]  }
 0x4a1   :  { %7426 = vmatpush3.bf16.msra.mxu1 %v7851_v17  ;;  %7405 = vmatprep.subr.bf16.mxu0 %v7852_v18  ;;  %v7885_v17 = vld [vmem:[#allocation13 + $0x3d0] sm:$0xff]  }
 0x4a2   :  { %7427 = vmatprep.subr.bf16.mxu1 %v7853_v48  ;;  %v7886_v18 = vld [vmem:[#allocation13 + $0x310] sm:$0xff]  }
 0x4a3   :  { %v7887_v48 = vld [vmem:[#allocation13 + $0x390] sm:$0xff]  }
 0x4a4   :  { %7406 = vmatpush3.bf16.msra.mxu0 %v7854_v19  ;;  %v7888_v19 = vld [vmem:[#allocation13 + $0x358] sm:$0xff]  }
 0x4a5   :  { %7428 = vmatpush3.bf16.msra.mxu1 %v7855_v45  ;;  %7407 = vmatprep.subr.bf16.mxu0 %v7856_v20  ;;  %v7889_v45 = vld [vmem:[#allocation13 + $0x3d8] sm:$0xff]  }
 0x4a6   :  { %7429 = vmatprep.subr.bf16.mxu1 %v7857_v8  ;;  %v7890_v20 = vld [vmem:[#allocation13 + $0x318] sm:$0xff]  }
 0x4a7   :  { %v7891_v8 = vld [vmem:[#allocation13 + $0x398] sm:$0xff]  }
 0x4a8   :  { %7408 = vmatpush3.bf16.msra.mxu0 %v7858_v21  ;;  %v7892_v21 = vld [vmem:[#allocation13 + $0x360] sm:$0xff]  }
 0x4a9   :  { %7430 = vmatpush3.bf16.msra.mxu1 %v7859_v24  ;;  %7409 = vmatprep.subr.bf16.mxu0 %v7860_v26  ;;  %v7893_v24 = vld [vmem:[#allocation13 + $0x3e0] sm:$0xff]  }
 0x4aa   :  { %7431 = vmatprep.subr.bf16.mxu1 %v7861_v57  ;;  %v7894_v26 = vld [vmem:[#allocation13 + $0x320] sm:$0xff]  }
 0x4ab   :  { %v7895_v57 = vld [vmem:[#allocation13 + $0x3a0] sm:$0xff]  }
 0x4ac   :  { %7410 = vmatpush3.bf16.msra.mxu0 %v7862_v27  ;;  %v7896_v27 = vld [vmem:[#allocation13 + $0x368] sm:$0xff]  }
 0x4ad   :  { %7432 = vmatpush3.bf16.msra.mxu1 %v7863_v28  ;;  %7411 = vmatprep.subr.bf16.mxu0 %v7864_v31  ;;  %v7897_v28 = vld [vmem:[#allocation13 + $0x3e8] sm:$0xff]  }
 0x4ae   :  { %v4870_v40 = vpop.f32.mrb[16].mxu0  ;;  %7433 = vmatprep.subr.bf16.mxu1 %v7865_v32  ;;  %v7898_v31 = vld [vmem:[#allocation13 + $0x328] sm:$0xff]  }
 0x4af   :  { %v4952_v44 = vpop.f32.mrb[16].mxu1  ;;  %v4872_v46 = vpop.f32.mrb[17].mxu0  ;;  %v7501_v23 = vadd.f32 %v4870_v40, %v1862_v53  ;;  %v7899_v32 = vld [vmem:[#allocation13 + $0x3a8] sm:$0xff]   ;;  %v7902_v53 = vld [vmem:[#allocation13 + $0x330] sm:$0xff]   ;;  %v7906_v40 = vld [vmem:[#allocation13 + $0x338] sm:$0xff]  }
 0x4b0   :  { %v7502_v25 = vadd.f32 %v4872_v46, %v1866_v33  ;;  %v4954_v59 = vpop.f32.mrb[17].mxu1  ;;  %v4874_v50 = vpop.f32.mrb[18].mxu0  ;;  %7412 = vmatpush3.bf16.msra.mxu0 %v7866_v52  ;;  %v7503_v41 = vadd.f32 %v4952_v44, %v1870_v42  ;;  %v7900_v33 = vld [vmem:[#allocation13 + $0x370] sm:$0xff]   ;;  %v7907_v42 = vld [vmem:[#allocation13 + $0x3b8] sm:$0xff]   ;;  %v1886_v44 = vrot.slane %v8428_v30, %v1853_v51  ;;  %v1882_v46 = vrot.slane %v8428_v30, %v1849_v35 }
 0x4b1   :  { %v7504_v56 = vadd.f32 %v4954_v59, %v1874_v34  ;;  %v4956_v13 = vpop.f32.mrb[18].mxu1  ;;  %7434 = vmatpush3.bf16.msra.mxu1 %v7867_v37  ;;  %v4875_v29 = vpop.f32.mrb[19].mxu0  ;;  %7413 = vmatprep.subr.bf16.mxu0 %v7868_v39  ;;  %v5131_v4 = vmax.f32 %v7501_v23, 0.0  ;;  %v7901_v52 = vld [vmem:[#allocation13 + $0x3f0] sm:$0xff]   ;;  %v7904_v37 = vld [vmem:[#allocation13 + $0x378] sm:$0xff]  }
 0x4b2   :  { %v5132_v62 = vmax.f32 %v7502_v25, 0.0  ;;  %v4957_v38 = vpop.f32.mrb[19].mxu1  ;;  %7435 = vmatprep.subr.bf16.mxu1 %v7869_v43  ;;  %v5133_v3 = vmax.f32 %v7503_v41, 0.0  ;;  %v7903_v34 = vld [vmem:[#allocation13 + $0x3b0] sm:$0xff]   ;;  %v7905_v39 = vld [vmem:[#allocation13 + $0x3f8] sm:$0xff]   ;;  %v1878_v43 = vrot.slane %v8428_v30, %v1845_v47  ;;  %v1890_v25 = vrot.slane %v8428_v30, %v1857_v61 }
 0x4b3   :  { %v5134_v0 = vmax.f32 %v7504_v56, 0.0  ;;  %v5147_v11 = vpack.c.bf16 %v5131_v4, %v5131_v4  ;;  %v7184_v4 = vld [vmem:[#allocation14] ss:$0 sm:$0xff] }
 0x4b4   :  { %v5148_v1 = vpack.c.bf16 %v5132_v62, %v5132_v62  ;;  %7414 = vmatpush3.bf16.msra.mxu0 %v7870_v54  ;;  %v5149_v36 = vpack.c.bf16 %v5133_v3, %v5133_v3 }
 0x4b5   :  { %v5150_v5 = vpack.c.bf16 %v5134_v0, %v5134_v0  ;;  %7436 = vmatpush3.bf16.msra.mxu1 %v7871_v58  ;;  %7415 = vmatprep.subr.bf16.mxu0 %v7872_v60 }
 0x4b6   :  { %6378 = vmatprep.mubr.bf16.mxu0 %v5148_v1  ;;  %7437 = vmatprep.subr.bf16.mxu1 %v7873_v63 }
 0x4b7   :  { %6418 = vmatprep.mubr.bf16.mxu1 %v5150_v5 }
 0x4b8   :  { %7416 = vmatpush3.bf16.msra.mxu0 %v7874_v2 }
 0x4b9   :  { %7438 = vmatpush3.bf16.msra.mxu1 %v7875_v6  ;;  %7445 = vmatprep.subr.bf16.mxu0 %v7876_v7 }
 0x4ba   :  { %7467 = vmatprep.subr.bf16.mxu1 %v7877_v9 }
 0x4bb   :  { %6379 = vmatmul.mubr.bf16.vlgmr.msra.gmra.mrb[32].mxu0 %v5147_v11 }
 0x4bc   :  { %6419 = vmatmul.mubr.bf16.vlgmr.msra.gmra.mrb[32].mxu1 %v5149_v36  ;;  %7446 = vmatpush3.bf16.msra.mxu0 %v7878_v10 }
 0x4bd   :  { %7468 = vmatpush3.bf16.msra.mxu1 %v7879_v49  ;;  %7447 = vmatprep.subr.bf16.mxu0 %v7880_v12 }
 0x4be   :  { %7469 = vmatprep.subr.bf16.mxu1 %v7881_v14 }
 0x4c0   :  { %7448 = vmatpush3.bf16.msra.mxu0 %v7882_v55 }
 0x4c1   :  { %7470 = vmatpush3.bf16.msra.mxu1 %v7883_v15  ;;  %7449 = vmatprep.subr.bf16.mxu0 %v7884_v16 }
 0x4c2   :  { %7471 = vmatprep.subr.bf16.mxu1 %v7885_v17 }
 0x4c4   :  { %7450 = vmatpush3.bf16.msra.mxu0 %v7886_v18 }
 0x4c5   :  { %7472 = vmatpush3.bf16.msra.mxu1 %v7887_v48  ;;  %7451 = vmatprep.subr.bf16.mxu0 %v7888_v19 }
 0x4c6   :  { %7473 = vmatprep.subr.bf16.mxu1 %v7889_v45 }
 0x4c8   :  { %7452 = vmatpush3.bf16.msra.mxu0 %v7890_v20 }
 0x4c9   :  { %7474 = vmatpush3.bf16.msra.mxu1 %v7891_v8  ;;  %7453 = vmatprep.subr.bf16.mxu0 %v7892_v21 }
 0x4ca   :  { %7475 = vmatprep.subr.bf16.mxu1 %v7893_v24 }
 0x4cc   :  { %7454 = vmatpush3.bf16.msra.mxu0 %v7894_v26 }
 0x4cd   :  { %7476 = vmatpush3.bf16.msra.mxu1 %v7895_v57  ;;  %7455 = vmatprep.subr.bf16.mxu0 %v7896_v27 }
 0x4ce   :  { %7477 = vmatprep.subr.bf16.mxu1 %v7897_v28 }
 0x4d0   :  { %7456 = vmatpush3.bf16.msra.mxu0 %v7898_v31 }
 0x4d1   :  { %7478 = vmatpush3.bf16.msra.mxu1 %v7899_v32  ;;  %7457 = vmatprep.subr.bf16.mxu0 %v7900_v33 }
 0x4d2   :  { %7479 = vmatprep.subr.bf16.mxu1 %v7901_v52 }
 0x4d4   :  { %7458 = vmatpush3.bf16.msra.mxu0 %v7902_v53 }
 0x4d5   :  { %7480 = vmatpush3.bf16.msra.mxu1 %v7903_v34  ;;  %7459 = vmatprep.subr.bf16.mxu0 %v7904_v37 }
 0x4d6   :  { %7481 = vmatprep.subr.bf16.mxu1 %v7905_v39 }
 0x4d8   :  { %7460 = vmatpush3.bf16.msra.mxu0 %v7906_v40 }
 0x4d9   :  { %7482 = vmatpush3.bf16.msra.mxu1 %v7907_v42 }
 0x52e   :  { %v5034_v59 = vpop.f32.mrb[20].mxu0 }
 0x52f   :  { %v7505_v50 = vadd.f32 %v5034_v59, %v1878_v43  ;;  %v5116_v54 = vpop.f32.mrb[20].mxu1  ;;  %v5036_v23 = vpop.f32.mrb[21].mxu0 }
 0x530   :  { %v7507_v56 = vadd.f32 %v5116_v54, %v1886_v44  ;;  %v7506_v13 = vadd.f32 %v5036_v23, %v1882_v46  ;;  %v5118_v29 = vpop.f32.mrb[21].mxu1  ;;  %v5038_v47 = vpop.f32.mrb[22].mxu0 }
 0x531   :  { %v5135_v58 = vmax.f32 %v7505_v50, 0.0  ;;  %v7508_v60 = vadd.f32 %v5118_v29, %v1890_v25  ;;  %v5120_v41 = vpop.f32.mrb[22].mxu1  ;;  %v5039_v51 = vpop.f32.mrb[23].mxu0 }
 0x532   :  { %v5137_v62 = vmax.f32 %v7507_v56, 0.0  ;;  %v5136_v38 = vmax.f32 %v7506_v13, 0.0  ;;  %v5121_v63 = vpop.f32.mrb[23].mxu1 }
 0x533   :  { %v5138_v35 = vmax.f32 %v7508_v60, 0.0  ;;  %v5151_v22 = vpack.c.bf16 %v5135_v58, %v5135_v58 }
 0x534   :  { %v5152_v0 = vpack.c.bf16 %v5136_v38, %v5136_v38  ;;  %v5153_v61 = vpack.c.bf16 %v5137_v62, %v5137_v62 }
 0x535   :  { %v5154_v1 = vpack.c.bf16 %v5138_v35, %v5138_v35 }
 0x536   :  { %6458 = vmatprep.mubr.bf16.mxu0 %v5152_v0 }
 0x537   :  { %6498 = vmatprep.mubr.bf16.mxu1 %v5154_v1  ;;  %6459 = vmatmul.mubr.bf16.vlgmr.msra.gmra.mrb[36].mxu0 %v5151_v22 }
 0x538   :  { %6499 = vmatmul.mubr.bf16.vlgmr.msra.gmra.mrb[36].mxu1 %v5153_v61 }
 0x54e   :  { %v7329_v30 = vpop.f32.mrb[24].mxu0 }
 0x54f   :  { %v7351_v2 = vpop.f32.mrb[24].mxu1  ;;  %v7330_v5 = vpop.f32.mrb[25].mxu0 }
 0x550   :  { %v7331_v6 = vadd.f32 %v7330_v5, %v7329_v30  ;;  %v7352_v7 = vpop.f32.mrb[25].mxu1  ;;  %v7332_v3 = vpop.f32.mrb[26].mxu0 }
 0x551   :  { %v7353_v9 = vadd.f32 %v7352_v7, %v7351_v2  ;;  %v7354_v10 = vpop.f32.mrb[26].mxu1  ;;  %v7333_v11 = vpop.f32.mrb[27].mxu0 }
 0x552   :  { %v6221_v49 = vadd.f32 %v7331_v6, %v7184_v4  ;;  %v7355_v12 = vpop.f32.mrb[27].mxu1 }
 0x554   :  { %v6261_v36 = vadd.f32 %v7353_v9, %v6221_v49 }
 0x56e   :  { %v7373_v14 = vpop.f32.mrb[28].mxu0 }
 0x56f   :  { %v7395_v55 = vpop.f32.mrb[28].mxu1  ;;  %v7374_v15 = vpop.f32.mrb[29].mxu0 }
 0x570   :  { %v7375_v16 = vadd.f32 %v7374_v15, %v7373_v14  ;;  %v7396_v17 = vpop.f32.mrb[29].mxu1  ;;  %v7376_v18 = vpop.f32.mrb[30].mxu0 }
 0x571   :  { %v7397_v48 = vadd.f32 %v7396_v17, %v7395_v55  ;;  %v7398_v19 = vpop.f32.mrb[30].mxu1  ;;  %v7377_v45 = vpop.f32.mrb[31].mxu0 }
 0x572   :  { %v6301_v20 = vadd.f32 %v7375_v16, %v6261_v36  ;;  %v7399_v8 = vpop.f32.mrb[31].mxu1 }
 0x574   :  { %v6341_v21 = vadd.f32 %v7397_v48, %v6301_v20 }
 0x58e   :  { %v7417_v24 = vpop.f32.mrb[32].mxu0 }
 0x58f   :  { %v7439_v26 = vpop.f32.mrb[32].mxu1  ;;  %v7418_v57 = vpop.f32.mrb[33].mxu0 }
 0x590   :  { %v7419_v27 = vadd.f32 %v7418_v57, %v7417_v24  ;;  %v7440_v28 = vpop.f32.mrb[33].mxu1  ;;  %v7420_v31 = vpop.f32.mrb[34].mxu0 }
 0x591   :  { %v7441_v32 = vadd.f32 %v7440_v28, %v7439_v26  ;;  %v7442_v33 = vpop.f32.mrb[34].mxu1  ;;  %v7421_v52 = vpop.f32.mrb[35].mxu0 }
 0x592   :  { %v6381_v53 = vadd.f32 %v7419_v27, %v6341_v21  ;;  %v7443_v34 = vpop.f32.mrb[35].mxu1 }
 0x594   :  { %v6421_v37 = vadd.f32 %v7441_v32, %v6381_v53 }
 0x60a   :  { %v7461_v39 = vpop.f32.mrb[36].mxu0 }
 0x60b   :  { %v7483_v40 = vpop.f32.mrb[36].mxu1  ;;  %v7462_v42 = vpop.f32.mrb[37].mxu0 }
 0x60c   :  { %v7463_v43 = vadd.f32 %v7462_v42, %v7461_v39  ;;  %v7484_v44 = vpop.f32.mrb[37].mxu1  ;;  %v7464_v46 = vpop.f32.mrb[38].mxu0 }
 0x60d   :  { %v7485_v25 = vadd.f32 %v7484_v44, %v7483_v40  ;;  %v7486_v59 = vpop.f32.mrb[38].mxu1  ;;  %v7465_v50 = vpop.f32.mrb[39].mxu0 }
 0x60e   :  { %v6461_v54 = vadd.f32 %v7463_v43, %v6421_v37  ;;  %v7487_v23 = vpop.f32.mrb[39].mxu1 }
 0x610   :  { %v6501_v56 = vadd.f32 %v7485_v25, %v6461_v54 }
 0x612   :  { %6506 = vst [vmem:[#allocation16] sm:$0xff] %v6501_v56 }
 0x613   :  { %8095 = shalt.err (!%p8092_p12)
}
 0x614   :  { %s8096_s19 = scalar_lea.hbm %s8471_s9, 128 }
 0x615   :  { %p8097_p13 = scmp.ne.s32.totalorder %s8471_s9, %s8096_s19  ;;  %p8100_p0 = scmp.lt.u32.totalorder %s8096_s19, %s8471_s9 }
 0x617   :  { %p8102_p1 = pnand %p8100_p0, %p8097_p13 }
 0x619   :  { %8105 = shalt.err (!%p8102_p1)
}
 0x61a   :  { %6516 = dma.vmem_to_hbm [thread:$0]  %s6514_s13, 128, %s8471_s9, [#allocation4]  }
 0x61b   :  { %8116 = dma.done.wait [#allocation4], 128  }
 0x61c   :  { %8117 = vsyncadd [#allocation4], 4294967168 }
 0x61d   :  { %6520 = vsyncpa [#allocation3], 1 }
 0x61e   :  { %6521 = vsyncpa [#allocation6], 1 }
 0x61f   :  { %6522 = vsyncpa [#allocation9], 1 }
 0x620   :  { %6523 = vsyncpa [#allocation12], 1 }
 0x621   :  { %6524 = vsyncpa [#allocation15], 1 }
 0x622   :  { %6525 = vsyncpa [#allocation4], 1 }

</bundles_post_ra>
